<compile_context>
chip_gen: v5e
topology: v5e:2x2
jax: 0.10.0
libtpu: 0.0.40
codegen_flags: <defaults>
</compile_context>

<pallas_src>
import functools

import jax
import jax.numpy as jnp
from jax import lax
from jax.experimental import pallas as pl
from jax.experimental.pallas import tpu as pltpu

_LANE = 128                    # output channels padded to lane-dense width
_SUBLANE = 8
_VMEM_LIMIT = 32 * 1024 * 1024


def _round_up(x, m):
    return (x + m - 1) // m * m


def _choose_m_tiles(m):
    """Full-M block when small; otherwise 256-row blocks so the M grid axis has
    >=2 parallel blocks (dual TensorCore on v7x / megacore sharding)."""
    if m <= 256:
        mp = _round_up(m, _SUBLANE)
        return mp, mp
    return _round_up(m, 256), 256


def _compiler_params(interpret):
    if interpret:
        return None
    return pltpu.CompilerParams(dimension_semantics=("parallel",),
                                vmem_limit_bytes=_VMEM_LIMIT)


# ----------------------------------------------------------------------------
# Pallas kernels: single-shot matmul + bias (+ LeakyReLU), and the fused
# layer_5/layer_6 variant.  Full K and full N live in VMEM; grid is M only.
# ----------------------------------------------------------------------------
def _mm_bias_act_kernel(a_ref, w_ref, b_ref, o_ref, *, negative_slope, precision):
    y = jnp.dot(a_ref[...], w_ref[...],
                preferred_element_type=jnp.float32, precision=precision)
    y = y + b_ref[...]
    if negative_slope is not None:
        y = jnp.where(y >= 0, y, y * negative_slope)
    o_ref[...] = y.astype(o_ref.dtype)


def _mm2_bias_act_kernel(a_ref, w5_ref, b5_ref, w6_ref, b6_ref, o_ref, *,
                         negative_slope, precision):
    """layer_5 matmul + bias + LeakyReLU, then layer_6 (1x1 conv) matmul + bias,
    all without leaving VMEM."""
    y = jnp.dot(a_ref[...], w5_ref[...],
                preferred_element_type=jnp.float32, precision=precision)
    y = y + b5_ref[...]
    y = jnp.where(y >= 0, y, y * negative_slope)
    y = jnp.dot(y.astype(w6_ref.dtype), w6_ref[...],
                preferred_element_type=jnp.float32, precision=precision)
    y = y + b6_ref[...]
    o_ref[...] = y.astype(o_ref.dtype)


def _matmul_bias_act(a, w_p, b_p, negative_slope, precision, interpret):
    m, k = a.shape
    kp, np_ = w_p.shape
    mp, tm = _choose_m_tiles(m)
    if (mp, kp) != (m, k):
        a = jnp.pad(a, ((0, mp - m), (0, kp - k)))
    kernel = functools.partial(_mm_bias_act_kernel,
                               negative_slope=negative_slope, precision=precision)
    out = pl.pallas_call(
        kernel,
        out_shape=jax.ShapeDtypeStruct((mp, np_), jnp.float32),
        grid=(mp // tm,),
        in_specs=[pl.BlockSpec((tm, kp), lambda i: (i, 0)),
                  pl.BlockSpec((kp, np_), lambda i: (0, 0)),
                  pl.BlockSpec((1, np_), lambda i: (0, 0))],
        out_specs=pl.BlockSpec((tm, np_), lambda i: (i, 0)),
        compiler_params=_compiler_params(interpret),
        interpret=interpret,
    )(a, w_p, b_p)
    return out[:m]


def _matmul2_bias_act(a, w5_p, b5_p, w6_p, b6_p, negative_slope, precision,
                      interpret):
    m, k = a.shape
    k5p, n5p = w5_p.shape
    n6p = w6_p.shape[1]
    mp, tm = _choose_m_tiles(m)
    if (mp, k5p) != (m, k):
        a = jnp.pad(a, ((0, mp - m), (0, k5p - k)))
    kernel = functools.partial(_mm2_bias_act_kernel,
                               negative_slope=negative_slope, precision=precision)
    out = pl.pallas_call(
        kernel,
        out_shape=jax.ShapeDtypeStruct((mp, n6p), jnp.float32),
        grid=(mp // tm,),
        in_specs=[pl.BlockSpec((tm, k5p), lambda i: (i, 0)),
                  pl.BlockSpec((k5p, n5p), lambda i: (0, 0)),
                  pl.BlockSpec((1, n5p), lambda i: (0, 0)),
                  pl.BlockSpec((n5p, n6p), lambda i: (0, 0)),
                  pl.BlockSpec((1, n6p), lambda i: (0, 0))],
        out_specs=pl.BlockSpec((tm, n6p), lambda i: (i, 0)),
        compiler_params=_compiler_params(interpret),
        interpret=interpret,
    )(a, w5_p, b5_p, w6_p, b6_p)
    return out[:m]


# ----------------------------------------------------------------------------
# im2col glue + per-layer wrappers
# ----------------------------------------------------------------------------
def _im2col(x_nhwc, kh, kw, pad):
    """pad = ((top, bottom), (left, right)). Returns (M, kh*kw*C), (N, Ho, Wo)."""
    n, h, w, c = x_nhwc.shape
    xp = jnp.pad(x_nhwc, ((0, 0), pad[0], pad[1], (0, 0)))
    ho = h + pad[0][0] + pad[0][1] - kh + 1
    wo = w + pad[1][0] + pad[1][1] - kw + 1
    cols = []
    for i in range(kh):
        for j in range(kw):
            cols.append(xp[:, i:i + ho, j:j + wo, :])
    patches = jnp.concatenate(cols, axis=-1)              # (N, Ho, Wo, kh*kw*C)
    return patches.reshape(n * ho * wo, kh * kw * c), (n, ho, wo)


def conv2d(x_nhwc, layer, padding, negative_slope, precision, interpret):
    a, (n, ho, wo) = _im2col(x_nhwc.astype(layer["w"].dtype),
                             layer["kh"], layer["kw"], padding)
    assert a.shape[1] == layer["k_real"]
    y = _matmul_bias_act(a, layer["w"], layer["b"], negative_slope,
                         precision, interpret)
    return y[:, :layer["n_real"]].reshape(n, ho, wo, layer["n_real"])


def conv5_conv6(x_nhwc, l5, l6, negative_slope, precision, interpret):
    a, (n, ho, wo) = _im2col(x_nhwc.astype(l5["w"].dtype),
                             l5["kh"], l5["kw"], ((1, 1), (1, 1)))
    y = _matmul2_bias_act(a, l5["w"], l5["b"], l6["w"], l6["b"],
                          negative_slope, precision, interpret)
    return y[:, :l6["n_real"]].reshape(n, ho, wo, l6["n_real"])


# ----------------------------------------------------------------------------
# One-time weight packing (including the ConvTranspose phase decomposition)
# ----------------------------------------------------------------------------
def _deconv_phase_weight_matrix(w_t):
    """ConvTranspose2d(k=5, s=2, p=3, output_padding=1) as a 3x3 conv with 4x
    output channels (sub-pixel / phase decomposition).

    w_t: (C_in, C_out, 5, 5) in PyTorch ConvTranspose2d layout.
    Returns a (9*C_in, 4*C_out) matmul weight matching _im2col's (i, j, c) row
    order.  Output-channel block ph = 2*r + s produces the output pixels with
    (row % 2, col % 2) == (r, s); output (2a+r, 2b+s) reads input rows/cols
    a..a+2 (with one extra zero on the high side).
    """
    c_in, c_out, kh, kw = w_t.shape
    assert (kh, kw) == (5, 5)
    wbig = jnp.zeros((3, 3, c_in, 4, c_out), w_t.dtype)
    for r in (0, 1):
        for s in (0, 1):
            ph = 2 * r + s
            for u in range(2 if r == 0 else 3):
                for v in range(2 if s == 0 else 3):
                    tap = w_t[:, :, 3 + r - 2 * u, 3 + s - 2 * v]  # (C_in, C_out)
                    wbig = wbig.at[u, v, :, ph, :].set(tap)
    return wbig.reshape(9 * c_in, 4 * c_out)


def prepare_params(p, compute_dtype=jnp.bfloat16):
    """One-time packing: conv weights -> (Kp, Np) matmul matrices (K padded to
    a multiple of 8 only, output channels padded to a lane-dense 128), cast to
    the matmul compute dtype; biases stay f32."""
    def pack(w_mat, b_vec, kh, kw):
        k, n = w_mat.shape
        kp, np_ = _round_up(k, _SUBLANE), _round_up(n, _LANE)
        w_p = jnp.zeros((kp, np_), compute_dtype).at[:k, :n].set(
            w_mat.astype(compute_dtype))
        b_p = jnp.zeros((1, np_), jnp.float32).at[0, :n].set(
            b_vec.astype(jnp.float32))
        return {"w": w_p, "b": b_p, "k_real": k, "n_real": n, "kh": kh, "kw": kw}

    def conv_layer(w_oihw, b):
        c_out, c_in, kh, kw = w_oihw.shape
        w2 = jnp.transpose(w_oihw, (2, 3, 1, 0)).reshape(kh * kw * c_in, c_out)
        return pack(w2, b, kh, kw)

    prep = {
        "l31": conv_layer(p["w31"], p["b31"]),
        "l32": conv_layer(p["w32"], p["b32"]),
        "l33": conv_layer(p["w33"], p["b33"]),
        "l5": conv_layer(p["w5"], p["b5"]),
    }
    # layer_4: phase-decomposed ConvTranspose2d as a 3x3 conv, 4*C_out outputs.
    prep["l4"] = pack(_deconv_phase_weight_matrix(p["wt4"]),
                      jnp.tile(p["b4"], 4), 3, 3)
    # layer_6 (1x1 conv) packed for fusion: its K axis is padded to layer_5's
    # padded output width so it consumes the in-VMEM layer_5 result directly
    # (padded layer_5 columns are exactly zero, so the fusion is exact).
    c_out6, c_in6, _, _ = p["w6"].shape
    n5p = prep["l5"]["w"].shape[1]
    n6p = _round_up(c_out6, _LANE)
    w6 = jnp.transpose(p["w6"], (2, 3, 1, 0)).reshape(c_in6, c_out6)
    w6_p = jnp.zeros((n5p, n6p), compute_dtype).at[:c_in6, :c_out6].set(
        w6.astype(compute_dtype))
    b6_p = jnp.zeros((1, n6p), jnp.float32).at[0, :c_out6].set(
        p["b6"].astype(jnp.float32))
    prep["l6"] = {"w": w6_p, "b": b6_p, "n_real": c_out6}
    return prep


# ----------------------------------------------------------------------------
# ImageReconModel forward
# ----------------------------------------------------------------------------
def image_recon_forward(x_nchw, prep, *, negative_slope=0.2,
                        precision=lax.Precision.DEFAULT, interpret=False):
    x = jnp.transpose(x_nchw, (0, 2, 3, 1)).astype(jnp.float32)   # NCHW -> NHWC
    p1 = ((1, 1), (1, 1))
    h = conv2d(x, prep["l31"], p1, negative_slope, precision, interpret)
    h = conv2d(h, prep["l32"], p1, negative_slope, precision, interpret)
    h = conv2d(h, prep["l33"], p1, negative_slope, precision, interpret)
    h = x + h                                                     # residual add
    # layer_4: ZeroPad2d((1,0,1,0)) + ConvTranspose2d(5, 2, 3, output_padding=1)
    # == spatial pad ((1,1),(1,1)) + 3x3 phase conv (4*C_out ch) + pixel shuffle.
    z = conv2d(h, prep["l4"], p1, None, precision, interpret)     # (N,H,W,4*C4)
    nb, hh, wh, c4x4 = z.shape
    c4 = c4x4 // 4
    z = z.reshape(nb, hh, wh, 2, 2, c4)
    z = jnp.transpose(z, (0, 1, 3, 2, 4, 5)).reshape(nb, 2 * hh, 2 * wh, c4)
    # layer_5 + LeakyReLU + layer_6 fused into a single Pallas kernel.
    y = conv5_conv6(z, prep["l5"], prep["l6"], negative_slope, precision,
                    interpret)
    return jnp.transpose(y, (0, 3, 1, 2))                         # NHWC -> NCHW


# ----------------------------------------------------------------------------
# Pure-JAX reference (correctness check only)
# ----------------------------------------------------------------------------
def _ref_forward(x, p, ns=0.2):
    dn = ("NCHW", "OIHW", "NCHW")

    def lrelu(v):
        return jnp.where(v >= 0, v, v * ns)

    def conv(v, w, b, pad):
        y = lax.conv_general_dilated(v, w, (1, 1), pad, dimension_numbers=dn,
                                     precision=lax.Precision.HIGHEST)
        return y + b[None, :, None, None]

    h = lrelu(conv(x, p["w31"], p["b31"], ((1, 1), (1, 1))))
    h = lrelu(conv(h, p["w32"], p["b32"], ((1, 1), (1, 1))))
    h = lrelu(conv(h, p["w33"], p["b33"], ((1, 1), (1, 1))))
    h = x + h
    h = jnp.pad(h, ((0, 0), (0, 0), (1, 0), (1, 0)))
    w_conv = jnp.flip(p["wt4"], axis=(2, 3)).transpose(1, 0, 2, 3)
    y = lax.conv_general_dilated(h, w_conv, (1, 1), ((1, 2), (1, 2)),
                                 lhs_dilation=(2, 2), dimension_numbers=dn,
                                 precision=lax.Precision.HIGHEST)
    y = y + p["b4"][None, :, None, None]
    y = lrelu(conv(y, p["w5"], p["b5"], ((1, 1), (1, 1))))
    y = conv(y, p["w6"], p["b6"], ((0, 0), (0, 0)))
    return y


if __name__ == "__main__":
    NF = 48                     # num_filters (small; divisible by 3 and 12)
    N, H, W = 2, 8, 8
    C_in = NF * 2

    key = jax.random.PRNGKey(0)
    ks = jax.random.split(key, 13)

    def rnd(k, shape, scale=0.05):
        return (jax.random.normal(k, shape, jnp.float32) * scale).astype(jnp.float32)

    params = {
        "w31": rnd(ks[0], (NF, 2 * NF, 3, 3)),       "b31": rnd(ks[1], (NF,)),
        "w32": rnd(ks[2], (NF, NF, 3, 3)),           "b32": rnd(ks[3], (NF,)),
        "w33": rnd(ks[4], (2 * NF, NF, 3, 3)),       "b33": rnd(ks[5], (2 * NF,)),
        # ConvTranspose2d weight layout: (C_in, C_out, kH, kW)
        "wt4": rnd(ks[6], (2 * NF, NF // 3, 5, 5)),  "b4": rnd(ks[7], (NF // 3,)),
        "w5": rnd(ks[8], (NF // 12, NF // 3, 3, 3)), "b5": rnd(ks[9], (NF // 12,)),
        "w6": rnd(ks[10], (3, NF // 12, 1, 1)),      "b6": rnd(ks[11], (3,)),
    }
    x = jax.random.normal(ks[12], (N, C_in, H, W), jnp.float32)

    ref = _ref_forward(x, params)
    scale = float(jnp.max(jnp.abs(ref))) + 1e-6

    # --- performance path: compiled Pallas kernels, bf16 matmul operands -----
    prep_bf16 = prepare_params(params, jnp.bfloat16)
    fwd = jax.jit(lambda inp: image_recon_forward(inp, prep_bf16))
    out = jax.block_until_ready(fwd(x))
    assert out.shape == (N, 3, 2 * H, 2 * W), out.shape
    err_bf16 = float(jnp.max(jnp.abs(out - ref))) / scale
    assert err_bf16 < 4e-2, f"bf16 Pallas path mismatch: rel err = {err_bf16}"

    # --- strict structural check: same Pallas code path, f32 operands with
    # HIGHEST precision, run in interpret mode.  Tight tolerance catches any
    # padding / phase-decomposition / pixel-shuffle / BlockSpec bug. ----------
    prep_f32 = prepare_params(params, jnp.float32)
    out_strict = image_recon_forward(x, prep_f32,
                                     precision=lax.Precision.HIGHEST,
                                     interpret=True)
    err_strict = float(jnp.max(jnp.abs(out_strict - ref))) / scale
    assert err_strict < 1e-4, f"strict f32 mismatch: rel err = {err_strict}"

    print("KERNEL_OK")
</pallas_src>

<mosaic_0001>
module attributes {stable_mosaic.version = 11 : i64} {
  func.func @_mm_bias_act_kernel(%arg0: i32, %arg1: memref<128x864xbf16, #tpu.memory_space<vmem>>, %arg2: memref<864x128xbf16, #tpu.memory_space<vmem>>, %arg3: memref<1x128xf32, #tpu.memory_space<vmem>>, %arg4: memref<128x128xf32, #tpu.memory_space<vmem>>) attributes {dimension_semantics = [#tpu.dimension_semantics<parallel>], iteration_bounds = array<i64: 1>, scalar_prefetch = 0 : i64, scratch_operands = 0 : i64, tpu.core_type = #tpu.core_type<tc>, window_params = [{transform_indices = @transform_0, window_bounds = array<i64: 128, 864>}, {pipeline_mode = #tpu.pipeline_mode<synchronous>, transform_indices = @transform_1, window_bounds = array<i64: 864, 128>}, {pipeline_mode = #tpu.pipeline_mode<synchronous>, transform_indices = @transform_2, window_bounds = array<i64: 1, 128>}, {transform_indices = @transform_3, window_bounds = array<i64: 128, 128>}]} {
    %c0 = arith.constant 0 : index
    %c0_0 = arith.constant 0 : index
    %0 = vector.load %arg1[%c0, %c0_0] : memref<128x864xbf16, #tpu.memory_space<vmem>>, vector<128x864xbf16>
    %c0_1 = arith.constant 0 : index
    %c0_2 = arith.constant 0 : index
    %1 = vector.load %arg2[%c0_1, %c0_2] : memref<864x128xbf16, #tpu.memory_space<vmem>>, vector<864x128xbf16>
    %cst = arith.constant dense<0.000000e+00> : vector<128x128xf32>
    %2 = tpu.matmul %0, %1, %cst {dimension_numbers = #tpu.dot_dimension_numbers<[1], [0], [0], [1], [0, 0, 1, 1], [], []>} : vector<128x864xbf16>, vector<864x128xbf16>, vector<128x128xf32> -> vector<128x128xf32>
    %c0_3 = arith.constant 0 : index
    %c0_4 = arith.constant 0 : index
    %3 = vector.load %arg3[%c0_3, %c0_4] : memref<1x128xf32, #tpu.memory_space<vmem>>, vector<1x128xf32>
    %4 = vector.broadcast %3 : vector<1x128xf32> to vector<128x128xf32>
    %5 = arith.addf %2, %4 : vector<128x128xf32>
    %cst_5 = arith.constant 0.000000e+00 : f32
    %6 = vector.broadcast %cst_5 : f32 to vector<128x128xf32>
    %7 = arith.cmpf oge, %5, %6 : vector<128x128xf32>
    %cst_6 = arith.constant 2.000000e-01 : f32
    %8 = vector.broadcast %cst_6 : f32 to vector<128x128xf32>
    %9 = arith.mulf %5, %8 : vector<128x128xf32>
    %10 = arith.select %7, %5, %9 : vector<128x128xi1>, vector<128x128xf32>
    %c0_7 = arith.constant 0 : index
    %c0_8 = arith.constant 0 : index
    %11 = vector.load %arg4[%c0_7, %c0_8] : memref<128x128xf32, #tpu.memory_space<vmem>>, vector<128x128xf32>
    tpu.vector_store %arg4[%c0_7, %c0_8], %10 {strides = array<i32>} : memref<128x128xf32, #tpu.memory_space<vmem>>, vector<128x128xf32>,
    return
  }
  func.func @transform_0(%arg0: i32) -> (i32, i32) {
    %c0_i32 = arith.constant 0 : i32
    %c0_i32_0 = arith.constant 0 : i32
    return %arg0, %c0_i32 : i32, i32
  }
  func.func @transform_1(%arg0: i32) -> (i32, i32) {
    %c0_i32 = arith.constant 0 : i32
    %c0_i32_0 = arith.constant 0 : i32
    %c0_i32_1 = arith.constant 0 : i32
    return %c0_i32, %c0_i32_0 : i32, i32
  }
  func.func @transform_2(%arg0: i32) -> (i32, i32) {
    %c0_i32 = arith.constant 0 : i32
    %c0_i32_0 = arith.constant 0 : i32
    %c0_i32_1 = arith.constant 0 : i32
    return %c0_i32, %c0_i32_0 : i32, i32
  }
  func.func @transform_3(%arg0: i32) -> (i32, i32) {
    %c0_i32 = arith.constant 0 : i32
    %c0_i32_0 = arith.constant 0 : i32
    return %arg0, %c0_i32 : i32, i32
  }
}

module attributes {stable_mosaic.version = 11 : i64} {
  func.func @_mm_bias_act_kernel(%arg0: i32, %arg1: memref<128x432xbf16, #tpu.memory_space<vmem>>, %arg2: memref<432x128xbf16, #tpu.memory_space<vmem>>, %arg3: memref<1x128xf32, #tpu.memory_space<vmem>>, %arg4: memref<128x128xf32, #tpu.memory_space<vmem>>) attributes {dimension_semantics = [#tpu.dimension_semantics<parallel>], iteration_bounds = array<i64: 1>, scalar_prefetch = 0 : i64, scratch_operands = 0 : i64, tpu.core_type = #tpu.core_type<tc>, window_params = [{transform_indices = @transform_0, window_bounds = array<i64: 128, 432>}, {pipeline_mode = #tpu.pipeline_mode<synchronous>, transform_indices = @transform_1, window_bounds = array<i64: 432, 128>}, {pipeline_mode = #tpu.pipeline_mode<synchronous>, transform_indices = @transform_2, window_bounds = array<i64: 1, 128>}, {transform_indices = @transform_3, window_bounds = array<i64: 128, 128>}]} {
    %c0 = arith.constant 0 : index
    %c0_0 = arith.constant 0 : index
    %0 = vector.load %arg1[%c0, %c0_0] : memref<128x432xbf16, #tpu.memory_space<vmem>>, vector<128x432xbf16>
    %c0_1 = arith.constant 0 : index
    %c0_2 = arith.constant 0 : index
    %1 = vector.load %arg2[%c0_1, %c0_2] : memref<432x128xbf16, #tpu.memory_space<vmem>>, vector<432x128xbf16>
    %cst = arith.constant dense<0.000000e+00> : vector<128x128xf32>
    %2 = tpu.matmul %0, %1, %cst {dimension_numbers = #tpu.dot_dimension_numbers<[1], [0], [0], [1], [0, 0, 1, 1], [], []>} : vector<128x432xbf16>, vector<432x128xbf16>, vector<128x128xf32> -> vector<128x128xf32>
    %c0_3 = arith.constant 0 : index
    %c0_4 = arith.constant 0 : index
    %3 = vector.load %arg3[%c0_3, %c0_4] : memref<1x128xf32, #tpu.memory_space<vmem>>, vector<1x128xf32>
    %4 = vector.broadcast %3 : vector<1x128xf32> to vector<128x128xf32>
    %5 = arith.addf %2, %4 : vector<128x128xf32>
    %cst_5 = arith.constant 0.000000e+00 : f32
    %6 = vector.broadcast %cst_5 : f32 to vector<128x128xf32>
    %7 = arith.cmpf oge, %5, %6 : vector<128x128xf32>
    %cst_6 = arith.constant 2.000000e-01 : f32
    %8 = vector.broadcast %cst_6 : f32 to vector<128x128xf32>
    %9 = arith.mulf %5, %8 : vector<128x128xf32>
    %10 = arith.select %7, %5, %9 : vector<128x128xi1>, vector<128x128xf32>
    %c0_7 = arith.constant 0 : index
    %c0_8 = arith.constant 0 : index
    %11 = vector.load %arg4[%c0_7, %c0_8] : memref<128x128xf32, #tpu.memory_space<vmem>>, vector<128x128xf32>
    tpu.vector_store %arg4[%c0_7, %c0_8], %10 {strides = array<i32>} : memref<128x128xf32, #tpu.memory_space<vmem>>, vector<128x128xf32>,
    return
  }
  func.func @transform_0(%arg0: i32) -> (i32, i32) {
    %c0_i32 = arith.constant 0 : i32
    %c0_i32_0 = arith.constant 0 : i32
    return %arg0, %c0_i32 : i32, i32
  }
  func.func @transform_1(%arg0: i32) -> (i32, i32) {
    %c0_i32 = arith.constant 0 : i32
    %c0_i32_0 = arith.constant 0 : i32
    %c0_i32_1 = arith.constant 0 : i32
    return %c0_i32, %c0_i32_0 : i32, i32
  }
  func.func @transform_2(%arg0: i32) -> (i32, i32) {
    %c0_i32 = arith.constant 0 : i32
    %c0_i32_0 = arith.constant 0 : i32
    %c0_i32_1 = arith.constant 0 : i32
    return %c0_i32, %c0_i32_0 : i32, i32
  }
  func.func @transform_3(%arg0: i32) -> (i32, i32) {
    %c0_i32 = arith.constant 0 : i32
    %c0_i32_0 = arith.constant 0 : i32
    return %arg0, %c0_i32 : i32, i32
  }
}

module attributes {stable_mosaic.version = 11 : i64} {
  func.func @_mm_bias_act_kernel(%arg0: i32, %arg1: memref<128x864xbf16, #tpu.memory_space<vmem>>, %arg2: memref<864x128xbf16, #tpu.memory_space<vmem>>, %arg3: memref<1x128xf32, #tpu.memory_space<vmem>>, %arg4: memref<128x128xf32, #tpu.memory_space<vmem>>) attributes {dimension_semantics = [#tpu.dimension_semantics<parallel>], iteration_bounds = array<i64: 1>, scalar_prefetch = 0 : i64, scratch_operands = 0 : i64, tpu.core_type = #tpu.core_type<tc>, window_params = [{transform_indices = @transform_0, window_bounds = array<i64: 128, 864>}, {pipeline_mode = #tpu.pipeline_mode<synchronous>, transform_indices = @transform_1, window_bounds = array<i64: 864, 128>}, {pipeline_mode = #tpu.pipeline_mode<synchronous>, transform_indices = @transform_2, window_bounds = array<i64: 1, 128>}, {transform_indices = @transform_3, window_bounds = array<i64: 128, 128>}]} {
    %c0 = arith.constant 0 : index
    %c0_0 = arith.constant 0 : index
    %0 = vector.load %arg1[%c0, %c0_0] : memref<128x864xbf16, #tpu.memory_space<vmem>>, vector<128x864xbf16>
    %c0_1 = arith.constant 0 : index
    %c0_2 = arith.constant 0 : index
    %1 = vector.load %arg2[%c0_1, %c0_2] : memref<864x128xbf16, #tpu.memory_space<vmem>>, vector<864x128xbf16>
    %cst = arith.constant dense<0.000000e+00> : vector<128x128xf32>
    %2 = tpu.matmul %0, %1, %cst {dimension_numbers = #tpu.dot_dimension_numbers<[1], [0], [0], [1], [0, 0, 1, 1], [], []>} : vector<128x864xbf16>, vector<864x128xbf16>, vector<128x128xf32> -> vector<128x128xf32>
    %c0_3 = arith.constant 0 : index
    %c0_4 = arith.constant 0 : index
    %3 = vector.load %arg3[%c0_3, %c0_4] : memref<1x128xf32, #tpu.memory_space<vmem>>, vector<1x128xf32>
    %4 = vector.broadcast %3 : vector<1x128xf32> to vector<128x128xf32>
    %5 = arith.addf %2, %4 : vector<128x128xf32>
    %c0_5 = arith.constant 0 : index
    %c0_6 = arith.constant 0 : index
    %6 = vector.load %arg4[%c0_5, %c0_6] : memref<128x128xf32, #tpu.memory_space<vmem>>, vector<128x128xf32>
    tpu.vector_store %arg4[%c0_5, %c0_6], %5 {strides = array<i32>} : memref<128x128xf32, #tpu.memory_space<vmem>>, vector<128x128xf32>,
    return
  }
  func.func @transform_0(%arg0: i32) -> (i32, i32) {
    %c0_i32 = arith.constant 0 : i32
    %c0_i32_0 = arith.constant 0 : i32
    return %arg0, %c0_i32 : i32, i32
  }
  func.func @transform_1(%arg0: i32) -> (i32, i32) {
    %c0_i32 = arith.constant 0 : i32
    %c0_i32_0 = arith.constant 0 : i32
    %c0_i32_1 = arith.constant 0 : i32
    return %c0_i32, %c0_i32_0 : i32, i32
  }
  func.func @transform_2(%arg0: i32) -> (i32, i32) {
    %c0_i32 = arith.constant 0 : i32
    %c0_i32_0 = arith.constant 0 : i32
    %c0_i32_1 = arith.constant 0 : i32
    return %c0_i32, %c0_i32_0 : i32, i32
  }
  func.func @transform_3(%arg0: i32) -> (i32, i32) {
    %c0_i32 = arith.constant 0 : i32
    %c0_i32_0 = arith.constant 0 : i32
    return %arg0, %c0_i32 : i32, i32
  }
}

module attributes {stable_mosaic.version = 11 : i64} {
  func.func @_mm2_bias_act_kernel(%arg0: i32, %arg1: memref<256x144xbf16, #tpu.memory_space<vmem>>, %arg2: memref<144x128xbf16, #tpu.memory_space<vmem>>, %arg3: memref<1x128xf32, #tpu.memory_space<vmem>>, %arg4: memref<128x128xbf16, #tpu.memory_space<vmem>>, %arg5: memref<1x128xf32, #tpu.memory_space<vmem>>, %arg6: memref<256x128xf32, #tpu.memory_space<vmem>>) attributes {dimension_semantics = [#tpu.dimension_semantics<parallel>], iteration_bounds = array<i64: 2>, scalar_prefetch = 0 : i64, scratch_operands = 0 : i64, tpu.core_type = #tpu.core_type<tc>, window_params = [{transform_indices = @transform_0, window_bounds = array<i64: 256, 144>}, {pipeline_mode = #tpu.pipeline_mode<synchronous>, transform_indices = @transform_1, window_bounds = array<i64: 144, 128>}, {pipeline_mode = #tpu.pipeline_mode<synchronous>, transform_indices = @transform_2, window_bounds = array<i64: 1, 128>}, {pipeline_mode = #tpu.pipeline_mode<synchronous>, transform_indices = @transform_3, window_bounds = array<i64: 128, 128>}, {pipeline_mode = #tpu.pipeline_mode<synchronous>, transform_indices = @transform_4, window_bounds = array<i64: 1, 128>}, {transform_indices = @transform_5, window_bounds = array<i64: 256, 128>}]} {
    %c0 = arith.constant 0 : index
    %c0_0 = arith.constant 0 : index
    %0 = vector.load %arg1[%c0, %c0_0] : memref<256x144xbf16, #tpu.memory_space<vmem>>, vector<256x144xbf16>
    %c0_1 = arith.constant 0 : index
    %c0_2 = arith.constant 0 : index
    %1 = vector.load %arg2[%c0_1, %c0_2] : memref<144x128xbf16, #tpu.memory_space<vmem>>, vector<144x128xbf16>
    %cst = arith.constant dense<0.000000e+00> : vector<256x128xf32>
    %2 = tpu.matmul %0, %1, %cst {dimension_numbers = #tpu.dot_dimension_numbers<[1], [0], [0], [1], [0, 0, 1, 1], [], []>} : vector<256x144xbf16>, vector<144x128xbf16>, vector<256x128xf32> -> vector<256x128xf32>
    %c0_3 = arith.constant 0 : index
    %c0_4 = arith.constant 0 : index
    %3 = vector.load %arg3[%c0_3, %c0_4] : memref<1x128xf32, #tpu.memory_space<vmem>>, vector<1x128xf32>
    %4 = vector.broadcast %3 : vector<1x128xf32> to vector<256x128xf32>
    %5 = arith.addf %2, %4 : vector<256x128xf32>
    %cst_5 = arith.constant 0.000000e+00 : f32
    %6 = vector.broadcast %cst_5 : f32 to vector<256x128xf32>
    %7 = arith.cmpf oge, %5, %6 : vector<256x128xf32>
    %cst_6 = arith.constant 2.000000e-01 : f32
    %8 = vector.broadcast %cst_6 : f32 to vector<256x128xf32>
    %9 = arith.mulf %5, %8 : vector<256x128xf32>
    %10 = arith.select %7, %5, %9 : vector<256x128xi1>, vector<256x128xf32>
    %11 = arith.truncf %10 : vector<256x128xf32> to vector<256x128xbf16>
    %c0_7 = arith.constant 0 : index
    %c0_8 = arith.constant 0 : index
    %12 = vector.load %arg4[%c0_7, %c0_8] : memref<128x128xbf16, #tpu.memory_space<vmem>>, vector<128x128xbf16>
    %cst_9 = arith.constant dense<0.000000e+00> : vector<256x128xf32>
    %13 = tpu.matmul %11, %12, %cst_9 {dimension_numbers = #tpu.dot_dimension_numbers<[1], [0], [0], [1], [0, 0, 1, 1], [], []>} : vector<256x128xbf16>, vector<128x128xbf16>, vector<256x128xf32> -> vector<256x128xf32>
    %c0_10 = arith.constant 0 : index
    %c0_11 = arith.constant 0 : index
    %14 = vector.load %arg5[%c0_10, %c0_11] : memref<1x128xf32, #tpu.memory_space<vmem>>, vector<1x128xf32>
    %15 = vector.broadcast %14 : vector<1x128xf32> to vector<256x128xf32>
    %16 = arith.addf %13, %15 : vector<256x128xf32>
    %c0_12 = arith.constant 0 : index
    %c0_13 = arith.constant 0 : index
    %17 = vector.load %arg6[%c0_12, %c0_13] : memref<256x128xf32, #tpu.memory_space<vmem>>, vector<256x128xf32>
    tpu.vector_store %arg6[%c0_12, %c0_13], %16 {strides = array<i32>} : memref<256x128xf32, #tpu.memory_space<vmem>>, vector<256x128xf32>,
    return
  }
  func.func @transform_0(%arg0: i32) -> (i32, i32) {
    %c0_i32 = arith.constant 0 : i32
    %c0_i32_0 = arith.constant 0 : i32
    return %arg0, %c0_i32 : i32, i32
  }
  func.func @transform_1(%arg0: i32) -> (i32, i32) {
    %c0_i32 = arith.constant 0 : i32
    %c0_i32_0 = arith.constant 0 : i32
    %c0_i32_1 = arith.constant 0 : i32
    return %c0_i32, %c0_i32_0 : i32, i32
  }
  func.func @transform_2(%arg0: i32) -> (i32, i32) {
    %c0_i32 = arith.constant 0 : i32
    %c0_i32_0 = arith.constant 0 : i32
    %c0_i32_1 = arith.constant 0 : i32
    return %c0_i32, %c0_i32_0 : i32, i32
  }
  func.func @transform_3(%arg0: i32) -> (i32, i32) {
    %c0_i32 = arith.constant 0 : i32
    %c0_i32_0 = arith.constant 0 : i32
    %c0_i32_1 = arith.constant 0 : i32
    return %c0_i32, %c0_i32_0 : i32, i32
  }
  func.func @transform_4(%arg0: i32) -> (i32, i32) {
    %c0_i32 = arith.constant 0 : i32
    %c0_i32_0 = arith.constant 0 : i32
    %c0_i32_1 = arith.constant 0 : i32
    return %c0_i32, %c0_i32_0 : i32, i32
  }
  func.func @transform_5(%arg0: i32) -> (i32, i32) {
    %c0_i32 = arith.constant 0 : i32
    %c0_i32_0 = arith.constant 0 : i32
    return %arg0, %c0_i32 : i32, i32
  }
}

</mosaic_0001>

<bundles_post_ra>
// kernel: _lambda_.5
= control target key start
LH: loop header
LB: loop body
LE: loop exit
PB: predicated region body
PF: predicated region fallthrough
CT: control target
= control target key end

     0   :  { %vm795_vm0 = vcmask 785408   ;;  %s2533_s1 = inlined_call_operand.vmem [shape: bf16[864,128], index: 1, kind: input, shape index: {}]   ;;  %s2534_s2 = inlined_call_operand.vmem [shape: f32[1,128], index: 2, kind: input, shape index: {}]   ;;  %s2535_s0 = inlined_call_operand.vmem [shape: bf16[128,864], index: 0, kind: input, shape index: {}]   ;;  %s2536_s3 = inlined_call_operand.vmem [shape: f32[128,128], index: 3, kind: output, shape index: {}]  }
   0x1   :  { %v1742_v0 = vld [vmem:[%s2533_s1 + $0x38] sm:$0xff]  ;;  %v1741_v3 = vld [vmem:[%s2533_s1 + $0x30] sm:$0xff]  ;;  %v1740_v6 = vld [vmem:[%s2533_s1 + $0x28] sm:$0xff] }
   0x2   :  { %v1840_v1 = vld [vmem:[%s2533_s1 + $0xb8] sm:$0xff]  ;;  %820 = vmatpush.bf16.msra.mxu0 %v1742_v0  ;;  %1789 = vmatpush.bf16.msra.mxu3 %v1742_v0  ;;  %v1855_v4 = vld [vmem:[%s2533_s1 + $0xb0] sm:$0xff]  ;;  %v1870_v7 = vld [vmem:[%s2533_s1 + $0xa8] sm:$0xff] }
   0x3   :  { %v1845_v2 = vld [vmem:[%s2533_s1 + $0x78] sm:$0xff]  ;;  %1805 = vmatpush.bf16.msra.mxu2 %v1840_v1  ;;  %v1860_v5 = vld [vmem:[%s2533_s1 + $0x70] sm:$0xff]  ;;  %v1875_v8 = vld [vmem:[%s2533_s1 + $0x68] sm:$0xff] }
   0x4   :  { %1797 = vmatpush.bf16.msra.mxu1 %v1845_v2  ;;  %v1739_v9 = vld [vmem:[%s2533_s1 + $0x20] sm:$0xff]  ;;  %v1738_v12 = vld [vmem:[%s2533_s1 + $0x18] sm:$0xff]  ;;  %v1737_v15 = vld [vmem:[%s2533_s1 + $0x10] sm:$0xff] }
   0x5   :  { %v1885_v10 = vld [vmem:[%s2533_s1 + $0xa0] sm:$0xff]  ;;  %v1900_v13 = vld [vmem:[%s2533_s1 + $0x98] sm:$0xff]  ;;  %v1915_v16 = vld [vmem:[%s2533_s1 + $0x90] sm:$0xff] }
   0x6   :  { %821 = vmatpush.bf16.msra.mxu0 %v1741_v3  ;;  %1790 = vmatpush.bf16.msra.mxu3 %v1741_v3  ;;  %v1890_v11 = vld [vmem:[%s2533_s1 + $0x60] sm:$0xff]  ;;  %v1905_v14 = vld [vmem:[%s2533_s1 + $0x58] sm:$0xff]  ;;  %v1920_v17 = vld [vmem:[%s2533_s1 + $0x50] sm:$0xff] }
   0x7   :  { %1806 = vmatpush.bf16.msra.mxu2 %v1855_v4  ;;  %v1736_v18 = vld [vmem:[%s2533_s1 + $0x8] sm:$0xff]  ;;  %v1735_v21 = vld [vmem:[%s2533_s1] sm:$0xff]  ;;  %v1682_v25 = vld [vmem:[%s2535_s0 + $0x18] sm:$0xf0] }
   0x8   :  { %1798 = vmatpush.bf16.msra.mxu1 %v1860_v5  ;;  %v1930_v19 = vld [vmem:[%s2533_s1 + $0x88] sm:$0xff]  ;;  %v1943_v22 = vld [vmem:[%s2533_s1 + $0x80] sm:$0xff]  ;;  %v1289_v26 = vld [vmem:[%s2535_s0 + $0x70] sm:$0xf] }
   0x9   :  { %v1935_v20 = vld [vmem:[%s2533_s1 + $0x48] sm:$0xff]  ;;  %v1948_v23 = vld [vmem:[%s2533_s1 + $0x40] sm:$0xff]  ;;  %v1297_v28 = vld [vmem:[%s2535_s0 + $0x78] sm:$0xf] }
   0xa   :  { %822 = vmatpush.bf16.msra.mxu0 %v1740_v6  ;;  %1791 = vmatpush.bf16.msra.mxu3 %v1740_v6  ;;  %v1233_v24 = vld [vmem:[%s2535_s0] sm:$0xf]  ;;  %v1696_v27 = vld [vmem:[%s2535_s0 + $0x88] sm:$0xf0]  ;;  %v1697_v29 = vld [vmem:[%s2535_s0 + $0x90] sm:$0xf0] }
   0xb   :  { %1807 = vmatpush.bf16.msra.mxu2 %v1870_v7  ;;  %v1693_v30 = vld [vmem:[%s2535_s0 + $0x74] sm:$0xf]  ;;  %v1291_v31 = vld [vmem:[%s2535_s0 + $0x8c] sm:$0xf0]  ;;  %v1766_v32 = vld [vmem:[%s2533_s1 + $0xf8] sm:$0xff]  ;;  %v1234_v33 = vor.u32 %v1682_v25, %v1233_v24  ;;  %v1290_v34 = vor.u32 %v1696_v27, %v1289_v26  ;;  %v1298_v35 = vor.u32 %v1697_v29, %v1297_v28 }
   0xc   :  { %1799 = vmatpush.bf16.msra.mxu1 %v1875_v8  ;;  %v1294_v36 = vor.u32 %v1693_v30, %v1291_v31  ;;  %v1788_v37 = vld [vmem:[%s2533_s1 + $0x1a8] sm:$0xff]  ;;  %v1782_v38 = vld [vmem:[%s2533_s1 + $0x178] sm:$0xff]  ;;  %v1765_v39 = vld [vmem:[%s2533_s1 + $0xf0] sm:$0xff] }
   0xd   :  { %v1781_v40 = vld [vmem:[%s2533_s1 + $0x170] sm:$0xff]  ;;  %v1787_v41 = vld [vmem:[%s2533_s1 + $0x1a0] sm:$0xff]  ;;  %v1764_v42 = vld [vmem:[%s2533_s1 + $0xe8] sm:$0xff] }
   0xe   :  { %823 = vmatpush.bf16.msra.mxu0 %v1739_v9  ;;  %1792 = vmatpush.bf16.msra.mxu3 %v1739_v9  ;;  %v1780_v43 = vld [vmem:[%s2533_s1 + $0x168] sm:$0xff]  ;;  %v1786_v44 = vld [vmem:[%s2533_s1 + $0x198] sm:$0xff]  ;;  %v1763_v45 = vld [vmem:[%s2533_s1 + $0xe0] sm:$0xff] }
   0xf   :  { %1808 = vmatpush.bf16.msra.mxu2 %v1885_v10  ;;  %v1261_v46 = vld [vmem:[%s2535_s0 + $0x38] sm:$0xf]  ;;  %v1689_v47 = vld [vmem:[%s2535_s0 + $0x50] sm:$0xf0]  ;;  %v1317_v48 = vld [vmem:[%s2535_s0 + $0xa8] sm:$0xf] }
  0x10   :  { %1800 = vmatpush.bf16.msra.mxu1 %v1890_v11  ;;  %v1703_v49 = vld [vmem:[%s2535_s0 + $0xc0] sm:$0xf0]  ;;  %v1325_v50 = vld [vmem:[%s2535_s0 + $0xb0] sm:$0xf]  ;;  %v1704_v51 = vld [vmem:[%s2535_s0 + $0xc8] sm:$0xf0]  ;;  %v1262_v55 = vor.u32 %v1689_v47, %v1261_v46 }
  0x11   :  { %v1700_v52 = vld [vmem:[%s2535_s0 + $0xac] sm:$0xf]  ;;  %v1319_v53 = vld [vmem:[%s2535_s0 + $0xc4] sm:$0xf0]  ;;  %v1779_v54 = vld [vmem:[%s2533_s1 + $0x160] sm:$0xff]  ;;  %v1318_v56 = vor.u32 %v1703_v49, %v1317_v48  ;;  %v1326_v57 = vor.u32 %v1704_v51, %v1325_v50 }
  0x12   :  { %824 = vmatpush.bf16.msra.mxu0 %v1738_v12  ;;  %1793 = vmatpush.bf16.msra.mxu3 %v1738_v12  ;;  %v1322_v58 = vor.u32 %v1700_v52, %v1319_v53  ;;  %v1762_v59 = vld [vmem:[%s2533_s1 + $0xd8] sm:$0xff]  ;;  %v1785_v60 = vld [vmem:[%s2533_s1 + $0x190] sm:$0xff]  ;;  %v1345_v63 = vld [vmem:[%s2535_s0 + $0xe0] sm:$0xf] }
  0x13   :  { %1809 = vmatpush.bf16.msra.mxu2 %v1900_v13  ;;  %v1778_v61 = vld [vmem:[%s2533_s1 + $0x158] sm:$0xff]  ;;  %v1761_v62 = vld [vmem:[%s2533_s1 + $0xd0] sm:$0xff]  ;;  %v1235_v3 = vld [vmem:[%s2535_s0 + $0x1c] sm:$0xf0] }
  0x14   :  { %1801 = vmatpush.bf16.msra.mxu1 %v1905_v14  ;;  %v1710_v0 = vld [vmem:[%s2535_s0 + $0xf8] sm:$0xf0]  ;;  %v1711_v6 = vld [vmem:[%s2535_s0 + $0x100] sm:$0xf0]  ;;  %v1347_v9 = vld [vmem:[%s2535_s0 + $0xfc] sm:$0xf0] }
  0x15   :  { %v1718_v24 = vld [vmem:[%s2535_s0 + $0x138] sm:$0xf0]  ;;  %v1375_v26 = vld [vmem:[%s2535_s0 + $0x134] sm:$0xf0]  ;;  %v1759_v31 = vld [vmem:[%s2533_s1 + $0xc0] sm:$0xff] }
  0x16   :  { %825 = vmatpush.bf16.msra.mxu0 %v1737_v15  ;;  %1794 = vmatpush.bf16.msra.mxu3 %v1737_v15  ;;  %v1714_v25 = vld [vmem:[%s2535_s0 + $0x11c] sm:$0xf]  ;;  %v1429_v47 = vld [vmem:[%s2535_s0 + $0x188] sm:$0xf]  ;;  %v1731_v48 = vld [vmem:[%s2535_s0 + $0x1a0] sm:$0xf0] }
  0x17   :  { %1810 = vmatpush.bf16.msra.mxu2 %v1915_v16  ;;  %v1378_v30 = vor.u32 %v1714_v25, %v1375_v26  ;;  %v1770_v46 = vld [vmem:[%s2533_s1 + $0x118] sm:$0xff]  ;;  %v1269_v49 = vld [vmem:[%s2535_s0 + $0x40] sm:$0xf]  ;;  %v1437_v51 = vld [vmem:[%s2535_s0 + $0x190] sm:$0xf] }
  0x18   :  { %1802 = vmatpush.bf16.msra.mxu1 %v1920_v17  ;;  %v1690_v50 = vld [vmem:[%s2535_s0 + $0x58] sm:$0xf0]  ;;  %v1732_v52 = vld [vmem:[%s2535_s0 + $0x1a8] sm:$0xf0] }
  0x19   :  { %v1728_v53 = vld [vmem:[%s2535_s0 + $0x18c] sm:$0xf] }
  0x1a   :  { %826 = vmatpush.bf16.msra.mxu0 %v1736_v18  ;;  %1795 = vmatpush.bf16.msra.mxu3 %v1736_v18  ;;  %v1784_v18 = vld [vmem:[%s2533_s1 + $0x188] sm:$0xff] }
  0x1b   :  { %1811 = vmatpush.bf16.msra.mxu2 %v1930_v19 }
  0x1c   :  { %1803 = vmatpush.bf16.msra.mxu1 %v1935_v20 }
  0x1e   :  { %827 = vmatpush.bf16.msra.mxu0 %v1735_v21  ;;  %1796 = vmatpush.bf16.msra.mxu3 %v1735_v21  ;;  %v1717_v21 = vld [vmem:[%s2535_s0 + $0x130] sm:$0xf0] }
  0x1f   :  { %1812 = vmatpush.bf16.msra.mxu2 %v1943_v22 }
  0x20   :  { %1804 = vmatpush.bf16.msra.mxu1 %v1948_v23 }
  0x21   :  { %828 = vmatmul.bf16.vlgmr.msra.gmra.mxu0 %v1234_v33  ;;  %838 = vmatmul.bf16.vlgmr.msra.gmra.mxu3 %v1290_v34  ;;  %v1775_v33 = vld [vmem:[%s2533_s1 + $0x140] sm:$0xff]  ;;  %v1724_v34 = vld [vmem:[%s2535_s0 + $0x168] sm:$0xf0] }
  0x22   :  { %967 = vmatpush.bf16.msrb.mxu3 %v1766_v32  ;;  %869 = vmatpush.bf16.msrb.mxu0 %v1845_v2  ;;  %v1679_v2 = vld [vmem:[%s2535_s0 + $0x4] sm:$0xf] }
  0x23   :  { %936 = vmatmul.bf16.vlgmr.msra.gmra.mxu2 %v1298_v35  ;;  %887 = vmatmul.bf16.vlgmr.msra.gmra.mxu1 %v1294_v36  ;;  %v1238_v12 = vor.u32 %v1679_v2, %v1235_v3  ;;  %v1783_v32 = vld [vmem:[%s2533_s1 + $0x180] sm:$0xff]  ;;  %v1409_v36 = vld [vmem:[%s2535_s0 + $0x158] sm:$0xf]  ;;  %v1684_v2 = vld [vmem:[%s2535_s0 + $0x28] sm:$0xf0] }
  0x24   :  { %1116 = vmatpush.bf16.msrb.mxu2 %v1788_v37  ;;  %1065 = vmatpush.bf16.msrb.mxu1 %v1782_v38  ;;  %v1683_v35 = vld [vmem:[%s2535_s0 + $0x20] sm:$0xf0]  ;;  %v1725_v37 = vld [vmem:[%s2535_s0 + $0x170] sm:$0xf0]  ;;  %v1257_v3 = vld [vmem:[%s2535_s0 + $0x18] sm:$0xf] }
  0x25   :  { %v1721_v38 = vld [vmem:[%s2535_s0 + $0x154] sm:$0xf] }
  0x26   :  { %870 = vmatpush.bf16.msrb.mxu0 %v1860_v5  ;;  %968 = vmatpush.bf16.msrb.mxu3 %v1765_v39  ;;  %v1353_v5 = vld [vmem:[%s2535_s0 + $0xe8] sm:$0xf]  ;;  %v1403_v39 = vld [vmem:[%s2535_s0 + $0x16c] sm:$0xf0] }
  0x28   :  { %1066 = vmatpush.bf16.msrb.mxu1 %v1781_v40  ;;  %1117 = vmatpush.bf16.msrb.mxu2 %v1787_v41  ;;  %v1773_v40 = vld [vmem:[%s2533_s1 + $0x130] sm:$0xff] }
  0x2a   :  { %871 = vmatpush.bf16.msrb.mxu0 %v1875_v8  ;;  %969 = vmatpush.bf16.msrb.mxu3 %v1764_v42  ;;  %v1707_v8 = vld [vmem:[%s2535_s0 + $0xe4] sm:$0xf] }
  0x2b   :  { %v1350_v15 = vor.u32 %v1707_v8, %v1347_v9  ;;  %v1251_v8 = vld [vmem:[%s2535_s0 + $0x2c] sm:$0xf0] }
  0x2c   :  { %1067 = vmatpush.bf16.msrb.mxu1 %v1780_v43  ;;  %1118 = vmatpush.bf16.msrb.mxu2 %v1786_v44  ;;  %v1406_v43 = vor.u32 %v1721_v38, %v1403_v39  ;;  %v1772_v44 = vld [vmem:[%s2533_s1 + $0x128] sm:$0xff] }
  0x2e   :  { %872 = vmatpush.bf16.msrb.mxu0 %v1890_v11  ;;  %970 = vmatpush.bf16.msrb.mxu3 %v1763_v45  ;;  %v1346_v11 = vor.u32 %v1710_v0, %v1345_v63  ;;  %v1771_v45 = vld [vmem:[%s2533_s1 + $0x120] sm:$0xff]  ;;  %v1243_v63 = vld [vmem:[%s2535_s0 + $0x24] sm:$0xf0]  ;;  %v1249_v0 = vld [vmem:[%s2535_s0 + $0x10] sm:$0xf] }
  0x30   :  { %1068 = vmatpush.bf16.msrb.mxu1 %v1779_v54  ;;  %1119 = vmatpush.bf16.msrb.mxu2 %v1785_v60  ;;  %v1431_v54 = vld [vmem:[%s2535_s0 + $0x1a4] sm:$0xf0] }
  0x31   :  { %833 = vmatmul.bf16.gmra.mxu0 %v1262_v55  ;;  %843 = vmatmul.bf16.gmra.mxu3 %v1318_v56  ;;  %v1769_v55 = vld [vmem:[%s2533_s1 + $0x110] sm:$0xff]  ;;  %v1430_v56 = vor.u32 %v1731_v48, %v1429_v47  ;;  %v1768_v60 = vld [vmem:[%s2533_s1 + $0x108] sm:$0xff]  ;;  %v1341_v48 = vld [vmem:[%s2535_s0 + $0xc0] sm:$0xf] }
  0x32   :  { %873 = vmatpush.bf16.msrb.mxu0 %v1905_v14  ;;  %971 = vmatpush.bf16.msrb.mxu3 %v1762_v59  ;;  %v1354_v14 = vor.u32 %v1711_v6, %v1353_v5  ;;  %v1434_v59 = vor.u32 %v1728_v53, %v1431_v54  ;;  %v1685_v5 = vld [vmem:[%s2535_s0 + $0x30] sm:$0xf0] }
  0x33   :  { %941 = vmatmul.bf16.gmra.mxu2 %v1326_v57  ;;  %892 = vmatmul.bf16.gmra.mxu1 %v1322_v58  ;;  %v1270_v57 = vor.u32 %v1690_v50, %v1269_v49  ;;  %v1438_v58 = vor.u32 %v1732_v52, %v1437_v51  ;;  %v1681_v6 = vld [vmem:[%s2535_s0 + $0x14] sm:$0xf]  ;;  %v1706_v49 = vld [vmem:[%s2535_s0 + $0xd8] sm:$0xf0]  ;;  %v1335_v51 = vld [vmem:[%s2535_s0 + $0xd4] sm:$0xf0] }
  0x34   :  { %1069 = vmatpush.bf16.msrb.mxu1 %v1778_v61  ;;  %1120 = vmatpush.bf16.msrb.mxu2 %v1784_v18  ;;  %v1767_v61 = vld [vmem:[%s2533_s1 + $0x100] sm:$0xff]  ;;  %v1277_v18 = vld [vmem:[%s2535_s0 + $0x48] sm:$0xf]  ;;  %v1705_v47 = vld [vmem:[%s2535_s0 + $0xd0] sm:$0xf0] }
  0x35   :  { %v1702_v50 = vld [vmem:[%s2535_s0 + $0xbc] sm:$0xf] }
  0x36   :  { %874 = vmatpush.bf16.msrb.mxu0 %v1920_v17  ;;  %972 = vmatpush.bf16.msrb.mxu3 %v1761_v62  ;;  %v1777_v17 = vld [vmem:[%s2533_s1 + $0x150] sm:$0xff]  ;;  %v1680_v62 = vld [vmem:[%s2535_s0 + $0xc] sm:$0xf] }
  0x37   :  { %v1246_v9 = vor.u32 %v1680_v62, %v1243_v63 }
  0x38   :  { %1070 = vmatpush.bf16.msrb.mxu1 %v1777_v17  ;;  %1121 = vmatpush.bf16.msrb.mxu2 %v1783_v32  ;;  %v1271_v17 = vld [vmem:[%s2535_s0 + $0x5c] sm:$0xf0]  ;;  %v1695_v32 = vld [vmem:[%s2535_s0 + $0x84] sm:$0xf] }
  0x3a   :  { %875 = vmatpush.bf16.msrb.mxu0 %v1935_v20  ;;  %v1373_v20 = vld [vmem:[%s2535_s0 + $0x118] sm:$0xf] }
  0x3b   :  { %v1374_v27 = vor.u32 %v1717_v21, %v1373_v20  ;;  %v1285_v20 = vld [vmem:[%s2535_s0 + $0x50] sm:$0xf]  ;;  %v1692_v21 = vld [vmem:[%s2535_s0 + $0x68] sm:$0xf0] }
  0x3c   :  { %v1286_v25 = vor.u32 %v1692_v21, %v1285_v20 }
  0x3e   :  { %876 = vmatpush.bf16.msrb.mxu0 %v1948_v23  ;;  %v1263_v23 = vld [vmem:[%s2535_s0 + $0x54] sm:$0xf0] }
  0x41   :  { %848 = vmatmul.bf16.gmra.mxu3 %v1346_v11  ;;  %877 = vmatmul.bf16.vlgmr.msrb.gmra.mxu0 %v1238_v12  ;;  %v1250_v11 = vor.u32 %v1684_v2, %v1249_v0  ;;  %v1258_v12 = vor.u32 %v1685_v5, %v1257_v3 }
  0x42   :  { %918 = vmatpush.bf16.msra.mxu0 %v1840_v1  ;;  %v1760_v1 = vld [vmem:[%s2533_s1 + $0xc8] sm:$0xff] }
  0x43   :  { %946 = vmatmul.bf16.gmra.mxu2 %v1354_v14  ;;  %897 = vmatmul.bf16.gmra.mxu1 %v1350_v15  ;;  %v1254_v14 = vor.u32 %v1681_v6, %v1251_v8  ;;  %v1687_v15 = vld [vmem:[%s2535_s0 + $0x44] sm:$0xf] }
  0x44   :  { %973 = vmatpush.bf16.msrb.mxu3 %v1760_v1  ;;  %v1691_v1 = vld [vmem:[%s2535_s0 + $0x60] sm:$0xf0] }
  0x46   :  { %919 = vmatpush.bf16.msra.mxu0 %v1855_v4  ;;  %v1686_v4 = vld [vmem:[%s2535_s0 + $0x3c] sm:$0xf] }
  0x47   :  { %v1266_v28 = vor.u32 %v1686_v4, %v1263_v23  ;;  %v1688_v4 = vld [vmem:[%s2535_s0 + $0x4c] sm:$0xf]  ;;  %v1279_v23 = vld [vmem:[%s2535_s0 + $0x64] sm:$0xf0] }
  0x48   :  { %974 = vmatpush.bf16.msrb.mxu3 %v1759_v31  ;;  %v1282_v26 = vor.u32 %v1688_v4, %v1279_v23  ;;  %v1699_v31 = vld [vmem:[%s2535_s0 + $0xa0] sm:$0xf0] }
  0x4a   :  { %920 = vmatpush.bf16.msra.mxu0 %v1870_v7  ;;  %v1381_v7 = vld [vmem:[%s2535_s0 + $0x120] sm:$0xf] }
  0x4b   :  { %v1382_v29 = vor.u32 %v1718_v24, %v1381_v7  ;;  %v1274_v7 = vor.u32 %v1687_v15, %v1271_v17  ;;  %v1278_v24 = vor.u32 %v1691_v1, %v1277_v18  ;;  %v1369_v15 = vld [vmem:[%s2535_s0 + $0xf8] sm:$0xf]  ;;  %v1713_v17 = vld [vmem:[%s2535_s0 + $0x110] sm:$0xf0]  ;;  %v1363_v1 = vld [vmem:[%s2535_s0 + $0x10c] sm:$0xf0] }
  0x4c   :  { %v1709_v18 = vld [vmem:[%s2535_s0 + $0xf4] sm:$0xf] }
  0x4e   :  { %921 = vmatpush.bf16.msra.mxu0 %v1885_v10  ;;  %v1776_v10 = vld [vmem:[%s2533_s1 + $0x148] sm:$0xff] }
  0x4f   :  { %1071 = vmatpush.bf16.msrb.mxu1 %v1776_v10  ;;  %v1313_v10 = vld [vmem:[%s2535_s0 + $0x88] sm:$0xf] }
  0x51   :  { %853 = vmatmul.bf16.gmra.mxu3 %v1374_v27  ;;  %882 = vmatmul.bf16.gmra.mxu0 %v1266_v28  ;;  %v1694_v27 = vld [vmem:[%s2535_s0 + $0x7c] sm:$0xf]  ;;  %v1299_v28 = vld [vmem:[%s2535_s0 + $0x94] sm:$0xf0] }
  0x52   :  { %922 = vmatpush.bf16.msra.mxu0 %v1900_v13  ;;  %v1774_v13 = vld [vmem:[%s2533_s1 + $0x138] sm:$0xff] }
  0x53   :  { %951 = vmatmul.bf16.gmra.mxu2 %v1382_v29  ;;  %902 = vmatmul.bf16.gmra.mxu1 %v1378_v30  ;;  %v1305_v29 = vld [vmem:[%s2535_s0 + $0x80] sm:$0xf]  ;;  %v1698_v30 = vld [vmem:[%s2535_s0 + $0x98] sm:$0xf0] }
  0x54   :  { %1072 = vmatpush.bf16.msrb.mxu1 %v1775_v33  ;;  %v1302_v33 = vor.u32 %v1694_v27, %v1299_v28 }
  0x56   :  { %923 = vmatpush.bf16.msra.mxu0 %v1915_v16  ;;  %v1401_v16 = vld [vmem:[%s2535_s0 + $0x150] sm:$0xf] }
  0x57   :  { %v1402_v41 = vor.u32 %v1724_v34, %v1401_v16  ;;  %v1306_v16 = vor.u32 %v1698_v30, %v1305_v29 }
  0x5a   :  { %924 = vmatpush.bf16.msra.mxu0 %v1930_v19  ;;  %v1241_v19 = vld [vmem:[%s2535_s0 + $0x8] sm:$0xf] }
  0x5b   :  { %v1242_v42 = vor.u32 %v1683_v35, %v1241_v19  ;;  %v1314_v19 = vor.u32 %v1699_v31, %v1313_v10 }
  0x5e   :  { %925 = vmatpush.bf16.msra.mxu0 %v1943_v22  ;;  %v1410_v22 = vor.u32 %v1725_v37, %v1409_v36  ;;  %v2283_v37 = vld [vmem:[%s2534_s2] ss:$0 sm:$0xff] }
  0x61   :  { %858 = vmatmul.bf16.gmra.mxu3 %v1402_v41  ;;  %926 = vmatmul.bf16.vlgmr.msra.gmra.mxu0 %v1242_v42 }
  0x62   :  { %1016 = vmatpush.bf16.msrb.mxu0 %v1774_v13  ;;  %v1307_v13 = vld [vmem:[%s2535_s0 + $0x9c] sm:$0xf0] }
  0x63   :  { %956 = vmatmul.bf16.gmra.mxu2 %v1410_v22  ;;  %907 = vmatmul.bf16.gmra.mxu1 %v1406_v43  ;;  %v1310_v35 = vor.u32 %v1695_v32, %v1307_v13 }
  0x66   :  { %1017 = vmatpush.bf16.msrb.mxu0 %v1773_v40 }
  0x6a   :  { %1018 = vmatpush.bf16.msrb.mxu0 %v1772_v44  ;;  %v1701_v44 = vld [vmem:[%s2535_s0 + $0xb4] sm:$0xf] }
  0x6e   :  { %1019 = vmatpush.bf16.msrb.mxu0 %v1771_v45  ;;  %v1327_v45 = vld [vmem:[%s2535_s0 + $0xcc] sm:$0xf0] }
  0x71   :  { %863 = vmatmul.bf16.gmra.mxu3 %v1430_v56  ;;  %931 = vmatmul.bf16.gmra.mxu0 %v1270_v57 }
  0x72   :  { %1020 = vmatpush.bf16.msrb.mxu0 %v1770_v46  ;;  %v1333_v46 = vld [vmem:[%s2535_s0 + $0xb8] sm:$0xf] }
  0x73   :  { %961 = vmatmul.bf16.gmra.mxu2 %v1438_v58  ;;  %912 = vmatmul.bf16.gmra.mxu1 %v1434_v59  ;;  %v1334_v56 = vor.u32 %v1705_v47, %v1333_v46  ;;  %v1342_v58 = vor.u32 %v1706_v49, %v1341_v48  ;;  %v1338_v59 = vor.u32 %v1702_v50, %v1335_v51 }
  0x76   :  { %1021 = vmatpush.bf16.msrb.mxu0 %v1769_v55  ;;  %v1330_v55 = vor.u32 %v1701_v44, %v1327_v45 }
  0x7a   :  { %1022 = vmatpush.bf16.msrb.mxu0 %v1768_v60 }
  0x7e   :  { %1023 = vmatpush.bf16.msrb.mxu0 %v1767_v61 }
  0x81   :  { %975 = vmatmul.bf16.vlgmr.msrb.gmra.mxu3 %v1246_v9  ;;  %1024 = vmatmul.bf16.vlgmr.msrb.gmra.mxu0 %v1250_v11  ;;  %v1708_v9 = vld [vmem:[%s2535_s0 + $0xec] sm:$0xf]  ;;  %v1355_v11 = vld [vmem:[%s2535_s0 + $0x104] sm:$0xf0] }
  0x82   :  { %v1358_v23 = vor.u32 %v1708_v9, %v1355_v11  ;;  %v1425_v9 = vld [vmem:[%s2535_s0 + $0x168] sm:$0xf]  ;;  %v1727_v11 = vld [vmem:[%s2535_s0 + $0x180] sm:$0xf0] }
  0x83   :  { %1671 = vmatmul.msk.bf16.vlgmr.msrb.gmra.mxu2 %vm795_vm0, %v1258_v12  ;;  %1073 = vmatmul.bf16.vlgmr.msrb.gmra.mxu1 %v1254_v14  ;;  %v1361_v12 = vld [vmem:[%s2535_s0 + $0xf0] sm:$0xf]  ;;  %v1712_v14 = vld [vmem:[%s2535_s0 + $0x108] sm:$0xf0] }
  0x91   :  { %980 = vmatmul.bf16.gmra.mxu3 %v1274_v7  ;;  %1029 = vmatmul.bf16.gmra.mxu0 %v1278_v24  ;;  %v1362_v7 = vor.u32 %v1712_v14, %v1361_v12  ;;  %v1723_v12 = vld [vmem:[%s2535_s0 + $0x164] sm:$0xf]  ;;  %v1419_v14 = vld [vmem:[%s2535_s0 + $0x17c] sm:$0xf0] }
  0x93   :  { %1672 = vmatmul.msk.bf16.gmra.mxu2 %vm795_vm0, %v1286_v25  ;;  %1078 = vmatmul.bf16.gmra.mxu1 %v1282_v26  ;;  %v1370_v25 = vor.u32 %v1713_v17, %v1369_v15  ;;  %v1366_v26 = vor.u32 %v1709_v18, %v1363_v1 }
  0x9e   :  { %v2278_v34 = vpop.f32.mrf.mxu0 }
  0xa0   :  { %v888_v36 = vpop.f32.mrf.mxu1 }
  0xa1   :  { %985 = vmatmul.bf16.gmra.mxu3 %v1302_v33  ;;  %1034 = vmatmul.bf16.gmra.mxu0 %v1306_v16 }
  0xa3   :  { %1673 = vmatmul.msk.bf16.gmra.mxu2 %vm795_vm0, %v1314_v19  ;;  %1083 = vmatmul.bf16.gmra.mxu1 %v1310_v35  ;;  %v1715_v19 = vld [vmem:[%s2535_s0 + $0x124] sm:$0xf]  ;;  %v1383_v35 = vld [vmem:[%s2535_s0 + $0x13c] sm:$0xf0] }
  0xa4   :  { %v839_v38 = vpop.f32.mrf.mxu3  ;;  %v1386_v47 = vor.u32 %v1715_v19, %v1383_v35  ;;  %v1729_v19 = vld [vmem:[%s2535_s0 + $0x194] sm:$0xf]  ;;  %v1439_v35 = vld [vmem:[%s2535_s0 + $0x1ac] sm:$0xf0] }
  0xa5   :  { %v840_v39 = vadd.f32 %v2283_v37, %v839_v38  ;;  %v1719_v38 = vld [vmem:[%s2535_s0 + $0x140] sm:$0xf0] }
  0xa6   :  { %v937_v40 = vpop.f32.mrf.mxu2  ;;  %v2287_v41 = vpop.f32.mrf.mxu0 }
  0xa7   :  { %v889_v42 = vadd.f32 %v888_v36, %v840_v39  ;;  %v1389_v36 = vld [vmem:[%s2535_s0 + $0x128] sm:$0xf]  ;;  %v1397_v39 = vld [vmem:[%s2535_s0 + $0x130] sm:$0xf] }
  0xa8   :  { %v890_v22 = vpop.f32.mrf.mxu1  ;;  %v1390_v48 = vor.u32 %v1719_v38, %v1389_v36  ;;  %v1445_v36 = vld [vmem:[%s2535_s0 + $0x198] sm:$0xf]  ;;  %v1733_v38 = vld [vmem:[%s2535_s0 + $0x1b0] sm:$0xf0] }
  0xa9   :  { %v2289_v43 = vadd.f32 %v937_v40, %v889_v42  ;;  %v1720_v40 = vld [vmem:[%s2535_s0 + $0x148] sm:$0xf0] }
  0xaa   :  { %v1716_v42 = vld [vmem:[%s2535_s0 + $0x12c] sm:$0xf]  ;;  %v1398_v50 = vor.u32 %v1720_v40, %v1397_v39  ;;  %v1453_v39 = vld [vmem:[%s2535_s0 + $0x1a0] sm:$0xf]  ;;  %v1734_v40 = vld [vmem:[%s2535_s0 + $0x1b8] sm:$0xf0] }
  0xac   :  { %v841_v52 = vpop.f32.mrf.mxu3 }
  0xad   :  { %v842_v53 = vadd.f32 %v2283_v37, %v841_v52 }
  0xae   :  { %v939_v54 = vpop.f32.mrf.mxu2  ;;  %v2316_v57 = vpop.f32.mrf.mxu0 }
  0xaf   :  { %v891_v60 = vadd.f32 %v890_v22, %v842_v53  ;;  %v1391_v22 = vld [vmem:[%s2535_s0 + $0x144] sm:$0xf0] }
  0xb0   :  { %v893_v61 = vpop.f32.mrf.mxu1  ;;  %v1394_v51 = vor.u32 %v1716_v42, %v1391_v22  ;;  %v1730_v42 = vld [vmem:[%s2535_s0 + $0x19c] sm:$0xf]  ;;  %v1447_v22 = vld [vmem:[%s2535_s0 + $0x1b4] sm:$0xf0] }
  0xb1   :  { %v2318_v62 = vadd.f32 %v939_v54, %v891_v60  ;;  %990 = vmatmul.bf16.gmra.mxu3 %v1330_v55  ;;  %1039 = vmatmul.bf16.gmra.mxu0 %v1334_v56 }
  0xb3   :  { %1674 = vmatmul.msk.bf16.gmra.mxu2 %vm795_vm0, %v1342_v58  ;;  %1088 = vmatmul.bf16.gmra.mxu1 %v1338_v59 }
  0xb4   :  { %v844_v63 = vpop.f32.mrf.mxu3 }
  0xb5   :  { %v845_v0 = vadd.f32 %v2283_v37, %v844_v63 }
  0xb6   :  { %v942_v2 = vpop.f32.mrf.mxu2  ;;  %v2322_v3 = vpop.f32.mrf.mxu0 }
  0xb7   :  { %v894_v5 = vadd.f32 %v893_v61, %v845_v0  ;;  %v1722_v0 = vld [vmem:[%s2535_s0 + $0x15c] sm:$0xf] }
  0xb8   :  { %v895_v6 = vpop.f32.mrf.mxu1 }
  0xb9   :  { %v2324_v8 = vadd.f32 %v942_v2, %v894_v5  ;;  %v1411_v2 = vld [vmem:[%s2535_s0 + $0x174] sm:$0xf0]  ;;  %v1417_v5 = vld [vmem:[%s2535_s0 + $0x160] sm:$0xf] }
  0xba   :  { %v1414_v1 = vor.u32 %v1722_v0, %v1411_v2 }
  0xbc   :  { %v846_v20 = vpop.f32.mrf.mxu3 }
  0xbd   :  { %v847_v21 = vadd.f32 %v2283_v37, %v846_v20 }
  0xbe   :  { %v944_v4 = vpop.f32.mrf.mxu2  ;;  %v2351_v24 = vpop.f32.mrf.mxu0 }
  0xbf   :  { %v896_v27 = vadd.f32 %v895_v6, %v847_v21  ;;  %v1726_v6 = vld [vmem:[%s2535_s0 + $0x178] sm:$0xf0] }
  0xc0   :  { %v898_v28 = vpop.f32.mrf.mxu1  ;;  %v1418_v20 = vor.u32 %v1726_v6, %v1417_v5 }
  0xc1   :  { %v2353_v29 = vadd.f32 %v944_v4, %v896_v27  ;;  %995 = vmatmul.bf16.gmra.mxu3 %v1358_v23  ;;  %1044 = vmatmul.bf16.gmra.mxu0 %v1362_v7  ;;  %v1426_v4 = vor.u32 %v1727_v11, %v1425_v9  ;;  %v1422_v23 = vor.u32 %v1723_v12, %v1419_v14 }
  0xc3   :  { %1675 = vmatmul.msk.bf16.gmra.mxu2 %vm795_vm0, %v1370_v25  ;;  %1093 = vmatmul.bf16.gmra.mxu1 %v1366_v26 }
  0xc4   :  { %v849_v30 = vpop.f32.mrf.mxu3 }
  0xc5   :  { %v850_v10 = vadd.f32 %v2283_v37, %v849_v30 }
  0xc6   :  { %v947_v31 = vpop.f32.mrf.mxu2  ;;  %v2357_v32 = vpop.f32.mrf.mxu0 }
  0xc7   :  { %v899_v13 = vadd.f32 %v898_v28, %v850_v10 }
  0xc8   :  { %v900_v33 = vpop.f32.mrf.mxu1 }
  0xc9   :  { %v2359_v16 = vadd.f32 %v947_v31, %v899_v13 }
  0xcc   :  { %v851_v44 = vpop.f32.mrf.mxu3 }
  0xcd   :  { %v852_v45 = vadd.f32 %v2283_v37, %v851_v44 }
  0xce   :  { %v949_v46 = vpop.f32.mrf.mxu2  ;;  %v2386_v49 = vpop.f32.mrf.mxu0 }
  0xcf   :  { %v901_v52 = vadd.f32 %v900_v33, %v852_v45 }
  0xd0   :  { %v903_v53 = vpop.f32.mrf.mxu1 }
  0xd1   :  { %v2388_v54 = vadd.f32 %v949_v46, %v901_v52  ;;  %1000 = vmatmul.bf16.gmra.mxu3 %v1386_v47  ;;  %1049 = vmatmul.bf16.gmra.mxu0 %v1390_v48  ;;  %v1442_v47 = vor.u32 %v1729_v19, %v1439_v35  ;;  %v1446_v48 = vor.u32 %v1733_v38, %v1445_v36 }
  0xd2   :  { %v1450_v52 = vor.u32 %v1730_v42, %v1447_v22 }
  0xd3   :  { %1676 = vmatmul.msk.bf16.gmra.mxu2 %vm795_vm0, %v1398_v50  ;;  %1098 = vmatmul.bf16.gmra.mxu1 %v1394_v51  ;;  %v1454_v51 = vor.u32 %v1734_v40, %v1453_v39  ;;  %v835_v40 = vadd.f32 %v2283_v37, %v2316_v57  ;;  %v837_v57 = vadd.f32 %v2283_v37, %v2322_v3 }
  0xd4   :  { %v854_v55 = vpop.f32.mrf.mxu3 }
  0xd5   :  { %v855_v56 = vadd.f32 %v2283_v37, %v854_v55 }
  0xd6   :  { %v952_v58 = vpop.f32.mrf.mxu2  ;;  %v2392_v59 = vpop.f32.mrf.mxu0 }
  0xd7   :  { %v904_v60 = vadd.f32 %v903_v53, %v855_v56 }
  0xd8   :  { %v905_v61 = vpop.f32.mrf.mxu1 }
  0xd9   :  { %v2394_v63 = vadd.f32 %v952_v58, %v904_v60 }
  0xdc   :  { %v856_v15 = vpop.f32.mrf.mxu3 }
  0xdd   :  { %v857_v17 = vadd.f32 %v2283_v37, %v856_v15  ;;  %v830_v15 = vadd.f32 %v2283_v37, %v2278_v34 }
  0xde   :  { %v954_v18 = vpop.f32.mrf.mxu2  ;;  %v927_v21 = vpop.f32.mrf.mxu0 }
  0xdf   :  { %v906_v7 = vadd.f32 %v905_v61, %v857_v17 }
  0xe0   :  { %v908_v25 = vpop.f32.mrf.mxu1 }
  0xe1   :  { %v2421_v26 = vadd.f32 %v954_v18, %v906_v7  ;;  %1005 = vmatmul.bf16.gmra.mxu3 %v1414_v1  ;;  %1054 = vmatmul.bf16.gmra.mxu0 %v1418_v20  ;;  %v879_v1 = vadd.f32 %v2351_v24, %v830_v15 }
  0xe3   :  { %1677 = vmatmul.msk.bf16.gmra.mxu2 %vm795_vm0, %v1426_v4  ;;  %1103 = vmatmul.bf16.gmra.mxu1 %v1422_v23  ;;  %v928_v4 = vadd.f32 %v927_v21, %v879_v1 }
  0xe4   :  { %v859_v27 = vpop.f32.mrf.mxu3 }
  0xe5   :  { %v860_v28 = vadd.f32 %v2283_v37, %v859_v27 }
  0xe6   :  { %v957_v30 = vpop.f32.mrf.mxu2  ;;  %v929_v10 = vpop.f32.mrf.mxu0 }
  0xe7   :  { %v909_v31 = vadd.f32 %v908_v25, %v860_v28  ;;  %v832_v28 = vadd.f32 %v2283_v37, %v2287_v41  ;;  %v884_v41 = vadd.f32 %v2386_v49, %v835_v40  ;;  %v886_v49 = vadd.f32 %v2392_v59, %v837_v57 }
  0xe8   :  { %v910_v13 = vpop.f32.mrf.mxu1 }
  0xe9   :  { %v2425_v33 = vadd.f32 %v957_v30, %v909_v31 }
  0xec   :  { %v861_v44 = vpop.f32.mrf.mxu3 }
  0xed   :  { %v862_v45 = vadd.f32 %v2283_v37, %v861_v44 }
  0xee   :  { %v959_v46 = vpop.f32.mrf.mxu2  ;;  %v932_v50 = vpop.f32.mrf.mxu0 }
  0xef   :  { %v911_v53 = vadd.f32 %v910_v13, %v862_v45  ;;  %v881_v13 = vadd.f32 %v2357_v32, %v832_v28 }
  0xf0   :  { %v913_v55 = vpop.f32.mrf.mxu1 }
  0xf1   :  { %v2452_v56 = vadd.f32 %v959_v46, %v911_v53  ;;  %1010 = vmatmul.bf16.gmra.mxu3 %v1442_v47  ;;  %1059 = vmatmul.bf16.gmra.mxu0 %v1446_v48  ;;  %v930_v34 = vadd.f32 %v929_v10, %v881_v13  ;;  %v933_v10 = vadd.f32 %v932_v50, %v884_v41 }
  0xf3   :  { %1678 = vmatmul.msk.bf16.gmra.mxu2 %vm795_vm0, %v1454_v51  ;;  %1108 = vmatmul.bf16.gmra.mxu1 %v1450_v52 }
  0xf4   :  { %v864_v58 = vpop.f32.mrf.mxu3 }
  0xf5   :  { %v865_v60 = vadd.f32 %v2283_v37, %v864_v58 }
  0xf6   :  { %v962_v61 = vpop.f32.mrf.mxu2  ;;  %v934_v0 = vpop.f32.mrf.mxu0 }
  0xf7   :  { %v914_v2 = vadd.f32 %v913_v55, %v865_v60  ;;  %v935_v60 = vadd.f32 %v934_v0, %v886_v49 }
  0xf8   :  { %v915_v5 = vpop.f32.mrf.mxu1 }
  0xf9   :  { %v2456_v6 = vadd.f32 %v962_v61, %v914_v2 }
  0xfc   :  { %v866_v9 = vpop.f32.mrf.mxu3 }
  0xfd   :  { %v867_v11 = vadd.f32 %v2283_v37, %v866_v9 }
  0xfe   :  { %v964_v12 = vpop.f32.mrf.mxu2  ;;  %v1025_v14 = vpop.f32.mrf.mxu0 }
  0xff   :  { %v916_v17 = vadd.f32 %v915_v5, %v867_v11 }
 0x100   :  { %v1074_v18 = vpop.f32.mrf.mxu1 }
 0x101   :  { %v2462_v20 = vadd.f32 %v964_v12, %v916_v17 }
 0x104   :  { %v976_v23 = vpop.f32.mrf.mxu3 }
 0x105   :  { %v977_v7 = vadd.f32 %v976_v23, %v928_v4 }
 0x106   :  { %v1123_v25 = vpop.f32.mrf.mxu2  ;;  %v1027_v27 = vpop.f32.mrf.mxu0 }
 0x107   :  { %v1026_v30 = vadd.f32 %v1025_v14, %v977_v7 }
 0x108   :  { %v1076_v31 = vpop.f32.mrf.mxu1 }
 0x109   :  { %v1075_v19 = vadd.f32 %v1074_v18, %v1026_v30 }
 0x10b   :  { %v1124_v35 = vadd.f32 %v1123_v25, %v1075_v19 }
 0x10c   :  { %v978_v36 = vpop.f32.mrf.mxu3 }
 0x10d   :  { %vm1163_vm1 = vcmp.ge.f32.partialorder %v1124_v35, 0.0  ;;  %v1179_v24 = vmul.f32 0.2, %v1124_v35  ;;  %v979_v38 = vadd.f32 %v978_v36, %v930_v34 }
 0x10e   :  { %v1125_v39 = vpop.f32.mrf.mxu2  ;;  %v1030_v21 = vpop.f32.mrf.mxu0 }
 0x10f   :  { %v1195_v42 = vsel %vm1163_vm1, %v1124_v35, %v1179_v24  ;;  %v1028_v22 = vadd.f32 %v1027_v27, %v979_v38 }
 0x110   :  { %v1079_v44 = vpop.f32.mrf.mxu1  ;;  %1211 = vst [vmem:[%s2536_s3] sm:$0xff] %v1195_v42 }
 0x111   :  { %v1077_v32 = vadd.f32 %v1076_v31, %v1028_v22 }
 0x113   :  { %v1126_v45 = vadd.f32 %v1125_v39, %v1077_v32 }
 0x114   :  { %v981_v46 = vpop.f32.mrf.mxu3 }
 0x115   :  { %vm1164_vm2 = vcmp.ge.f32.partialorder %v1126_v45, 0.0  ;;  %v1180_v47 = vmul.f32 0.2, %v1126_v45  ;;  %v982_v48 = vadd.f32 %v981_v46, %v933_v10 }
 0x116   :  { %v1128_v51 = vpop.f32.mrf.mxu2  ;;  %v1032_v52 = vpop.f32.mrf.mxu0 }
 0x117   :  { %v1196_v53 = vsel %vm1164_vm2, %v1126_v45, %v1180_v47  ;;  %v1031_v55 = vadd.f32 %v1030_v21, %v982_v48 }
 0x118   :  { %v1081_v58 = vpop.f32.mrf.mxu1  ;;  %1212 = vst [vmem:[%s2536_s3 + $0x8] sm:$0xff] %v1196_v53 }
 0x119   :  { %v1080_v50 = vadd.f32 %v1079_v44, %v1031_v55 }
 0x11b   :  { %v1129_v61 = vadd.f32 %v1128_v51, %v1080_v50 }
 0x11c   :  { %v983_v2 = vpop.f32.mrf.mxu3 }
 0x11d   :  { %vm1165_vm3 = vcmp.ge.f32.partialorder %v1129_v61, 0.0  ;;  %v1181_v5 = vmul.f32 0.2, %v1129_v61  ;;  %v984_v9 = vadd.f32 %v983_v2, %v935_v60 }
 0x11e   :  { %v1130_v11 = vpop.f32.mrf.mxu2  ;;  %v1035_v12 = vpop.f32.mrf.mxu0 }
 0x11f   :  { %v1197_v14 = vsel %vm1165_vm3, %v1129_v61, %v1181_v5  ;;  %v1033_v37 = vadd.f32 %v1032_v52, %v984_v9 }
 0x120   :  { %v1084_v3 = vpop.f32.mrf.mxu1  ;;  %1213 = vst [vmem:[%s2536_s3 + $0x10] sm:$0xff] %v1197_v14 }
 0x121   :  { %v1082_v15 = vadd.f32 %v1081_v58, %v1033_v37 }
 0x123   :  { %v1131_v17 = vadd.f32 %v1130_v11, %v1082_v15 }
 0x124   :  { %v986_v18 = vpop.f32.mrf.mxu3 }
 0x125   :  { %vm1166_vm4 = vcmp.ge.f32.partialorder %v1131_v17, 0.0  ;;  %v1182_v59 = vmul.f32 0.2, %v1131_v17  ;;  %v987_v0 = vadd.f32 %v986_v18, %v2289_v43 }
 0x126   :  { %v1133_v1 = vpop.f32.mrf.mxu2  ;;  %v1037_v4 = vpop.f32.mrf.mxu0 }
 0x127   :  { %v1198_v23 = vsel %vm1166_vm4, %v1131_v17, %v1182_v59  ;;  %v1036_v7 = vadd.f32 %v1035_v12, %v987_v0 }
 0x128   :  { %v1086_v25 = vpop.f32.mrf.mxu1  ;;  %1214 = vst [vmem:[%s2536_s3 + $0x18] sm:$0xff] %v1198_v23 }
 0x129   :  { %v1085_v27 = vadd.f32 %v1084_v3, %v1036_v7 }
 0x12b   :  { %v1134_v28 = vadd.f32 %v1133_v1, %v1085_v27 }
 0x12c   :  { %v988_v30 = vpop.f32.mrf.mxu3 }
 0x12d   :  { %vm1167_vm5 = vcmp.ge.f32.partialorder %v1134_v28, 0.0  ;;  %v1183_v31 = vmul.f32 0.2, %v1134_v28  ;;  %v989_v13 = vadd.f32 %v988_v30, %v2318_v62 }
 0x12e   :  { %v1135_v19 = vpop.f32.mrf.mxu2  ;;  %v1040_v34 = vpop.f32.mrf.mxu0 }
 0x12f   :  { %v1199_v35 = vsel %vm1167_vm5, %v1134_v28, %v1183_v31  ;;  %v1038_v43 = vadd.f32 %v1037_v4, %v989_v13 }
 0x130   :  { %v1089_v36 = vpop.f32.mrf.mxu1  ;;  %1215 = vst [vmem:[%s2536_s3 + $0x20] sm:$0xff] %v1199_v35 }
 0x131   :  { %v1087_v24 = vadd.f32 %v1086_v25, %v1038_v43 }
 0x133   :  { %v1136_v38 = vadd.f32 %v1135_v19, %v1087_v24 }
 0x134   :  { %v991_v39 = vpop.f32.mrf.mxu3 }
 0x135   :  { %vm1168_vm6 = vcmp.ge.f32.partialorder %v1136_v38, 0.0  ;;  %v1184_v21 = vmul.f32 0.2, %v1136_v38  ;;  %v992_v40 = vadd.f32 %v991_v39, %v2324_v8 }
 0x136   :  { %v1138_v42 = vpop.f32.mrf.mxu2  ;;  %v1042_v22 = vpop.f32.mrf.mxu0 }
 0x137   :  { %v1200_v44 = vsel %vm1168_vm6, %v1136_v38, %v1184_v21  ;;  %v1041_v62 = vadd.f32 %v1040_v34, %v992_v40 }
 0x138   :  { %v1091_v41 = vpop.f32.mrf.mxu1  ;;  %1216 = vst [vmem:[%s2536_s3 + $0x28] sm:$0xff] %v1200_v44 }
 0x139   :  { %v1090_v32 = vadd.f32 %v1089_v36, %v1041_v62 }
 0x13b   :  { %v1139_v10 = vadd.f32 %v1138_v42, %v1090_v32 }
 0x13c   :  { %v993_v45 = vpop.f32.mrf.mxu3 }
 0x13d   :  { %vm1169_vm7 = vcmp.ge.f32.partialorder %v1139_v10, 0.0  ;;  %v1185_v46 = vmul.f32 0.2, %v1139_v10  ;;  %v994_v47 = vadd.f32 %v993_v45, %v2353_v29 }
 0x13e   :  { %v1140_v48 = vpop.f32.mrf.mxu2  ;;  %v1045_v51 = vpop.f32.mrf.mxu0 }
 0x13f   :  { %v1201_v52 = vsel %vm1169_vm7, %v1139_v10, %v1185_v46  ;;  %v1043_v8 = vadd.f32 %v1042_v22, %v994_v47 }
 0x140   :  { %v1094_v57 = vpop.f32.mrf.mxu1  ;;  %1217 = vst [vmem:[%s2536_s3 + $0x30] sm:$0xff] %v1201_v52 }
 0x141   :  { %v1092_v53 = vadd.f32 %v1091_v41, %v1043_v8 }
 0x143   :  { %v1141_v55 = vadd.f32 %v1140_v48, %v1092_v53 }
 0x144   :  { %v996_v58 = vpop.f32.mrf.mxu3 }
 0x145   :  { %vm1170_vm8 = vcmp.ge.f32.partialorder %v1141_v55, 0.0  ;;  %v1186_v49 = vmul.f32 0.2, %v1141_v55  ;;  %v997_v50 = vadd.f32 %v996_v58, %v2359_v16 }
 0x146   :  { %v1143_v60 = vpop.f32.mrf.mxu2  ;;  %v1047_v61 = vpop.f32.mrf.mxu0 }
 0x147   :  { %v1202_v2 = vsel %vm1170_vm8, %v1141_v55, %v1186_v49  ;;  %v1046_v29 = vadd.f32 %v1045_v51, %v997_v50 }
 0x148   :  { %v1096_v5 = vpop.f32.mrf.mxu1  ;;  %1218 = vst [vmem:[%s2536_s3 + $0x38] sm:$0xff] %v1202_v2 }
 0x149   :  { %v1095_v9 = vadd.f32 %v1094_v57, %v1046_v29 }
 0x14b   :  { %v1144_v11 = vadd.f32 %v1143_v60, %v1095_v9 }
 0x14c   :  { %v998_v12 = vpop.f32.mrf.mxu3 }
 0x14d   :  { %vm1171_vm9 = vcmp.ge.f32.partialorder %v1144_v11, 0.0  ;;  %v1187_v14 = vmul.f32 0.2, %v1144_v11  ;;  %v999_v37 = vadd.f32 %v998_v12, %v2388_v54 }
 0x14e   :  { %v1145_v3 = vpop.f32.mrf.mxu2  ;;  %v1050_v15 = vpop.f32.mrf.mxu0 }
 0x14f   :  { %v1203_v17 = vsel %vm1171_vm9, %v1144_v11, %v1187_v14  ;;  %v1048_v16 = vadd.f32 %v1047_v61, %v999_v37 }
 0x150   :  { %v1099_v18 = vpop.f32.mrf.mxu1  ;;  %1219 = vst [vmem:[%s2536_s3 + $0x40] sm:$0xff] %v1203_v17 }
 0x151   :  { %v1097_v59 = vadd.f32 %v1096_v5, %v1048_v16 }
 0x153   :  { %v1146_v0 = vadd.f32 %v1145_v3, %v1097_v59 }
 0x154   :  { %v1001_v1 = vpop.f32.mrf.mxu3 }
 0x155   :  { %vm1172_vm10 = vcmp.ge.f32.partialorder %v1146_v0, 0.0  ;;  %v1188_v4 = vmul.f32 0.2, %v1146_v0  ;;  %v1002_v23 = vadd.f32 %v1001_v1, %v2394_v63 }
 0x156   :  { %v1148_v7 = vpop.f32.mrf.mxu2  ;;  %v1052_v25 = vpop.f32.mrf.mxu0 }
 0x157   :  { %v1204_v27 = vsel %vm1172_vm10, %v1146_v0, %v1188_v4  ;;  %v1051_v54 = vadd.f32 %v1050_v15, %v1002_v23 }
 0x158   :  { %1220 = vst [vmem:[%s2536_s3 + $0x48] sm:$0xff] %v1204_v27  ;;  %v1101_v28 = vpop.f32.mrf.mxu1 }
 0x159   :  { %v1100_v30 = vadd.f32 %v1099_v18, %v1051_v54 }
 0x15b   :  { %v1149_v31 = vadd.f32 %v1148_v7, %v1100_v30 }
 0x15c   :  { %v1003_v13 = vpop.f32.mrf.mxu3 }
 0x15d   :  { %vm1173_vm11 = vcmp.ge.f32.partialorder %v1149_v31, 0.0  ;;  %v1189_v19 = vmul.f32 0.2, %v1149_v31  ;;  %v1004_v34 = vadd.f32 %v1003_v13, %v2421_v26 }
 0x15e   :  { %v1150_v35 = vpop.f32.mrf.mxu2  ;;  %v1055_v63 = vpop.f32.mrf.mxu0 }
 0x15f   :  { %v1205_v43 = vsel %vm1173_vm11, %v1149_v31, %v1189_v19  ;;  %v1053_v36 = vadd.f32 %v1052_v25, %v1004_v34 }
 0x160   :  { %1221 = vst [vmem:[%s2536_s3 + $0x50] sm:$0xff] %v1205_v43  ;;  %v1104_v38 = vpop.f32.mrf.mxu1 }
 0x161   :  { %v1102_v24 = vadd.f32 %v1101_v28, %v1053_v36 }
 0x163   :  { %v1151_v39 = vadd.f32 %v1150_v35, %v1102_v24 }
 0x164   :  { %v1006_v21 = vpop.f32.mrf.mxu3 }
 0x165   :  { %vm1174_vm12 = vcmp.ge.f32.partialorder %v1151_v39, 0.0  ;;  %v1190_v40 = vmul.f32 0.2, %v1151_v39  ;;  %v1007_v42 = vadd.f32 %v1006_v21, %v2425_v33 }
 0x166   :  { %v1153_v22 = vpop.f32.mrf.mxu2  ;;  %v1057_v41 = vpop.f32.mrf.mxu0 }
 0x167   :  { %v1206_v44 = vsel %vm1174_vm12, %v1151_v39, %v1190_v40  ;;  %v1056_v62 = vadd.f32 %v1055_v63, %v1007_v42 }
 0x168   :  { %1222 = vst [vmem:[%s2536_s3 + $0x58] sm:$0xff] %v1206_v44  ;;  %v1106_v10 = vpop.f32.mrf.mxu1 }
 0x169   :  { %v1105_v26 = vadd.f32 %v1104_v38, %v1056_v62 }
 0x16b   :  { %v1154_v32 = vadd.f32 %v1153_v22, %v1105_v26 }
 0x16c   :  { %v1008_v45 = vpop.f32.mrf.mxu3 }
 0x16d   :  { %vm1175_vm13 = vcmp.ge.f32.partialorder %v1154_v32, 0.0  ;;  %v1191_v46 = vmul.f32 0.2, %v1154_v32  ;;  %v1009_v47 = vadd.f32 %v1008_v45, %v2452_v56 }
 0x16e   :  { %v1155_v48 = vpop.f32.mrf.mxu2  ;;  %v1060_v57 = vpop.f32.mrf.mxu0 }
 0x16f   :  { %v1207_v51 = vsel %vm1175_vm13, %v1154_v32, %v1191_v46  ;;  %v1058_v52 = vadd.f32 %v1057_v41, %v1009_v47 }
 0x170   :  { %1223 = vst [vmem:[%s2536_s3 + $0x60] sm:$0xff] %v1207_v51  ;;  %v1109_v49 = vpop.f32.mrf.mxu1 }
 0x171   :  { %v1107_v33 = vadd.f32 %v1106_v10, %v1058_v52 }
 0x173   :  { %v1156_v8 = vadd.f32 %v1155_v48, %v1107_v33 }
 0x174   :  { %v1011_v53 = vpop.f32.mrf.mxu3 }
 0x175   :  { %vm1176_vm14 = vcmp.ge.f32.partialorder %v1156_v8, 0.0  ;;  %v1192_v55 = vmul.f32 0.2, %v1156_v8  ;;  %v1012_v58 = vadd.f32 %v1011_v53, %v2456_v6 }
 0x176   :  { %v1158_v56 = vpop.f32.mrf.mxu2  ;;  %v1062_v11 = vpop.f32.mrf.mxu0 }
 0x177   :  { %v1208_v50 = vsel %vm1176_vm14, %v1156_v8, %v1192_v55  ;;  %v1061_v60 = vadd.f32 %v1060_v57, %v1012_v58 }
 0x178   :  { %1224 = vst [vmem:[%s2536_s3 + $0x68] sm:$0xff] %v1208_v50  ;;  %v1111_v6 = vpop.f32.mrf.mxu1 }
 0x179   :  { %v1110_v61 = vadd.f32 %v1109_v49, %v1061_v60 }
 0x17b   :  { %v1159_v2 = vadd.f32 %v1158_v56, %v1110_v61 }
 0x17c   :  { %v1013_v29 = vpop.f32.mrf.mxu3 }
 0x17d   :  { %vm1177_vm15 = vcmp.ge.f32.partialorder %v1159_v2, 0.0  ;;  %v1193_v5 = vmul.f32 0.2, %v1159_v2  ;;  %v1014_v9 = vadd.f32 %v1013_v29, %v2462_v20 }
 0x17e   :  { %v1160_v3 = vpop.f32.mrf.mxu2 }
 0x17f   :  { %v1209_v12 = vsel %vm1177_vm15, %v1159_v2, %v1193_v5  ;;  %v1063_v14 = vadd.f32 %v1062_v11, %v1014_v9 }
 0x180   :  { %1225 = vst [vmem:[%s2536_s3 + $0x70] sm:$0xff] %v1209_v12 }
 0x181   :  { %v1112_v37 = vadd.f32 %v1111_v6, %v1063_v14 }
 0x183   :  { %v1161_v15 = vadd.f32 %v1160_v3, %v1112_v37 }
 0x185   :  { %vm1178_vm0 = vcmp.ge.f32.partialorder %v1161_v15, 0.0  ;;  %v1194_v17 = vmul.f32 0.2, %v1161_v15 }
 0x187   :  { %v1210_v16 = vsel %vm1178_vm0, %v1161_v15, %v1194_v17 }
 0x188   :  { %1226 = vst [vmem:[%s2536_s3 + $0x78] sm:$0xff] %v1210_v16 }

// kernel: _lambda_.6
= control target key start
LH: loop header
LB: loop body
LE: loop exit
PB: predicated region body
PF: predicated region fallthrough
CT: control target
= control target key end

     0   :  { %vm419_vm0 = vcmask 392192   ;;  %s1382_s1 = inlined_call_operand.vmem [shape: bf16[432,128], index: 1, kind: input, shape index: {}]   ;;  %s1383_s0 = inlined_call_operand.vmem [shape: bf16[128,432], index: 0, kind: input, shape index: {}]   ;;  %s1384_s2 = inlined_call_operand.vmem [shape: f32[1,128], index: 2, kind: input, shape index: {}]   ;;  %s1385_s3 = inlined_call_operand.vmem [shape: f32[128,128], index: 3, kind: output, shape index: {}]  }
   0x1   :  { %v991_v0 = vld [vmem:[%s1382_s1 + $0x38] sm:$0xff]  ;;  %v990_v3 = vld [vmem:[%s1382_s1 + $0x30] sm:$0xff]  ;;  %v989_v7 = vld [vmem:[%s1382_s1 + $0x28] sm:$0xff] }
   0x2   :  { %v999_v1 = vld [vmem:[%s1382_s1 + $0x78] sm:$0xff]  ;;  %444 = vmatpush.bf16.msra.mxu0 %v991_v0  ;;  %v998_v4 = vld [vmem:[%s1382_s1 + $0x70] sm:$0xff]  ;;  %v997_v8 = vld [vmem:[%s1382_s1 + $0x68] sm:$0xff] }
   0x3   :  { %v1007_v2 = vld [vmem:[%s1382_s1 + $0xb8] sm:$0xff]  ;;  %493 = vmatpush.bf16.msra.mxu1 %v999_v1  ;;  %v1006_v5 = vld [vmem:[%s1382_s1 + $0xb0] sm:$0xff]  ;;  %v1005_v9 = vld [vmem:[%s1382_s1 + $0xa8] sm:$0xff] }
   0x4   :  { %542 = vmatpush.bf16.msra.mxu2 %v1007_v2  ;;  %v1010_v6 = vld [vmem:[%s1382_s1 + $0xd0] sm:$0xff]  ;;  %v1009_v10 = vld [vmem:[%s1382_s1 + $0xc8] sm:$0xff]  ;;  %v988_v11 = vld [vmem:[%s1382_s1 + $0x20] sm:$0xff] }
   0x5   :  { %596 = vmatpush.bf16.msra.mxu3 %v1010_v6  ;;  %v996_v12 = vld [vmem:[%s1382_s1 + $0x60] sm:$0xff]  ;;  %v953_v15 = vld [vmem:[%s1383_s0 + $0xc] sm:$0xf]  ;;  %v720_v16 = vld [vmem:[%s1383_s0 + $0x18] sm:$0xf0] }
   0x6   :  { %445 = vmatpush.bf16.msra.mxu0 %v990_v3  ;;  %v1004_v13 = vld [vmem:[%s1382_s1 + $0xa0] sm:$0xff]  ;;  %v987_v17 = vld [vmem:[%s1382_s1 + $0x18] sm:$0xff]  ;;  %v723_v20 = vor.u32 %v953_v15, %v720_v16  ;;  %v986_v21 = vld [vmem:[%s1382_s1 + $0x10] sm:$0xff] }
   0x7   :  { %494 = vmatpush.bf16.msra.mxu1 %v998_v4  ;;  %v1008_v14 = vld [vmem:[%s1382_s1 + $0xc0] sm:$0xff]  ;;  %v995_v18 = vld [vmem:[%s1382_s1 + $0x58] sm:$0xff]  ;;  %v994_v22 = vld [vmem:[%s1382_s1 + $0x50] sm:$0xff] }
   0x8   :  { %543 = vmatpush.bf16.msra.mxu2 %v1006_v5  ;;  %v1003_v19 = vld [vmem:[%s1382_s1 + $0x98] sm:$0xff]  ;;  %v1002_v23 = vld [vmem:[%s1382_s1 + $0x90] sm:$0xff]  ;;  %v985_v24 = vld [vmem:[%s1382_s1 + $0x8] sm:$0xff] }
   0x9   :  { %597 = vmatpush.bf16.msra.mxu3 %v1009_v10  ;;  %v993_v25 = vld [vmem:[%s1382_s1 + $0x48] sm:$0xff]  ;;  %v984_v27 = vld [vmem:[%s1382_s1] sm:$0xff]  ;;  %v954_v30 = vld [vmem:[%s1383_s0 + $0xc] sm:$0xf0] }
   0xa   :  { %446 = vmatpush.bf16.msra.mxu0 %v989_v7  ;;  %v1001_v26 = vld [vmem:[%s1382_s1 + $0x88] sm:$0xff]  ;;  %v992_v28 = vld [vmem:[%s1382_s1 + $0x40] sm:$0xff]  ;;  %v712_v32 = vld [vmem:[%s1383_s0 + $0x10] sm:$0xf0] }
   0xb   :  { %495 = vmatpush.bf16.msra.mxu1 %v997_v8  ;;  %v710_v29 = vld [vmem:[%s1383_s0] sm:$0xf]  ;;  %v952_v31 = vld [vmem:[%s1383_s0 + $0x4] sm:$0xf]  ;;  %v718_v34 = vld [vmem:[%s1383_s0 + $0x8] sm:$0xf] }
   0xc   :  { %544 = vmatpush.bf16.msra.mxu2 %v1005_v9  ;;  %v1000_v33 = vld [vmem:[%s1382_s1 + $0x80] sm:$0xff]  ;;  %v955_v35 = vld [vmem:[%s1383_s0 + $0x14] sm:$0xf0]  ;;  %v957_v36 = vld [vmem:[%s1383_s0 + $0x2c] sm:$0xf]  ;;  %v711_v38 = vor.u32 %v954_v30, %v710_v29  ;;  %v715_v39 = vor.u32 %v952_v31, %v712_v32 }
   0xd   :  { %598 = vmatpush.bf16.msra.mxu3 %v1008_v14  ;;  %v736_v37 = vld [vmem:[%s1383_s0 + $0x38] sm:$0xf0]  ;;  %v719_v40 = vor.u32 %v955_v35, %v718_v34  ;;  %v726_v42 = vld [vmem:[%s1383_s0 + $0x20] sm:$0xf]  ;;  %v958_v43 = vld [vmem:[%s1383_s0 + $0x2c] sm:$0xf0] }
   0xe   :  { %447 = vmatpush.bf16.msra.mxu0 %v988_v11  ;;  %v739_v41 = vor.u32 %v957_v36, %v736_v37  ;;  %v956_v44 = vld [vmem:[%s1383_s0 + $0x24] sm:$0xf]  ;;  %v728_v45 = vld [vmem:[%s1383_s0 + $0x30] sm:$0xf0]  ;;  %v734_v46 = vld [vmem:[%s1383_s0 + $0x28] sm:$0xf]  ;;  %v727_v50 = vor.u32 %v958_v43, %v726_v42 }
   0xf   :  { %496 = vmatpush.bf16.msra.mxu1 %v996_v12  ;;  %v959_v47 = vld [vmem:[%s1383_s0 + $0x34] sm:$0xf0]  ;;  %v961_v48 = vld [vmem:[%s1383_s0 + $0x4c] sm:$0xf]  ;;  %v752_v49 = vld [vmem:[%s1383_s0 + $0x58] sm:$0xf0]  ;;  %v731_v51 = vor.u32 %v956_v44, %v728_v45 }
  0x10   :  { %545 = vmatpush.bf16.msra.mxu2 %v1004_v13  ;;  %944 = vmatmul.msk.bf16.vlgmr.msra.gmra.mxu3 %vm419_vm0, %v723_v20  ;;  %v735_v52 = vor.u32 %v959_v47, %v734_v46  ;;  %v755_v53 = vor.u32 %v961_v48, %v752_v49  ;;  %v742_v54 = vld [vmem:[%s1383_s0 + $0x40] sm:$0xf]  ;;  %v962_v55 = vld [vmem:[%s1383_s0 + $0x4c] sm:$0xf0]  ;;  %v960_v56 = vld [vmem:[%s1383_s0 + $0x44] sm:$0xf] }
  0x11   :  { %v744_v57 = vld [vmem:[%s1383_s0 + $0x50] sm:$0xf0]  ;;  %v750_v58 = vld [vmem:[%s1383_s0 + $0x48] sm:$0xf]  ;;  %v963_v59 = vld [vmem:[%s1383_s0 + $0x54] sm:$0xf0]  ;;  %v743_v62 = vor.u32 %v962_v55, %v742_v54 }
  0x12   :  { %448 = vmatpush.bf16.msra.mxu0 %v987_v17  ;;  %v965_v60 = vld [vmem:[%s1383_s0 + $0x6c] sm:$0xf]  ;;  %v768_v61 = vld [vmem:[%s1383_s0 + $0x78] sm:$0xf0]  ;;  %v747_v63 = vor.u32 %v960_v56, %v744_v57  ;;  %v751_v0 = vor.u32 %v963_v59, %v750_v58  ;;  %v758_v2 = vld [vmem:[%s1383_s0 + $0x60] sm:$0xf] }
  0x13   :  { %497 = vmatpush.bf16.msra.mxu1 %v995_v18  ;;  %v771_v1 = vor.u32 %v965_v60, %v768_v61  ;;  %v966_v3 = vld [vmem:[%s1383_s0 + $0x6c] sm:$0xf0]  ;;  %v964_v4 = vld [vmem:[%s1383_s0 + $0x64] sm:$0xf]  ;;  %v760_v5 = vld [vmem:[%s1383_s0 + $0x70] sm:$0xf0] }
  0x14   :  { %546 = vmatpush.bf16.msra.mxu2 %v1003_v19  ;;  %v766_v6 = vld [vmem:[%s1383_s0 + $0x68] sm:$0xf]  ;;  %v967_v7 = vld [vmem:[%s1383_s0 + $0x74] sm:$0xf0]  ;;  %v969_v8 = vld [vmem:[%s1383_s0 + $0x8c] sm:$0xf]  ;;  %v759_v10 = vor.u32 %v966_v3, %v758_v2  ;;  %v763_v11 = vor.u32 %v964_v4, %v760_v5 }
  0x15   :  { %v784_v9 = vld [vmem:[%s1383_s0 + $0x98] sm:$0xf0]  ;;  %v767_v12 = vor.u32 %v967_v7, %v766_v6  ;;  %v774_v14 = vld [vmem:[%s1383_s0 + $0x80] sm:$0xf]  ;;  %v970_v15 = vld [vmem:[%s1383_s0 + $0x8c] sm:$0xf0] }
  0x16   :  { %449 = vmatpush.bf16.msra.mxu0 %v986_v21  ;;  %v787_v13 = vor.u32 %v969_v8, %v784_v9  ;;  %v968_v16 = vld [vmem:[%s1383_s0 + $0x84] sm:$0xf]  ;;  %v776_v17 = vld [vmem:[%s1383_s0 + $0x90] sm:$0xf0]  ;;  %v782_v18 = vld [vmem:[%s1383_s0 + $0x88] sm:$0xf] }
  0x17   :  { %498 = vmatpush.bf16.msra.mxu1 %v994_v22  ;;  %v971_v19 = vld [vmem:[%s1383_s0 + $0x94] sm:$0xf0]  ;;  %v973_v20 = vld [vmem:[%s1383_s0 + $0xac] sm:$0xf]  ;;  %v800_v21 = vld [vmem:[%s1383_s0 + $0xb8] sm:$0xf0]  ;;  %v775_v22 = vor.u32 %v970_v15, %v774_v14 }
  0x18   :  { %547 = vmatpush.bf16.msra.mxu2 %v1002_v23  ;;  %v779_v23 = vor.u32 %v968_v16, %v776_v17  ;;  %v792_v29 = vld [vmem:[%s1383_s0 + $0xb0] sm:$0xf0]  ;;  %v798_v30 = vld [vmem:[%s1383_s0 + $0xa8] sm:$0xf]  ;;  %v975_v31 = vld [vmem:[%s1383_s0 + $0xb4] sm:$0xf0] }
  0x19   :  { %v977_v32 = vld [vmem:[%s1383_s0 + $0xcc] sm:$0xf]  ;;  %v799_v36 = vor.u32 %v975_v31, %v798_v30  ;;  %v814_v42 = vld [vmem:[%s1383_s0 + $0xc8] sm:$0xf]  ;;  %v979_v43 = vld [vmem:[%s1383_s0 + $0xd4] sm:$0xf0] }
  0x1a   :  { %450 = vmatpush.bf16.msra.mxu0 %v985_v24  ;;  %v783_v24 = vor.u32 %v971_v19, %v782_v18  ;;  %v981_v44 = vld [vmem:[%s1383_s0 + $0xec] sm:$0xf]  ;;  %v832_v45 = vld [vmem:[%s1383_s0 + $0xf8] sm:$0xf0]  ;;  %v815_v48 = vor.u32 %v979_v43, %v814_v42  ;;  %v830_v54 = vld [vmem:[%s1383_s0 + $0xe8] sm:$0xf] }
  0x1b   :  { %499 = vmatpush.bf16.msra.mxu1 %v993_v25  ;;  %v803_v25 = vor.u32 %v973_v20, %v800_v21  ;;  %v835_v49 = vor.u32 %v981_v44, %v832_v45  ;;  %v983_v55 = vld [vmem:[%s1383_s0 + $0xf4] sm:$0xf0]  ;;  %v1316_v60 = vld [vmem:[%s1384_s2] ss:$0 sm:$0xff] }
  0x1c   :  { %548 = vmatpush.bf16.msra.mxu2 %v1001_v26  ;;  %v790_v26 = vld [vmem:[%s1383_s0 + $0xa0] sm:$0xf]  ;;  %v831_v58 = vor.u32 %v983_v55, %v830_v54 }
  0x1e   :  { %451 = vmatpush.bf16.msra.mxu0 %v984_v27  ;;  %v974_v27 = vld [vmem:[%s1383_s0 + $0xac] sm:$0xf0] }
  0x1f   :  { %500 = vmatpush.bf16.msra.mxu1 %v992_v28  ;;  %v972_v28 = vld [vmem:[%s1383_s0 + $0xa4] sm:$0xf]  ;;  %v791_v34 = vor.u32 %v974_v27, %v790_v26 }
  0x20   :  { %549 = vmatpush.bf16.msra.mxu2 %v1000_v33  ;;  %945 = vmatmul.msk.bf16.gmra.mxu3 %vm419_vm0, %v739_v41  ;;  %v816_v33 = vld [vmem:[%s1383_s0 + $0xd8] sm:$0xf0]  ;;  %v795_v35 = vor.u32 %v972_v28, %v792_v29  ;;  %v808_v41 = vld [vmem:[%s1383_s0 + $0xd0] sm:$0xf0] }
  0x21   :  { %452 = vmatmul.bf16.vlgmr.msra.gmra.mxu0 %v711_v38  ;;  %v819_v37 = vor.u32 %v977_v32, %v816_v33  ;;  %v806_v38 = vld [vmem:[%s1383_s0 + $0xc0] sm:$0xf] }
  0x22   :  { %501 = vmatmul.bf16.vlgmr.msra.gmra.mxu1 %v715_v39  ;;  %v978_v39 = vld [vmem:[%s1383_s0 + $0xcc] sm:$0xf0] }
  0x23   :  { %550 = vmatmul.bf16.vlgmr.msra.gmra.mxu2 %v719_v40  ;;  %v976_v40 = vld [vmem:[%s1383_s0 + $0xc4] sm:$0xf]  ;;  %v807_v46 = vor.u32 %v978_v39, %v806_v38 }
  0x24   :  { %v811_v47 = vor.u32 %v976_v40, %v808_v41 }
  0x30   :  { %946 = vmatmul.msk.bf16.gmra.mxu3 %vm419_vm0, %v755_v53  ;;  %v824_v53 = vld [vmem:[%s1383_s0 + $0xf0] sm:$0xf0] }
  0x31   :  { %457 = vmatmul.bf16.gmra.mxu0 %v727_v50  ;;  %v822_v50 = vld [vmem:[%s1383_s0 + $0xe0] sm:$0xf] }
  0x32   :  { %506 = vmatmul.bf16.gmra.mxu1 %v731_v51  ;;  %v982_v51 = vld [vmem:[%s1383_s0 + $0xec] sm:$0xf0] }
  0x33   :  { %555 = vmatmul.bf16.gmra.mxu2 %v735_v52  ;;  %v980_v52 = vld [vmem:[%s1383_s0 + $0xe4] sm:$0xf]  ;;  %v823_v56 = vor.u32 %v982_v51, %v822_v50 }
  0x34   :  { %v827_v57 = vor.u32 %v980_v52, %v824_v53 }
  0x40   :  { %947 = vmatmul.msk.bf16.gmra.mxu3 %vm419_vm0, %v771_v1 }
  0x41   :  { %462 = vmatmul.bf16.gmra.mxu0 %v743_v62 }
  0x42   :  { %511 = vmatmul.bf16.gmra.mxu1 %v747_v63 }
  0x43   :  { %560 = vmatmul.bf16.gmra.mxu2 %v751_v0 }
  0x50   :  { %948 = vmatmul.msk.bf16.gmra.mxu3 %vm419_vm0, %v787_v13 }
  0x51   :  { %467 = vmatmul.bf16.gmra.mxu0 %v759_v10 }
  0x52   :  { %516 = vmatmul.bf16.gmra.mxu1 %v763_v11 }
  0x53   :  { %565 = vmatmul.bf16.gmra.mxu2 %v767_v12 }
  0x60   :  { %949 = vmatmul.msk.bf16.gmra.mxu3 %vm419_vm0, %v803_v25 }
  0x61   :  { %472 = vmatmul.bf16.gmra.mxu0 %v775_v22 }
  0x62   :  { %521 = vmatmul.bf16.gmra.mxu1 %v779_v23 }
  0x63   :  { %570 = vmatmul.bf16.gmra.mxu2 %v783_v24 }
  0x70   :  { %950 = vmatmul.msk.bf16.gmra.mxu3 %vm419_vm0, %v819_v37 }
  0x71   :  { %477 = vmatmul.bf16.gmra.mxu0 %v791_v34 }
  0x72   :  { %526 = vmatmul.bf16.gmra.mxu1 %v795_v35 }
  0x73   :  { %575 = vmatmul.bf16.gmra.mxu2 %v799_v36 }
  0x80   :  { %951 = vmatmul.msk.bf16.gmra.mxu3 %vm419_vm0, %v835_v49 }
  0x81   :  { %482 = vmatmul.bf16.gmra.mxu0 %v807_v46 }
  0x82   :  { %531 = vmatmul.bf16.gmra.mxu1 %v811_v47 }
  0x83   :  { %580 = vmatmul.bf16.gmra.mxu2 %v815_v48 }
  0x91   :  { %487 = vmatmul.bf16.gmra.mxu0 %v823_v56 }
  0x92   :  { %536 = vmatmul.bf16.gmra.mxu1 %v827_v57 }
  0x93   :  { %585 = vmatmul.bf16.gmra.mxu2 %v831_v58  ;;  %v600_v59 = vpop.f32.mrf.mxu3 }
  0x9b   :  { %v602_v0 = vpop.f32.mrf.mxu3 }
  0x9e   :  { %v453_v61 = vpop.f32.mrf.mxu0 }
  0x9f   :  { %v502_v62 = vpop.f32.mrf.mxu1  ;;  %v454_v63 = vadd.f32 %v1316_v60, %v453_v61 }
  0xa1   :  { %v503_v1 = vadd.f32 %v502_v62, %v454_v63 }
  0xa3   :  { %v605_v6 = vpop.f32.mrf.mxu3 }
  0xa6   :  { %v551_v2 = vpop.f32.mrf.mxu2  ;;  %v455_v4 = vpop.f32.mrf.mxu0 }
  0xa7   :  { %v552_v3 = vadd.f32 %v551_v2, %v503_v1  ;;  %v504_v5 = vpop.f32.mrf.mxu1  ;;  %v456_v8 = vadd.f32 %v1316_v60, %v455_v4 }
  0xa9   :  { %v601_v7 = vadd.f32 %v600_v59, %v552_v3  ;;  %v505_v11 = vadd.f32 %v504_v5, %v456_v8 }
  0xab   :  { %vm640_vm1 = vcmp.ge.f32.partialorder %v601_v7, 0.0  ;;  %v656_v9 = vmul.f32 0.2, %v601_v7  ;;  %v607_v17 = vpop.f32.mrf.mxu3 }
  0xad   :  { %v672_v10 = vsel %vm640_vm1, %v601_v7, %v656_v9 }
  0xae   :  { %688 = vst [vmem:[%s1385_s3] sm:$0xff] %v672_v10  ;;  %v553_v12 = vpop.f32.mrf.mxu2  ;;  %v458_v14 = vpop.f32.mrf.mxu0 }
  0xaf   :  { %v554_v13 = vadd.f32 %v553_v12, %v505_v11  ;;  %v507_v15 = vpop.f32.mrf.mxu1  ;;  %v459_v16 = vadd.f32 %v1316_v60, %v458_v14 }
  0xb1   :  { %v603_v18 = vadd.f32 %v602_v0, %v554_v13  ;;  %v508_v20 = vadd.f32 %v507_v15, %v459_v16 }
  0xb3   :  { %vm641_vm2 = vcmp.ge.f32.partialorder %v603_v18, 0.0  ;;  %v657_v19 = vmul.f32 0.2, %v603_v18  ;;  %v610_v26 = vpop.f32.mrf.mxu3 }
  0xb5   :  { %v673_v21 = vsel %vm641_vm2, %v603_v18, %v657_v19 }
  0xb6   :  { %689 = vst [vmem:[%s1385_s3 + $0x8] sm:$0xff] %v673_v21  ;;  %v556_v22 = vpop.f32.mrf.mxu2  ;;  %v460_v24 = vpop.f32.mrf.mxu0 }
  0xb7   :  { %v557_v23 = vadd.f32 %v556_v22, %v508_v20  ;;  %v509_v25 = vpop.f32.mrf.mxu1  ;;  %v461_v28 = vadd.f32 %v1316_v60, %v460_v24 }
  0xb9   :  { %v606_v27 = vadd.f32 %v605_v6, %v557_v23  ;;  %v510_v31 = vadd.f32 %v509_v25, %v461_v28 }
  0xbb   :  { %vm642_vm3 = vcmp.ge.f32.partialorder %v606_v27, 0.0  ;;  %v658_v29 = vmul.f32 0.2, %v606_v27  ;;  %v612_v37 = vpop.f32.mrf.mxu3 }
  0xbd   :  { %v674_v30 = vsel %vm642_vm3, %v606_v27, %v658_v29 }
  0xbe   :  { %690 = vst [vmem:[%s1385_s3 + $0x10] sm:$0xff] %v674_v30  ;;  %v558_v32 = vpop.f32.mrf.mxu2  ;;  %v463_v34 = vpop.f32.mrf.mxu0 }
  0xbf   :  { %v559_v33 = vadd.f32 %v558_v32, %v510_v31  ;;  %v512_v35 = vpop.f32.mrf.mxu1  ;;  %v464_v36 = vadd.f32 %v1316_v60, %v463_v34 }
  0xc1   :  { %v608_v38 = vadd.f32 %v607_v17, %v559_v33  ;;  %v513_v40 = vadd.f32 %v512_v35, %v464_v36 }
  0xc3   :  { %vm643_vm4 = vcmp.ge.f32.partialorder %v608_v38, 0.0  ;;  %v659_v39 = vmul.f32 0.2, %v608_v38  ;;  %v615_v46 = vpop.f32.mrf.mxu3 }
  0xc5   :  { %v675_v41 = vsel %vm643_vm4, %v608_v38, %v659_v39 }
  0xc6   :  { %691 = vst [vmem:[%s1385_s3 + $0x18] sm:$0xff] %v675_v41  ;;  %v561_v42 = vpop.f32.mrf.mxu2  ;;  %v465_v44 = vpop.f32.mrf.mxu0 }
  0xc7   :  { %v562_v43 = vadd.f32 %v561_v42, %v513_v40  ;;  %v514_v45 = vpop.f32.mrf.mxu1  ;;  %v466_v48 = vadd.f32 %v1316_v60, %v465_v44 }
  0xc9   :  { %v611_v47 = vadd.f32 %v610_v26, %v562_v43  ;;  %v515_v51 = vadd.f32 %v514_v45, %v466_v48 }
  0xcb   :  { %vm644_vm5 = vcmp.ge.f32.partialorder %v611_v47, 0.0  ;;  %v660_v49 = vmul.f32 0.2, %v611_v47  ;;  %v617_v57 = vpop.f32.mrf.mxu3 }
  0xcd   :  { %v676_v50 = vsel %vm644_vm5, %v611_v47, %v660_v49 }
  0xce   :  { %692 = vst [vmem:[%s1385_s3 + $0x20] sm:$0xff] %v676_v50  ;;  %v563_v52 = vpop.f32.mrf.mxu2  ;;  %v468_v54 = vpop.f32.mrf.mxu0 }
  0xcf   :  { %v564_v53 = vadd.f32 %v563_v52, %v515_v51  ;;  %v517_v55 = vpop.f32.mrf.mxu1  ;;  %v469_v56 = vadd.f32 %v1316_v60, %v468_v54 }
  0xd1   :  { %v613_v58 = vadd.f32 %v612_v37, %v564_v53  ;;  %v518_v61 = vadd.f32 %v517_v55, %v469_v56 }
  0xd3   :  { %vm645_vm6 = vcmp.ge.f32.partialorder %v613_v58, 0.0  ;;  %v661_v59 = vmul.f32 0.2, %v613_v58  ;;  %v620_v5 = vpop.f32.mrf.mxu3 }
  0xd5   :  { %v677_v62 = vsel %vm645_vm6, %v613_v58, %v661_v59 }
  0xd6   :  { %693 = vst [vmem:[%s1385_s3 + $0x28] sm:$0xff] %v677_v62  ;;  %v566_v63 = vpop.f32.mrf.mxu2  ;;  %v470_v1 = vpop.f32.mrf.mxu0 }
  0xd7   :  { %v567_v0 = vadd.f32 %v566_v63, %v518_v61  ;;  %v519_v2 = vpop.f32.mrf.mxu1  ;;  %v471_v4 = vadd.f32 %v1316_v60, %v470_v1 }
  0xd9   :  { %v616_v3 = vadd.f32 %v615_v46, %v567_v0  ;;  %v520_v8 = vadd.f32 %v519_v2, %v471_v4 }
  0xdb   :  { %vm646_vm7 = vcmp.ge.f32.partialorder %v616_v3, 0.0  ;;  %v662_v6 = vmul.f32 0.2, %v616_v3  ;;  %v622_v17 = vpop.f32.mrf.mxu3 }
  0xdd   :  { %v678_v7 = vsel %vm646_vm7, %v616_v3, %v662_v6 }
  0xde   :  { %694 = vst [vmem:[%s1385_s3 + $0x30] sm:$0xff] %v678_v7  ;;  %v568_v9 = vpop.f32.mrf.mxu2  ;;  %v473_v11 = vpop.f32.mrf.mxu0 }
  0xdf   :  { %v569_v10 = vadd.f32 %v568_v9, %v520_v8  ;;  %v522_v12 = vpop.f32.mrf.mxu1  ;;  %v474_v13 = vadd.f32 %v1316_v60, %v473_v11 }
  0xe1   :  { %v618_v14 = vadd.f32 %v617_v57, %v569_v10  ;;  %v523_v16 = vadd.f32 %v522_v12, %v474_v13 }
  0xe3   :  { %vm647_vm8 = vcmp.ge.f32.partialorder %v618_v14, 0.0  ;;  %v663_v15 = vmul.f32 0.2, %v618_v14  ;;  %v625_v29 = vpop.f32.mrf.mxu3 }
  0xe5   :  { %v679_v18 = vsel %vm647_vm8, %v618_v14, %v663_v15 }
  0xe6   :  { %695 = vst [vmem:[%s1385_s3 + $0x38] sm:$0xff] %v679_v18  ;;  %v571_v19 = vpop.f32.mrf.mxu2  ;;  %v475_v21 = vpop.f32.mrf.mxu0 }
  0xe7   :  { %v572_v20 = vadd.f32 %v571_v19, %v523_v16  ;;  %v524_v22 = vpop.f32.mrf.mxu1  ;;  %v476_v24 = vadd.f32 %v1316_v60, %v475_v21 }
  0xe9   :  { %v621_v23 = vadd.f32 %v620_v5, %v572_v20  ;;  %v525_v27 = vadd.f32 %v524_v22, %v476_v24 }
  0xeb   :  { %vm648_vm9 = vcmp.ge.f32.partialorder %v621_v23, 0.0  ;;  %v664_v25 = vmul.f32 0.2, %v621_v23  ;;  %v627_v42 = vpop.f32.mrf.mxu3 }
  0xed   :  { %v680_v26 = vsel %vm648_vm9, %v621_v23, %v664_v25 }
  0xee   :  { %696 = vst [vmem:[%s1385_s3 + $0x40] sm:$0xff] %v680_v26  ;;  %v573_v28 = vpop.f32.mrf.mxu2  ;;  %v478_v31 = vpop.f32.mrf.mxu0 }
  0xef   :  { %v574_v30 = vadd.f32 %v573_v28, %v525_v27  ;;  %v527_v32 = vpop.f32.mrf.mxu1  ;;  %v479_v33 = vadd.f32 %v1316_v60, %v478_v31 }
  0xf1   :  { %v623_v34 = vadd.f32 %v622_v17, %v574_v30  ;;  %v528_v36 = vadd.f32 %v527_v32, %v479_v33 }
  0xf3   :  { %vm649_vm10 = vcmp.ge.f32.partialorder %v623_v34, 0.0  ;;  %v665_v35 = vmul.f32 0.2, %v623_v34  ;;  %v630_v54 = vpop.f32.mrf.mxu3 }
  0xf5   :  { %v681_v37 = vsel %vm649_vm10, %v623_v34, %v665_v35 }
  0xf6   :  { %697 = vst [vmem:[%s1385_s3 + $0x48] sm:$0xff] %v681_v37  ;;  %v576_v38 = vpop.f32.mrf.mxu2  ;;  %v480_v40 = vpop.f32.mrf.mxu0 }
  0xf7   :  { %v577_v39 = vadd.f32 %v576_v38, %v528_v36  ;;  %v529_v41 = vpop.f32.mrf.mxu1  ;;  %v481_v44 = vadd.f32 %v1316_v60, %v480_v40 }
  0xf9   :  { %v626_v43 = vadd.f32 %v625_v29, %v577_v39  ;;  %v530_v47 = vadd.f32 %v529_v41, %v481_v44 }
  0xfb   :  { %vm650_vm11 = vcmp.ge.f32.partialorder %v626_v43, 0.0  ;;  %v666_v45 = vmul.f32 0.2, %v626_v43  ;;  %v632_v2 = vpop.f32.mrf.mxu3 }
  0xfd   :  { %v682_v46 = vsel %vm650_vm11, %v626_v43, %v666_v45 }
  0xfe   :  { %698 = vst [vmem:[%s1385_s3 + $0x50] sm:$0xff] %v682_v46  ;;  %v578_v48 = vpop.f32.mrf.mxu2  ;;  %v483_v50 = vpop.f32.mrf.mxu0 }
  0xff   :  { %v579_v49 = vadd.f32 %v578_v48, %v530_v47  ;;  %v532_v51 = vpop.f32.mrf.mxu1  ;;  %v484_v52 = vadd.f32 %v1316_v60, %v483_v50 }
 0x101   :  { %v628_v53 = vadd.f32 %v627_v42, %v579_v49  ;;  %v533_v56 = vadd.f32 %v532_v51, %v484_v52 }
 0x103   :  { %vm651_vm12 = vcmp.ge.f32.partialorder %v628_v53, 0.0  ;;  %v667_v55 = vmul.f32 0.2, %v628_v53  ;;  %v635_v14 = vpop.f32.mrf.mxu3 }
 0x105   :  { %v683_v57 = vsel %vm651_vm12, %v628_v53, %v667_v55 }
 0x106   :  { %699 = vst [vmem:[%s1385_s3 + $0x58] sm:$0xff] %v683_v57  ;;  %v581_v58 = vpop.f32.mrf.mxu2  ;;  %v485_v61 = vpop.f32.mrf.mxu0 }
 0x107   :  { %v582_v59 = vadd.f32 %v581_v58, %v533_v56  ;;  %v534_v62 = vpop.f32.mrf.mxu1  ;;  %v486_v0 = vadd.f32 %v1316_v60, %v485_v61 }
 0x109   :  { %v631_v63 = vadd.f32 %v630_v54, %v582_v59  ;;  %v535_v4 = vadd.f32 %v534_v62, %v486_v0 }
 0x10b   :  { %vm652_vm13 = vcmp.ge.f32.partialorder %v631_v63, 0.0  ;;  %v668_v1 = vmul.f32 0.2, %v631_v63  ;;  %v637_v26 = vpop.f32.mrf.mxu3 }
 0x10d   :  { %v684_v3 = vsel %vm652_vm13, %v631_v63, %v668_v1 }
 0x10e   :  { %700 = vst [vmem:[%s1385_s3 + $0x60] sm:$0xff] %v684_v3  ;;  %v583_v5 = vpop.f32.mrf.mxu2  ;;  %v488_v7 = vpop.f32.mrf.mxu0 }
 0x10f   :  { %v584_v6 = vadd.f32 %v583_v5, %v535_v4  ;;  %v489_v8 = vadd.f32 %v1316_v60, %v488_v7  ;;  %v537_v10 = vpop.f32.mrf.mxu1 }
 0x111   :  { %v633_v9 = vadd.f32 %v632_v2, %v584_v6  ;;  %v538_v12 = vadd.f32 %v537_v10, %v489_v8 }
 0x113   :  { %vm653_vm14 = vcmp.ge.f32.partialorder %v633_v9, 0.0  ;;  %v669_v11 = vmul.f32 0.2, %v633_v9 }
 0x115   :  { %v685_v13 = vsel %vm653_vm14, %v633_v9, %v669_v11 }
 0x116   :  { %701 = vst [vmem:[%s1385_s3 + $0x68] sm:$0xff] %v685_v13  ;;  %v586_v15 = vpop.f32.mrf.mxu2  ;;  %v490_v17 = vpop.f32.mrf.mxu0 }
 0x117   :  { %v587_v16 = vadd.f32 %v586_v15, %v538_v12  ;;  %v491_v19 = vadd.f32 %v1316_v60, %v490_v17  ;;  %v539_v21 = vpop.f32.mrf.mxu1 }
 0x119   :  { %v636_v18 = vadd.f32 %v635_v14, %v587_v16  ;;  %v540_v23 = vadd.f32 %v539_v21, %v491_v19 }
 0x11b   :  { %vm654_vm15 = vcmp.ge.f32.partialorder %v636_v18, 0.0  ;;  %v670_v20 = vmul.f32 0.2, %v636_v18 }
 0x11d   :  { %v686_v22 = vsel %vm654_vm15, %v636_v18, %v670_v20 }
 0x11e   :  { %702 = vst [vmem:[%s1385_s3 + $0x70] sm:$0xff] %v686_v22  ;;  %v588_v24 = vpop.f32.mrf.mxu2 }
 0x11f   :  { %v589_v25 = vadd.f32 %v588_v24, %v540_v23 }
 0x121   :  { %v638_v27 = vadd.f32 %v637_v26, %v589_v25 }
 0x123   :  { %vm655_vm0 = vcmp.ge.f32.partialorder %v638_v27, 0.0  ;;  %v671_v28 = vmul.f32 0.2, %v638_v27 }
 0x125   :  { %v687_v29 = vsel %vm655_vm0, %v638_v27, %v671_v28 }
 0x126   :  { %703 = vst [vmem:[%s1385_s3 + $0x78] sm:$0xff] %v687_v29 }

// kernel: _lambda_.8
= control target key start
LH: loop header
LB: loop body
LE: loop exit
PB: predicated region body
PF: predicated region fallthrough
CT: control target
= control target key end

     0   :  { %vm795_vm0 = vcmask 785408   ;;  %s2485_s1 = inlined_call_operand.vmem [shape: bf16[864,128], index: 1, kind: input, shape index: {}]   ;;  %s2486_s2 = inlined_call_operand.vmem [shape: f32[1,128], index: 2, kind: input, shape index: {}]   ;;  %s2487_s0 = inlined_call_operand.vmem [shape: bf16[128,864], index: 0, kind: input, shape index: {}]   ;;  %s2488_s3 = inlined_call_operand.vmem [shape: f32[128,128], index: 3, kind: output, shape index: {}]  }
   0x1   :  { %v1694_v0 = vld [vmem:[%s2485_s1 + $0x38] sm:$0xff]  ;;  %v1693_v3 = vld [vmem:[%s2485_s1 + $0x30] sm:$0xff]  ;;  %v1692_v6 = vld [vmem:[%s2485_s1 + $0x28] sm:$0xff] }
   0x2   :  { %v1792_v1 = vld [vmem:[%s2485_s1 + $0xb8] sm:$0xff]  ;;  %820 = vmatpush.bf16.msra.mxu0 %v1694_v0  ;;  %1741 = vmatpush.bf16.msra.mxu3 %v1694_v0  ;;  %v1807_v4 = vld [vmem:[%s2485_s1 + $0xb0] sm:$0xff]  ;;  %v1822_v7 = vld [vmem:[%s2485_s1 + $0xa8] sm:$0xff] }
   0x3   :  { %v1797_v2 = vld [vmem:[%s2485_s1 + $0x78] sm:$0xff]  ;;  %1757 = vmatpush.bf16.msra.mxu2 %v1792_v1  ;;  %v1812_v5 = vld [vmem:[%s2485_s1 + $0x70] sm:$0xff]  ;;  %v1827_v8 = vld [vmem:[%s2485_s1 + $0x68] sm:$0xff] }
   0x4   :  { %1749 = vmatpush.bf16.msra.mxu1 %v1797_v2  ;;  %v1691_v9 = vld [vmem:[%s2485_s1 + $0x20] sm:$0xff]  ;;  %v1690_v12 = vld [vmem:[%s2485_s1 + $0x18] sm:$0xff]  ;;  %v1689_v15 = vld [vmem:[%s2485_s1 + $0x10] sm:$0xff] }
   0x5   :  { %v1837_v10 = vld [vmem:[%s2485_s1 + $0xa0] sm:$0xff]  ;;  %v1852_v13 = vld [vmem:[%s2485_s1 + $0x98] sm:$0xff]  ;;  %v1867_v16 = vld [vmem:[%s2485_s1 + $0x90] sm:$0xff] }
   0x6   :  { %821 = vmatpush.bf16.msra.mxu0 %v1693_v3  ;;  %1742 = vmatpush.bf16.msra.mxu3 %v1693_v3  ;;  %v1842_v11 = vld [vmem:[%s2485_s1 + $0x60] sm:$0xff]  ;;  %v1857_v14 = vld [vmem:[%s2485_s1 + $0x58] sm:$0xff]  ;;  %v1872_v17 = vld [vmem:[%s2485_s1 + $0x50] sm:$0xff] }
   0x7   :  { %1758 = vmatpush.bf16.msra.mxu2 %v1807_v4  ;;  %v1688_v18 = vld [vmem:[%s2485_s1 + $0x8] sm:$0xff]  ;;  %v1687_v21 = vld [vmem:[%s2485_s1] sm:$0xff]  ;;  %v1634_v25 = vld [vmem:[%s2487_s0 + $0x18] sm:$0xf0] }
   0x8   :  { %1750 = vmatpush.bf16.msra.mxu1 %v1812_v5  ;;  %v1882_v19 = vld [vmem:[%s2485_s1 + $0x88] sm:$0xff]  ;;  %v1895_v22 = vld [vmem:[%s2485_s1 + $0x80] sm:$0xff]  ;;  %v1241_v26 = vld [vmem:[%s2487_s0 + $0x70] sm:$0xf] }
   0x9   :  { %v1887_v20 = vld [vmem:[%s2485_s1 + $0x48] sm:$0xff]  ;;  %v1900_v23 = vld [vmem:[%s2485_s1 + $0x40] sm:$0xff]  ;;  %v1249_v28 = vld [vmem:[%s2487_s0 + $0x78] sm:$0xf] }
   0xa   :  { %822 = vmatpush.bf16.msra.mxu0 %v1692_v6  ;;  %1743 = vmatpush.bf16.msra.mxu3 %v1692_v6  ;;  %v1185_v24 = vld [vmem:[%s2487_s0] sm:$0xf]  ;;  %v1648_v27 = vld [vmem:[%s2487_s0 + $0x88] sm:$0xf0]  ;;  %v1649_v29 = vld [vmem:[%s2487_s0 + $0x90] sm:$0xf0] }
   0xb   :  { %1759 = vmatpush.bf16.msra.mxu2 %v1822_v7  ;;  %v1645_v30 = vld [vmem:[%s2487_s0 + $0x74] sm:$0xf]  ;;  %v1243_v31 = vld [vmem:[%s2487_s0 + $0x8c] sm:$0xf0]  ;;  %v1718_v32 = vld [vmem:[%s2485_s1 + $0xf8] sm:$0xff]  ;;  %v1186_v33 = vor.u32 %v1634_v25, %v1185_v24  ;;  %v1242_v34 = vor.u32 %v1648_v27, %v1241_v26  ;;  %v1250_v35 = vor.u32 %v1649_v29, %v1249_v28 }
   0xc   :  { %1751 = vmatpush.bf16.msra.mxu1 %v1827_v8  ;;  %v1246_v36 = vor.u32 %v1645_v30, %v1243_v31  ;;  %v1740_v37 = vld [vmem:[%s2485_s1 + $0x1a8] sm:$0xff]  ;;  %v1734_v38 = vld [vmem:[%s2485_s1 + $0x178] sm:$0xff]  ;;  %v1717_v39 = vld [vmem:[%s2485_s1 + $0xf0] sm:$0xff] }
   0xd   :  { %v1733_v40 = vld [vmem:[%s2485_s1 + $0x170] sm:$0xff]  ;;  %v1739_v41 = vld [vmem:[%s2485_s1 + $0x1a0] sm:$0xff]  ;;  %v1716_v42 = vld [vmem:[%s2485_s1 + $0xe8] sm:$0xff] }
   0xe   :  { %823 = vmatpush.bf16.msra.mxu0 %v1691_v9  ;;  %1744 = vmatpush.bf16.msra.mxu3 %v1691_v9  ;;  %v1732_v43 = vld [vmem:[%s2485_s1 + $0x168] sm:$0xff]  ;;  %v1738_v44 = vld [vmem:[%s2485_s1 + $0x198] sm:$0xff]  ;;  %v1715_v45 = vld [vmem:[%s2485_s1 + $0xe0] sm:$0xff] }
   0xf   :  { %1760 = vmatpush.bf16.msra.mxu2 %v1837_v10  ;;  %v1213_v46 = vld [vmem:[%s2487_s0 + $0x38] sm:$0xf]  ;;  %v1641_v47 = vld [vmem:[%s2487_s0 + $0x50] sm:$0xf0]  ;;  %v1269_v48 = vld [vmem:[%s2487_s0 + $0xa8] sm:$0xf] }
  0x10   :  { %1752 = vmatpush.bf16.msra.mxu1 %v1842_v11  ;;  %v1655_v49 = vld [vmem:[%s2487_s0 + $0xc0] sm:$0xf0]  ;;  %v1277_v50 = vld [vmem:[%s2487_s0 + $0xb0] sm:$0xf]  ;;  %v1656_v51 = vld [vmem:[%s2487_s0 + $0xc8] sm:$0xf0]  ;;  %v1214_v55 = vor.u32 %v1641_v47, %v1213_v46 }
  0x11   :  { %v1652_v52 = vld [vmem:[%s2487_s0 + $0xac] sm:$0xf]  ;;  %v1271_v53 = vld [vmem:[%s2487_s0 + $0xc4] sm:$0xf0]  ;;  %v1731_v54 = vld [vmem:[%s2485_s1 + $0x160] sm:$0xff]  ;;  %v1270_v56 = vor.u32 %v1655_v49, %v1269_v48  ;;  %v1278_v57 = vor.u32 %v1656_v51, %v1277_v50 }
  0x12   :  { %824 = vmatpush.bf16.msra.mxu0 %v1690_v12  ;;  %1745 = vmatpush.bf16.msra.mxu3 %v1690_v12  ;;  %v1274_v58 = vor.u32 %v1652_v52, %v1271_v53  ;;  %v1714_v59 = vld [vmem:[%s2485_s1 + $0xd8] sm:$0xff]  ;;  %v1737_v60 = vld [vmem:[%s2485_s1 + $0x190] sm:$0xff]  ;;  %v1297_v63 = vld [vmem:[%s2487_s0 + $0xe0] sm:$0xf] }
  0x13   :  { %1761 = vmatpush.bf16.msra.mxu2 %v1852_v13  ;;  %v1730_v61 = vld [vmem:[%s2485_s1 + $0x158] sm:$0xff]  ;;  %v1713_v62 = vld [vmem:[%s2485_s1 + $0xd0] sm:$0xff]  ;;  %v1187_v3 = vld [vmem:[%s2487_s0 + $0x1c] sm:$0xf0] }
  0x14   :  { %1753 = vmatpush.bf16.msra.mxu1 %v1857_v14  ;;  %v1662_v0 = vld [vmem:[%s2487_s0 + $0xf8] sm:$0xf0]  ;;  %v1663_v6 = vld [vmem:[%s2487_s0 + $0x100] sm:$0xf0]  ;;  %v1299_v9 = vld [vmem:[%s2487_s0 + $0xfc] sm:$0xf0] }
  0x15   :  { %v1670_v24 = vld [vmem:[%s2487_s0 + $0x138] sm:$0xf0]  ;;  %v1327_v26 = vld [vmem:[%s2487_s0 + $0x134] sm:$0xf0]  ;;  %v1711_v31 = vld [vmem:[%s2485_s1 + $0xc0] sm:$0xff] }
  0x16   :  { %825 = vmatpush.bf16.msra.mxu0 %v1689_v15  ;;  %1746 = vmatpush.bf16.msra.mxu3 %v1689_v15  ;;  %v1666_v25 = vld [vmem:[%s2487_s0 + $0x11c] sm:$0xf]  ;;  %v1381_v47 = vld [vmem:[%s2487_s0 + $0x188] sm:$0xf]  ;;  %v1683_v48 = vld [vmem:[%s2487_s0 + $0x1a0] sm:$0xf0] }
  0x17   :  { %1762 = vmatpush.bf16.msra.mxu2 %v1867_v16  ;;  %v1330_v30 = vor.u32 %v1666_v25, %v1327_v26  ;;  %v1722_v46 = vld [vmem:[%s2485_s1 + $0x118] sm:$0xff]  ;;  %v1221_v49 = vld [vmem:[%s2487_s0 + $0x40] sm:$0xf]  ;;  %v1389_v51 = vld [vmem:[%s2487_s0 + $0x190] sm:$0xf] }
  0x18   :  { %1754 = vmatpush.bf16.msra.mxu1 %v1872_v17  ;;  %v1642_v50 = vld [vmem:[%s2487_s0 + $0x58] sm:$0xf0]  ;;  %v1684_v52 = vld [vmem:[%s2487_s0 + $0x1a8] sm:$0xf0] }
  0x19   :  { %v1680_v53 = vld [vmem:[%s2487_s0 + $0x18c] sm:$0xf] }
  0x1a   :  { %826 = vmatpush.bf16.msra.mxu0 %v1688_v18  ;;  %1747 = vmatpush.bf16.msra.mxu3 %v1688_v18  ;;  %v1736_v18 = vld [vmem:[%s2485_s1 + $0x188] sm:$0xff] }
  0x1b   :  { %1763 = vmatpush.bf16.msra.mxu2 %v1882_v19 }
  0x1c   :  { %1755 = vmatpush.bf16.msra.mxu1 %v1887_v20 }
  0x1e   :  { %827 = vmatpush.bf16.msra.mxu0 %v1687_v21  ;;  %1748 = vmatpush.bf16.msra.mxu3 %v1687_v21  ;;  %v1669_v21 = vld [vmem:[%s2487_s0 + $0x130] sm:$0xf0] }
  0x1f   :  { %1764 = vmatpush.bf16.msra.mxu2 %v1895_v22 }
  0x20   :  { %1756 = vmatpush.bf16.msra.mxu1 %v1900_v23 }
  0x21   :  { %828 = vmatmul.bf16.vlgmr.msra.gmra.mxu0 %v1186_v33  ;;  %838 = vmatmul.bf16.vlgmr.msra.gmra.mxu3 %v1242_v34  ;;  %v1727_v33 = vld [vmem:[%s2485_s1 + $0x140] sm:$0xff]  ;;  %v1676_v34 = vld [vmem:[%s2487_s0 + $0x168] sm:$0xf0] }
  0x22   :  { %967 = vmatpush.bf16.msrb.mxu3 %v1718_v32  ;;  %869 = vmatpush.bf16.msrb.mxu0 %v1797_v2  ;;  %v1631_v2 = vld [vmem:[%s2487_s0 + $0x4] sm:$0xf] }
  0x23   :  { %936 = vmatmul.bf16.vlgmr.msra.gmra.mxu2 %v1250_v35  ;;  %887 = vmatmul.bf16.vlgmr.msra.gmra.mxu1 %v1246_v36  ;;  %v1190_v12 = vor.u32 %v1631_v2, %v1187_v3  ;;  %v1735_v32 = vld [vmem:[%s2485_s1 + $0x180] sm:$0xff]  ;;  %v1361_v36 = vld [vmem:[%s2487_s0 + $0x158] sm:$0xf]  ;;  %v1636_v2 = vld [vmem:[%s2487_s0 + $0x28] sm:$0xf0] }
  0x24   :  { %1116 = vmatpush.bf16.msrb.mxu2 %v1740_v37  ;;  %1065 = vmatpush.bf16.msrb.mxu1 %v1734_v38  ;;  %v1635_v35 = vld [vmem:[%s2487_s0 + $0x20] sm:$0xf0]  ;;  %v1677_v37 = vld [vmem:[%s2487_s0 + $0x170] sm:$0xf0]  ;;  %v1209_v3 = vld [vmem:[%s2487_s0 + $0x18] sm:$0xf] }
  0x25   :  { %v1673_v38 = vld [vmem:[%s2487_s0 + $0x154] sm:$0xf] }
  0x26   :  { %870 = vmatpush.bf16.msrb.mxu0 %v1812_v5  ;;  %968 = vmatpush.bf16.msrb.mxu3 %v1717_v39  ;;  %v1305_v5 = vld [vmem:[%s2487_s0 + $0xe8] sm:$0xf]  ;;  %v1355_v39 = vld [vmem:[%s2487_s0 + $0x16c] sm:$0xf0] }
  0x28   :  { %1066 = vmatpush.bf16.msrb.mxu1 %v1733_v40  ;;  %1117 = vmatpush.bf16.msrb.mxu2 %v1739_v41  ;;  %v1725_v40 = vld [vmem:[%s2485_s1 + $0x130] sm:$0xff] }
  0x2a   :  { %871 = vmatpush.bf16.msrb.mxu0 %v1827_v8  ;;  %969 = vmatpush.bf16.msrb.mxu3 %v1716_v42  ;;  %v1659_v8 = vld [vmem:[%s2487_s0 + $0xe4] sm:$0xf] }
  0x2b   :  { %v1302_v15 = vor.u32 %v1659_v8, %v1299_v9  ;;  %v1203_v8 = vld [vmem:[%s2487_s0 + $0x2c] sm:$0xf0] }
  0x2c   :  { %1067 = vmatpush.bf16.msrb.mxu1 %v1732_v43  ;;  %1118 = vmatpush.bf16.msrb.mxu2 %v1738_v44  ;;  %v1358_v43 = vor.u32 %v1673_v38, %v1355_v39  ;;  %v1724_v44 = vld [vmem:[%s2485_s1 + $0x128] sm:$0xff] }
  0x2e   :  { %872 = vmatpush.bf16.msrb.mxu0 %v1842_v11  ;;  %970 = vmatpush.bf16.msrb.mxu3 %v1715_v45  ;;  %v1298_v11 = vor.u32 %v1662_v0, %v1297_v63  ;;  %v1723_v45 = vld [vmem:[%s2485_s1 + $0x120] sm:$0xff]  ;;  %v1195_v63 = vld [vmem:[%s2487_s0 + $0x24] sm:$0xf0]  ;;  %v1201_v0 = vld [vmem:[%s2487_s0 + $0x10] sm:$0xf] }
  0x30   :  { %1068 = vmatpush.bf16.msrb.mxu1 %v1731_v54  ;;  %1119 = vmatpush.bf16.msrb.mxu2 %v1737_v60  ;;  %v1383_v54 = vld [vmem:[%s2487_s0 + $0x1a4] sm:$0xf0] }
  0x31   :  { %833 = vmatmul.bf16.gmra.mxu0 %v1214_v55  ;;  %843 = vmatmul.bf16.gmra.mxu3 %v1270_v56  ;;  %v1721_v55 = vld [vmem:[%s2485_s1 + $0x110] sm:$0xff]  ;;  %v1382_v56 = vor.u32 %v1683_v48, %v1381_v47  ;;  %v1720_v60 = vld [vmem:[%s2485_s1 + $0x108] sm:$0xff]  ;;  %v1293_v48 = vld [vmem:[%s2487_s0 + $0xc0] sm:$0xf] }
  0x32   :  { %873 = vmatpush.bf16.msrb.mxu0 %v1857_v14  ;;  %971 = vmatpush.bf16.msrb.mxu3 %v1714_v59  ;;  %v1306_v14 = vor.u32 %v1663_v6, %v1305_v5  ;;  %v1386_v59 = vor.u32 %v1680_v53, %v1383_v54  ;;  %v1637_v5 = vld [vmem:[%s2487_s0 + $0x30] sm:$0xf0] }
  0x33   :  { %941 = vmatmul.bf16.gmra.mxu2 %v1278_v57  ;;  %892 = vmatmul.bf16.gmra.mxu1 %v1274_v58  ;;  %v1222_v57 = vor.u32 %v1642_v50, %v1221_v49  ;;  %v1390_v58 = vor.u32 %v1684_v52, %v1389_v51  ;;  %v1633_v6 = vld [vmem:[%s2487_s0 + $0x14] sm:$0xf]  ;;  %v1658_v49 = vld [vmem:[%s2487_s0 + $0xd8] sm:$0xf0]  ;;  %v1287_v51 = vld [vmem:[%s2487_s0 + $0xd4] sm:$0xf0] }
  0x34   :  { %1069 = vmatpush.bf16.msrb.mxu1 %v1730_v61  ;;  %1120 = vmatpush.bf16.msrb.mxu2 %v1736_v18  ;;  %v1719_v61 = vld [vmem:[%s2485_s1 + $0x100] sm:$0xff]  ;;  %v1229_v18 = vld [vmem:[%s2487_s0 + $0x48] sm:$0xf]  ;;  %v1657_v47 = vld [vmem:[%s2487_s0 + $0xd0] sm:$0xf0] }
  0x35   :  { %v1654_v50 = vld [vmem:[%s2487_s0 + $0xbc] sm:$0xf] }
  0x36   :  { %874 = vmatpush.bf16.msrb.mxu0 %v1872_v17  ;;  %972 = vmatpush.bf16.msrb.mxu3 %v1713_v62  ;;  %v1729_v17 = vld [vmem:[%s2485_s1 + $0x150] sm:$0xff]  ;;  %v1632_v62 = vld [vmem:[%s2487_s0 + $0xc] sm:$0xf] }
  0x37   :  { %v1198_v9 = vor.u32 %v1632_v62, %v1195_v63 }
  0x38   :  { %1070 = vmatpush.bf16.msrb.mxu1 %v1729_v17  ;;  %1121 = vmatpush.bf16.msrb.mxu2 %v1735_v32  ;;  %v1223_v17 = vld [vmem:[%s2487_s0 + $0x5c] sm:$0xf0]  ;;  %v1647_v32 = vld [vmem:[%s2487_s0 + $0x84] sm:$0xf] }
  0x3a   :  { %875 = vmatpush.bf16.msrb.mxu0 %v1887_v20  ;;  %v1325_v20 = vld [vmem:[%s2487_s0 + $0x118] sm:$0xf] }
  0x3b   :  { %v1326_v27 = vor.u32 %v1669_v21, %v1325_v20  ;;  %v1237_v20 = vld [vmem:[%s2487_s0 + $0x50] sm:$0xf]  ;;  %v1644_v21 = vld [vmem:[%s2487_s0 + $0x68] sm:$0xf0] }
  0x3c   :  { %v1238_v25 = vor.u32 %v1644_v21, %v1237_v20 }
  0x3e   :  { %876 = vmatpush.bf16.msrb.mxu0 %v1900_v23  ;;  %v1215_v23 = vld [vmem:[%s2487_s0 + $0x54] sm:$0xf0] }
  0x41   :  { %848 = vmatmul.bf16.gmra.mxu3 %v1298_v11  ;;  %877 = vmatmul.bf16.vlgmr.msrb.gmra.mxu0 %v1190_v12  ;;  %v1202_v11 = vor.u32 %v1636_v2, %v1201_v0  ;;  %v1210_v12 = vor.u32 %v1637_v5, %v1209_v3 }
  0x42   :  { %918 = vmatpush.bf16.msra.mxu0 %v1792_v1  ;;  %v1712_v1 = vld [vmem:[%s2485_s1 + $0xc8] sm:$0xff] }
  0x43   :  { %946 = vmatmul.bf16.gmra.mxu2 %v1306_v14  ;;  %897 = vmatmul.bf16.gmra.mxu1 %v1302_v15  ;;  %v1206_v14 = vor.u32 %v1633_v6, %v1203_v8  ;;  %v1639_v15 = vld [vmem:[%s2487_s0 + $0x44] sm:$0xf] }
  0x44   :  { %973 = vmatpush.bf16.msrb.mxu3 %v1712_v1  ;;  %v1643_v1 = vld [vmem:[%s2487_s0 + $0x60] sm:$0xf0] }
  0x46   :  { %919 = vmatpush.bf16.msra.mxu0 %v1807_v4  ;;  %v1638_v4 = vld [vmem:[%s2487_s0 + $0x3c] sm:$0xf] }
  0x47   :  { %v1218_v28 = vor.u32 %v1638_v4, %v1215_v23  ;;  %v1640_v4 = vld [vmem:[%s2487_s0 + $0x4c] sm:$0xf]  ;;  %v1231_v23 = vld [vmem:[%s2487_s0 + $0x64] sm:$0xf0] }
  0x48   :  { %974 = vmatpush.bf16.msrb.mxu3 %v1711_v31  ;;  %v1234_v26 = vor.u32 %v1640_v4, %v1231_v23  ;;  %v1651_v31 = vld [vmem:[%s2487_s0 + $0xa0] sm:$0xf0] }
  0x4a   :  { %920 = vmatpush.bf16.msra.mxu0 %v1822_v7  ;;  %v1333_v7 = vld [vmem:[%s2487_s0 + $0x120] sm:$0xf] }
  0x4b   :  { %v1334_v29 = vor.u32 %v1670_v24, %v1333_v7  ;;  %v1226_v7 = vor.u32 %v1639_v15, %v1223_v17  ;;  %v1230_v24 = vor.u32 %v1643_v1, %v1229_v18  ;;  %v1321_v15 = vld [vmem:[%s2487_s0 + $0xf8] sm:$0xf]  ;;  %v1665_v17 = vld [vmem:[%s2487_s0 + $0x110] sm:$0xf0]  ;;  %v1315_v1 = vld [vmem:[%s2487_s0 + $0x10c] sm:$0xf0] }
  0x4c   :  { %v1661_v18 = vld [vmem:[%s2487_s0 + $0xf4] sm:$0xf] }
  0x4e   :  { %921 = vmatpush.bf16.msra.mxu0 %v1837_v10  ;;  %v1728_v10 = vld [vmem:[%s2485_s1 + $0x148] sm:$0xff] }
  0x4f   :  { %1071 = vmatpush.bf16.msrb.mxu1 %v1728_v10  ;;  %v1265_v10 = vld [vmem:[%s2487_s0 + $0x88] sm:$0xf] }
  0x51   :  { %853 = vmatmul.bf16.gmra.mxu3 %v1326_v27  ;;  %882 = vmatmul.bf16.gmra.mxu0 %v1218_v28  ;;  %v1646_v27 = vld [vmem:[%s2487_s0 + $0x7c] sm:$0xf]  ;;  %v1251_v28 = vld [vmem:[%s2487_s0 + $0x94] sm:$0xf0] }
  0x52   :  { %922 = vmatpush.bf16.msra.mxu0 %v1852_v13  ;;  %v1726_v13 = vld [vmem:[%s2485_s1 + $0x138] sm:$0xff] }
  0x53   :  { %951 = vmatmul.bf16.gmra.mxu2 %v1334_v29  ;;  %902 = vmatmul.bf16.gmra.mxu1 %v1330_v30  ;;  %v1257_v29 = vld [vmem:[%s2487_s0 + $0x80] sm:$0xf]  ;;  %v1650_v30 = vld [vmem:[%s2487_s0 + $0x98] sm:$0xf0] }
  0x54   :  { %1072 = vmatpush.bf16.msrb.mxu1 %v1727_v33  ;;  %v1254_v33 = vor.u32 %v1646_v27, %v1251_v28 }
  0x56   :  { %923 = vmatpush.bf16.msra.mxu0 %v1867_v16  ;;  %v1353_v16 = vld [vmem:[%s2487_s0 + $0x150] sm:$0xf] }
  0x57   :  { %v1354_v41 = vor.u32 %v1676_v34, %v1353_v16  ;;  %v1258_v16 = vor.u32 %v1650_v30, %v1257_v29 }
  0x5a   :  { %924 = vmatpush.bf16.msra.mxu0 %v1882_v19  ;;  %v1193_v19 = vld [vmem:[%s2487_s0 + $0x8] sm:$0xf] }
  0x5b   :  { %v1194_v42 = vor.u32 %v1635_v35, %v1193_v19  ;;  %v1266_v19 = vor.u32 %v1651_v31, %v1265_v10 }
  0x5e   :  { %925 = vmatpush.bf16.msra.mxu0 %v1895_v22  ;;  %v1362_v22 = vor.u32 %v1677_v37, %v1361_v36  ;;  %v2235_v37 = vld [vmem:[%s2486_s2] ss:$0 sm:$0xff] }
  0x61   :  { %858 = vmatmul.bf16.gmra.mxu3 %v1354_v41  ;;  %926 = vmatmul.bf16.vlgmr.msra.gmra.mxu0 %v1194_v42 }
  0x62   :  { %1016 = vmatpush.bf16.msrb.mxu0 %v1726_v13  ;;  %v1259_v13 = vld [vmem:[%s2487_s0 + $0x9c] sm:$0xf0] }
  0x63   :  { %956 = vmatmul.bf16.gmra.mxu2 %v1362_v22  ;;  %907 = vmatmul.bf16.gmra.mxu1 %v1358_v43  ;;  %v1262_v35 = vor.u32 %v1647_v32, %v1259_v13 }
  0x66   :  { %1017 = vmatpush.bf16.msrb.mxu0 %v1725_v40 }
  0x6a   :  { %1018 = vmatpush.bf16.msrb.mxu0 %v1724_v44  ;;  %v1653_v44 = vld [vmem:[%s2487_s0 + $0xb4] sm:$0xf] }
  0x6e   :  { %1019 = vmatpush.bf16.msrb.mxu0 %v1723_v45  ;;  %v1279_v45 = vld [vmem:[%s2487_s0 + $0xcc] sm:$0xf0] }
  0x71   :  { %863 = vmatmul.bf16.gmra.mxu3 %v1382_v56  ;;  %931 = vmatmul.bf16.gmra.mxu0 %v1222_v57 }
  0x72   :  { %1020 = vmatpush.bf16.msrb.mxu0 %v1722_v46  ;;  %v1285_v46 = vld [vmem:[%s2487_s0 + $0xb8] sm:$0xf] }
  0x73   :  { %961 = vmatmul.bf16.gmra.mxu2 %v1390_v58  ;;  %912 = vmatmul.bf16.gmra.mxu1 %v1386_v59  ;;  %v1286_v56 = vor.u32 %v1657_v47, %v1285_v46  ;;  %v1294_v58 = vor.u32 %v1658_v49, %v1293_v48  ;;  %v1290_v59 = vor.u32 %v1654_v50, %v1287_v51 }
  0x76   :  { %1021 = vmatpush.bf16.msrb.mxu0 %v1721_v55  ;;  %v1282_v55 = vor.u32 %v1653_v44, %v1279_v45 }
  0x7a   :  { %1022 = vmatpush.bf16.msrb.mxu0 %v1720_v60 }
  0x7e   :  { %1023 = vmatpush.bf16.msrb.mxu0 %v1719_v61 }
  0x81   :  { %975 = vmatmul.bf16.vlgmr.msrb.gmra.mxu3 %v1198_v9  ;;  %1024 = vmatmul.bf16.vlgmr.msrb.gmra.mxu0 %v1202_v11  ;;  %v1660_v9 = vld [vmem:[%s2487_s0 + $0xec] sm:$0xf]  ;;  %v1307_v11 = vld [vmem:[%s2487_s0 + $0x104] sm:$0xf0] }
  0x82   :  { %v1310_v23 = vor.u32 %v1660_v9, %v1307_v11  ;;  %v1377_v9 = vld [vmem:[%s2487_s0 + $0x168] sm:$0xf]  ;;  %v1679_v11 = vld [vmem:[%s2487_s0 + $0x180] sm:$0xf0] }
  0x83   :  { %1623 = vmatmul.msk.bf16.vlgmr.msrb.gmra.mxu2 %vm795_vm0, %v1210_v12  ;;  %1073 = vmatmul.bf16.vlgmr.msrb.gmra.mxu1 %v1206_v14  ;;  %v1313_v12 = vld [vmem:[%s2487_s0 + $0xf0] sm:$0xf]  ;;  %v1664_v14 = vld [vmem:[%s2487_s0 + $0x108] sm:$0xf0] }
  0x91   :  { %980 = vmatmul.bf16.gmra.mxu3 %v1226_v7  ;;  %1029 = vmatmul.bf16.gmra.mxu0 %v1230_v24  ;;  %v1314_v7 = vor.u32 %v1664_v14, %v1313_v12  ;;  %v1675_v12 = vld [vmem:[%s2487_s0 + $0x164] sm:$0xf]  ;;  %v1371_v14 = vld [vmem:[%s2487_s0 + $0x17c] sm:$0xf0] }
  0x93   :  { %1624 = vmatmul.msk.bf16.gmra.mxu2 %vm795_vm0, %v1238_v25  ;;  %1078 = vmatmul.bf16.gmra.mxu1 %v1234_v26  ;;  %v1322_v25 = vor.u32 %v1665_v17, %v1321_v15  ;;  %v1318_v26 = vor.u32 %v1661_v18, %v1315_v1 }
  0x9e   :  { %v2230_v34 = vpop.f32.mrf.mxu0 }
  0xa0   :  { %v888_v36 = vpop.f32.mrf.mxu1 }
  0xa1   :  { %985 = vmatmul.bf16.gmra.mxu3 %v1254_v33  ;;  %1034 = vmatmul.bf16.gmra.mxu0 %v1258_v16 }
  0xa3   :  { %1625 = vmatmul.msk.bf16.gmra.mxu2 %vm795_vm0, %v1266_v19  ;;  %1083 = vmatmul.bf16.gmra.mxu1 %v1262_v35  ;;  %v1667_v19 = vld [vmem:[%s2487_s0 + $0x124] sm:$0xf]  ;;  %v1335_v35 = vld [vmem:[%s2487_s0 + $0x13c] sm:$0xf0] }
  0xa4   :  { %v839_v38 = vpop.f32.mrf.mxu3  ;;  %v1338_v47 = vor.u32 %v1667_v19, %v1335_v35  ;;  %v1681_v19 = vld [vmem:[%s2487_s0 + $0x194] sm:$0xf]  ;;  %v1391_v35 = vld [vmem:[%s2487_s0 + $0x1ac] sm:$0xf0] }
  0xa5   :  { %v840_v39 = vadd.f32 %v2235_v37, %v839_v38  ;;  %v1671_v38 = vld [vmem:[%s2487_s0 + $0x140] sm:$0xf0] }
  0xa6   :  { %v937_v40 = vpop.f32.mrf.mxu2  ;;  %v2239_v41 = vpop.f32.mrf.mxu0 }
  0xa7   :  { %v889_v42 = vadd.f32 %v888_v36, %v840_v39  ;;  %v1341_v36 = vld [vmem:[%s2487_s0 + $0x128] sm:$0xf]  ;;  %v1349_v39 = vld [vmem:[%s2487_s0 + $0x130] sm:$0xf] }
  0xa8   :  { %v890_v22 = vpop.f32.mrf.mxu1  ;;  %v1342_v48 = vor.u32 %v1671_v38, %v1341_v36  ;;  %v1397_v36 = vld [vmem:[%s2487_s0 + $0x198] sm:$0xf]  ;;  %v1685_v38 = vld [vmem:[%s2487_s0 + $0x1b0] sm:$0xf0] }
  0xa9   :  { %v2241_v43 = vadd.f32 %v937_v40, %v889_v42  ;;  %v1672_v40 = vld [vmem:[%s2487_s0 + $0x148] sm:$0xf0] }
  0xaa   :  { %v1668_v42 = vld [vmem:[%s2487_s0 + $0x12c] sm:$0xf]  ;;  %v1350_v50 = vor.u32 %v1672_v40, %v1349_v39  ;;  %v1405_v39 = vld [vmem:[%s2487_s0 + $0x1a0] sm:$0xf]  ;;  %v1686_v40 = vld [vmem:[%s2487_s0 + $0x1b8] sm:$0xf0] }
  0xac   :  { %v841_v52 = vpop.f32.mrf.mxu3 }
  0xad   :  { %v842_v53 = vadd.f32 %v2235_v37, %v841_v52 }
  0xae   :  { %v939_v54 = vpop.f32.mrf.mxu2  ;;  %v2268_v57 = vpop.f32.mrf.mxu0 }
  0xaf   :  { %v891_v60 = vadd.f32 %v890_v22, %v842_v53  ;;  %v1343_v22 = vld [vmem:[%s2487_s0 + $0x144] sm:$0xf0] }
  0xb0   :  { %v893_v61 = vpop.f32.mrf.mxu1  ;;  %v1346_v51 = vor.u32 %v1668_v42, %v1343_v22  ;;  %v1682_v42 = vld [vmem:[%s2487_s0 + $0x19c] sm:$0xf]  ;;  %v1399_v22 = vld [vmem:[%s2487_s0 + $0x1b4] sm:$0xf0] }
  0xb1   :  { %v2270_v62 = vadd.f32 %v939_v54, %v891_v60  ;;  %990 = vmatmul.bf16.gmra.mxu3 %v1282_v55  ;;  %1039 = vmatmul.bf16.gmra.mxu0 %v1286_v56 }
  0xb3   :  { %1626 = vmatmul.msk.bf16.gmra.mxu2 %vm795_vm0, %v1294_v58  ;;  %1088 = vmatmul.bf16.gmra.mxu1 %v1290_v59 }
  0xb4   :  { %v844_v63 = vpop.f32.mrf.mxu3 }
  0xb5   :  { %v845_v0 = vadd.f32 %v2235_v37, %v844_v63 }
  0xb6   :  { %v942_v2 = vpop.f32.mrf.mxu2  ;;  %v2274_v3 = vpop.f32.mrf.mxu0 }
  0xb7   :  { %v894_v5 = vadd.f32 %v893_v61, %v845_v0  ;;  %v1674_v0 = vld [vmem:[%s2487_s0 + $0x15c] sm:$0xf] }
  0xb8   :  { %v895_v6 = vpop.f32.mrf.mxu1 }
  0xb9   :  { %v2276_v8 = vadd.f32 %v942_v2, %v894_v5  ;;  %v1363_v2 = vld [vmem:[%s2487_s0 + $0x174] sm:$0xf0]  ;;  %v1369_v5 = vld [vmem:[%s2487_s0 + $0x160] sm:$0xf] }
  0xba   :  { %v1366_v1 = vor.u32 %v1674_v0, %v1363_v2 }
  0xbc   :  { %v846_v20 = vpop.f32.mrf.mxu3 }
  0xbd   :  { %v847_v21 = vadd.f32 %v2235_v37, %v846_v20 }
  0xbe   :  { %v944_v4 = vpop.f32.mrf.mxu2  ;;  %v2303_v24 = vpop.f32.mrf.mxu0 }
  0xbf   :  { %v896_v27 = vadd.f32 %v895_v6, %v847_v21  ;;  %v1678_v6 = vld [vmem:[%s2487_s0 + $0x178] sm:$0xf0] }
  0xc0   :  { %v898_v28 = vpop.f32.mrf.mxu1  ;;  %v1370_v20 = vor.u32 %v1678_v6, %v1369_v5 }
  0xc1   :  { %v2305_v29 = vadd.f32 %v944_v4, %v896_v27  ;;  %995 = vmatmul.bf16.gmra.mxu3 %v1310_v23  ;;  %1044 = vmatmul.bf16.gmra.mxu0 %v1314_v7  ;;  %v1378_v4 = vor.u32 %v1679_v11, %v1377_v9  ;;  %v1374_v23 = vor.u32 %v1675_v12, %v1371_v14 }
  0xc3   :  { %1627 = vmatmul.msk.bf16.gmra.mxu2 %vm795_vm0, %v1322_v25  ;;  %1093 = vmatmul.bf16.gmra.mxu1 %v1318_v26 }
  0xc4   :  { %v849_v30 = vpop.f32.mrf.mxu3 }
  0xc5   :  { %v850_v10 = vadd.f32 %v2235_v37, %v849_v30 }
  0xc6   :  { %v947_v31 = vpop.f32.mrf.mxu2  ;;  %v2309_v32 = vpop.f32.mrf.mxu0 }
  0xc7   :  { %v899_v13 = vadd.f32 %v898_v28, %v850_v10 }
  0xc8   :  { %v900_v33 = vpop.f32.mrf.mxu1 }
  0xc9   :  { %v2311_v16 = vadd.f32 %v947_v31, %v899_v13 }
  0xcc   :  { %v851_v44 = vpop.f32.mrf.mxu3 }
  0xcd   :  { %v852_v45 = vadd.f32 %v2235_v37, %v851_v44 }
  0xce   :  { %v949_v46 = vpop.f32.mrf.mxu2  ;;  %v2338_v49 = vpop.f32.mrf.mxu0 }
  0xcf   :  { %v901_v52 = vadd.f32 %v900_v33, %v852_v45 }
  0xd0   :  { %v903_v53 = vpop.f32.mrf.mxu1 }
  0xd1   :  { %v2340_v54 = vadd.f32 %v949_v46, %v901_v52  ;;  %1000 = vmatmul.bf16.gmra.mxu3 %v1338_v47  ;;  %1049 = vmatmul.bf16.gmra.mxu0 %v1342_v48  ;;  %v1394_v47 = vor.u32 %v1681_v19, %v1391_v35  ;;  %v1398_v48 = vor.u32 %v1685_v38, %v1397_v36 }
  0xd2   :  { %v1402_v52 = vor.u32 %v1682_v42, %v1399_v22 }
  0xd3   :  { %1628 = vmatmul.msk.bf16.gmra.mxu2 %vm795_vm0, %v1350_v50  ;;  %1098 = vmatmul.bf16.gmra.mxu1 %v1346_v51  ;;  %v1406_v51 = vor.u32 %v1686_v40, %v1405_v39  ;;  %v835_v39 = vadd.f32 %v2235_v37, %v2268_v57 }
  0xd4   :  { %v854_v55 = vpop.f32.mrf.mxu3 }
  0xd5   :  { %v855_v56 = vadd.f32 %v2235_v37, %v854_v55  ;;  %v884_v42 = vadd.f32 %v2338_v49, %v835_v39 }
  0xd6   :  { %v952_v58 = vpop.f32.mrf.mxu2  ;;  %v2344_v59 = vpop.f32.mrf.mxu0 }
  0xd7   :  { %v904_v60 = vadd.f32 %v903_v53, %v855_v56 }
  0xd8   :  { %v905_v61 = vpop.f32.mrf.mxu1 }
  0xd9   :  { %v2346_v63 = vadd.f32 %v952_v58, %v904_v60 }
  0xdc   :  { %v856_v15 = vpop.f32.mrf.mxu3 }
  0xdd   :  { %v857_v17 = vadd.f32 %v2235_v37, %v856_v15  ;;  %v830_v15 = vadd.f32 %v2235_v37, %v2230_v34 }
  0xde   :  { %v954_v18 = vpop.f32.mrf.mxu2  ;;  %v927_v21 = vpop.f32.mrf.mxu0 }
  0xdf   :  { %v906_v7 = vadd.f32 %v905_v61, %v857_v17 }
  0xe0   :  { %v908_v25 = vpop.f32.mrf.mxu1 }
  0xe1   :  { %v2373_v26 = vadd.f32 %v954_v18, %v906_v7  ;;  %1005 = vmatmul.bf16.gmra.mxu3 %v1366_v1  ;;  %1054 = vmatmul.bf16.gmra.mxu0 %v1370_v20  ;;  %v879_v1 = vadd.f32 %v2303_v24, %v830_v15 }
  0xe3   :  { %1629 = vmatmul.msk.bf16.gmra.mxu2 %vm795_vm0, %v1378_v4  ;;  %1103 = vmatmul.bf16.gmra.mxu1 %v1374_v23  ;;  %v928_v4 = vadd.f32 %v927_v21, %v879_v1 }
  0xe4   :  { %v859_v27 = vpop.f32.mrf.mxu3 }
  0xe5   :  { %v860_v28 = vadd.f32 %v2235_v37, %v859_v27 }
  0xe6   :  { %v957_v30 = vpop.f32.mrf.mxu2  ;;  %v929_v10 = vpop.f32.mrf.mxu0 }
  0xe7   :  { %v909_v31 = vadd.f32 %v908_v25, %v860_v28  ;;  %v832_v28 = vadd.f32 %v2235_v37, %v2239_v41 }
  0xe8   :  { %v910_v13 = vpop.f32.mrf.mxu1 }
  0xe9   :  { %v2377_v33 = vadd.f32 %v957_v30, %v909_v31 }
  0xec   :  { %v861_v44 = vpop.f32.mrf.mxu3 }
  0xed   :  { %v862_v45 = vadd.f32 %v2235_v37, %v861_v44 }
  0xee   :  { %v959_v46 = vpop.f32.mrf.mxu2  ;;  %v932_v50 = vpop.f32.mrf.mxu0 }
  0xef   :  { %v911_v53 = vadd.f32 %v910_v13, %v862_v45  ;;  %v881_v13 = vadd.f32 %v2309_v32, %v832_v28  ;;  %v933_v32 = vadd.f32 %v932_v50, %v884_v42 }
  0xf0   :  { %v913_v55 = vpop.f32.mrf.mxu1 }
  0xf1   :  { %v2404_v56 = vadd.f32 %v959_v46, %v911_v53  ;;  %1010 = vmatmul.bf16.gmra.mxu3 %v1394_v47  ;;  %1059 = vmatmul.bf16.gmra.mxu0 %v1398_v48  ;;  %v930_v34 = vadd.f32 %v929_v10, %v881_v13  ;;  %v837_v48 = vadd.f32 %v2235_v37, %v2274_v3 }
  0xf3   :  { %1630 = vmatmul.msk.bf16.gmra.mxu2 %vm795_vm0, %v1406_v51  ;;  %1108 = vmatmul.bf16.gmra.mxu1 %v1402_v52  ;;  %v886_v52 = vadd.f32 %v2344_v59, %v837_v48 }
  0xf4   :  { %v864_v58 = vpop.f32.mrf.mxu3 }
  0xf5   :  { %v865_v60 = vadd.f32 %v2235_v37, %v864_v58 }
  0xf6   :  { %v962_v61 = vpop.f32.mrf.mxu2  ;;  %v934_v0 = vpop.f32.mrf.mxu0 }
  0xf7   :  { %v914_v2 = vadd.f32 %v913_v55, %v865_v60  ;;  %v935_v49 = vadd.f32 %v934_v0, %v886_v52 }
  0xf8   :  { %v915_v5 = vpop.f32.mrf.mxu1 }
  0xf9   :  { %v2408_v6 = vadd.f32 %v962_v61, %v914_v2 }
  0xfc   :  { %v866_v9 = vpop.f32.mrf.mxu3 }
  0xfd   :  { %v867_v11 = vadd.f32 %v2235_v37, %v866_v9 }
  0xfe   :  { %v964_v12 = vpop.f32.mrf.mxu2  ;;  %v1025_v14 = vpop.f32.mrf.mxu0 }
  0xff   :  { %v916_v17 = vadd.f32 %v915_v5, %v867_v11 }
 0x100   :  { %v1074_v18 = vpop.f32.mrf.mxu1 }
 0x101   :  { %v2414_v20 = vadd.f32 %v964_v12, %v916_v17 }
 0x104   :  { %v976_v23 = vpop.f32.mrf.mxu3 }
 0x105   :  { %v977_v7 = vadd.f32 %v976_v23, %v928_v4 }
 0x106   :  { %v1123_v25 = vpop.f32.mrf.mxu2  ;;  %v1027_v27 = vpop.f32.mrf.mxu0 }
 0x107   :  { %v1026_v30 = vadd.f32 %v1025_v14, %v977_v7 }
 0x108   :  { %v1076_v31 = vpop.f32.mrf.mxu1 }
 0x109   :  { %v1075_v19 = vadd.f32 %v1074_v18, %v1026_v30 }
 0x10b   :  { %v1124_v35 = vadd.f32 %v1123_v25, %v1075_v19 }
 0x10c   :  { %v978_v36 = vpop.f32.mrf.mxu3 }
 0x10d   :  { %1163 = vst [vmem:[%s2488_s3] sm:$0xff] %v1124_v35  ;;  %v979_v24 = vadd.f32 %v978_v36, %v930_v34 }
 0x10e   :  { %v1125_v21 = vpop.f32.mrf.mxu2  ;;  %v1030_v38 = vpop.f32.mrf.mxu0 }
 0x10f   :  { %v1028_v40 = vadd.f32 %v1027_v27, %v979_v24 }
 0x110   :  { %v1079_v41 = vpop.f32.mrf.mxu1 }
 0x111   :  { %v1077_v22 = vadd.f32 %v1076_v31, %v1028_v40 }
 0x113   :  { %v1126_v44 = vadd.f32 %v1125_v21, %v1077_v22 }
 0x114   :  { %v981_v10 = vpop.f32.mrf.mxu3 }
 0x115   :  { %1164 = vst [vmem:[%s2488_s3 + $0x8] sm:$0xff] %v1126_v44  ;;  %v982_v45 = vadd.f32 %v981_v10, %v933_v32 }
 0x116   :  { %v1128_v46 = vpop.f32.mrf.mxu2  ;;  %v1032_v47 = vpop.f32.mrf.mxu0 }
 0x117   :  { %v1031_v51 = vadd.f32 %v1030_v38, %v982_v45 }
 0x118   :  { %v1081_v57 = vpop.f32.mrf.mxu1 }
 0x119   :  { %v1080_v53 = vadd.f32 %v1079_v41, %v1031_v51 }
 0x11b   :  { %v1129_v55 = vadd.f32 %v1128_v46, %v1080_v53 }
 0x11c   :  { %v983_v50 = vpop.f32.mrf.mxu3 }
 0x11d   :  { %1165 = vst [vmem:[%s2488_s3 + $0x10] sm:$0xff] %v1129_v55  ;;  %v984_v58 = vadd.f32 %v983_v50, %v935_v49 }
 0x11e   :  { %v1130_v60 = vpop.f32.mrf.mxu2  ;;  %v1035_v61 = vpop.f32.mrf.mxu0 }
 0x11f   :  { %v1033_v2 = vadd.f32 %v1032_v47, %v984_v58 }
 0x120   :  { %v1084_v5 = vpop.f32.mrf.mxu1 }
 0x121   :  { %v1082_v9 = vadd.f32 %v1081_v57, %v1033_v2 }
 0x123   :  { %v1131_v11 = vadd.f32 %v1130_v60, %v1082_v9 }
 0x124   :  { %v986_v37 = vpop.f32.mrf.mxu3 }
 0x125   :  { %1166 = vst [vmem:[%s2488_s3 + $0x18] sm:$0xff] %v1131_v11  ;;  %v987_v3 = vadd.f32 %v986_v37, %v2241_v43 }
 0x126   :  { %v1133_v59 = vpop.f32.mrf.mxu2  ;;  %v1037_v0 = vpop.f32.mrf.mxu0 }
 0x127   :  { %v1036_v12 = vadd.f32 %v1035_v61, %v987_v3 }
 0x128   :  { %v1086_v14 = vpop.f32.mrf.mxu1 }
 0x129   :  { %v1085_v15 = vadd.f32 %v1084_v5, %v1036_v12 }
 0x12b   :  { %v1134_v17 = vadd.f32 %v1133_v59, %v1085_v15 }
 0x12c   :  { %v988_v18 = vpop.f32.mrf.mxu3 }
 0x12d   :  { %1167 = vst [vmem:[%s2488_s3 + $0x20] sm:$0xff] %v1134_v17  ;;  %v989_v1 = vadd.f32 %v988_v18, %v2270_v62 }
 0x12e   :  { %v1135_v4 = vpop.f32.mrf.mxu2  ;;  %v1040_v23 = vpop.f32.mrf.mxu0 }
 0x12f   :  { %v1038_v7 = vadd.f32 %v1037_v0, %v989_v1 }
 0x130   :  { %v1089_v25 = vpop.f32.mrf.mxu1 }
 0x131   :  { %v1087_v27 = vadd.f32 %v1086_v14, %v1038_v7 }
 0x133   :  { %v1136_v28 = vadd.f32 %v1135_v4, %v1087_v27 }
 0x134   :  { %v991_v43 = vpop.f32.mrf.mxu3 }
 0x135   :  { %1168 = vst [vmem:[%s2488_s3 + $0x28] sm:$0xff] %v1136_v28  ;;  %v992_v30 = vadd.f32 %v991_v43, %v2276_v8 }
 0x136   :  { %v1138_v31 = vpop.f32.mrf.mxu2  ;;  %v1042_v13 = vpop.f32.mrf.mxu0 }
 0x137   :  { %v1041_v19 = vadd.f32 %v1040_v23, %v992_v30 }
 0x138   :  { %v1091_v34 = vpop.f32.mrf.mxu1 }
 0x139   :  { %v1090_v35 = vadd.f32 %v1089_v25, %v1041_v19 }
 0x13b   :  { %v1139_v36 = vadd.f32 %v1138_v31, %v1090_v35 }
 0x13c   :  { %v993_v62 = vpop.f32.mrf.mxu3 }
 0x13d   :  { %1169 = vst [vmem:[%s2488_s3 + $0x30] sm:$0xff] %v1139_v36  ;;  %v994_v24 = vadd.f32 %v993_v62, %v2305_v29 }
 0x13e   :  { %v1140_v21 = vpop.f32.mrf.mxu2  ;;  %v1045_v38 = vpop.f32.mrf.mxu0 }
 0x13f   :  { %v1043_v39 = vadd.f32 %v1042_v13, %v994_v24 }
 0x140   :  { %v1094_v40 = vpop.f32.mrf.mxu1 }
 0x141   :  { %v1092_v41 = vadd.f32 %v1091_v34, %v1043_v39 }
 0x143   :  { %v1141_v42 = vadd.f32 %v1140_v21, %v1092_v41 }
 0x144   :  { %v996_v8 = vpop.f32.mrf.mxu3 }
 0x145   :  { %1170 = vst [vmem:[%s2488_s3 + $0x38] sm:$0xff] %v1141_v42  ;;  %v997_v22 = vadd.f32 %v996_v8, %v2311_v16 }
 0x146   :  { %v1143_v32 = vpop.f32.mrf.mxu2  ;;  %v1047_v44 = vpop.f32.mrf.mxu0 }
 0x147   :  { %v1046_v10 = vadd.f32 %v1045_v38, %v997_v22 }
 0x148   :  { %v1096_v45 = vpop.f32.mrf.mxu1 }
 0x149   :  { %v1095_v46 = vadd.f32 %v1094_v40, %v1046_v10 }
 0x14b   :  { %v1144_v47 = vadd.f32 %v1143_v32, %v1095_v46 }
 0x14c   :  { %v998_v29 = vpop.f32.mrf.mxu3 }
 0x14d   :  { %1171 = vst [vmem:[%s2488_s3 + $0x40] sm:$0xff] %v1144_v47  ;;  %v999_v48 = vadd.f32 %v998_v29, %v2340_v54 }
 0x14e   :  { %v1145_v51 = vpop.f32.mrf.mxu2  ;;  %v1050_v57 = vpop.f32.mrf.mxu0 }
 0x14f   :  { %v1048_v52 = vadd.f32 %v1047_v44, %v999_v48 }
 0x150   :  { %v1099_v53 = vpop.f32.mrf.mxu1 }
 0x151   :  { %v1097_v49 = vadd.f32 %v1096_v45, %v1048_v52 }
 0x153   :  { %v1146_v55 = vadd.f32 %v1145_v51, %v1097_v49 }
 0x154   :  { %v1001_v16 = vpop.f32.mrf.mxu3 }
 0x155   :  { %1172 = vst [vmem:[%s2488_s3 + $0x48] sm:$0xff] %v1146_v55  ;;  %v1002_v50 = vadd.f32 %v1001_v16, %v2346_v63 }
 0x156   :  { %v1148_v58 = vpop.f32.mrf.mxu2  ;;  %v1052_v60 = vpop.f32.mrf.mxu0 }
 0x157   :  { %v1051_v61 = vadd.f32 %v1050_v57, %v1002_v50 }
 0x158   :  { %v1101_v2 = vpop.f32.mrf.mxu1 }
 0x159   :  { %v1100_v5 = vadd.f32 %v1099_v53, %v1051_v61 }
 0x15b   :  { %v1149_v9 = vadd.f32 %v1148_v58, %v1100_v5 }
 0x15c   :  { %v1003_v54 = vpop.f32.mrf.mxu3 }
 0x15d   :  { %1173 = vst [vmem:[%s2488_s3 + $0x50] sm:$0xff] %v1149_v9  ;;  %v1004_v11 = vadd.f32 %v1003_v54, %v2373_v26 }
 0x15e   :  { %v1150_v37 = vpop.f32.mrf.mxu2  ;;  %v1055_v59 = vpop.f32.mrf.mxu0 }
 0x15f   :  { %v1053_v3 = vadd.f32 %v1052_v60, %v1004_v11 }
 0x160   :  { %v1104_v12 = vpop.f32.mrf.mxu1 }
 0x161   :  { %v1102_v0 = vadd.f32 %v1101_v2, %v1053_v3 }
 0x163   :  { %v1151_v14 = vadd.f32 %v1150_v37, %v1102_v0 }
 0x164   :  { %v1006_v63 = vpop.f32.mrf.mxu3 }
 0x165   :  { %1174 = vst [vmem:[%s2488_s3 + $0x58] sm:$0xff] %v1151_v14  ;;  %v1007_v15 = vadd.f32 %v1006_v63, %v2377_v33 }
 0x166   :  { %v1153_v17 = vpop.f32.mrf.mxu2  ;;  %v1057_v4 = vpop.f32.mrf.mxu0 }
 0x167   :  { %v1056_v18 = vadd.f32 %v1055_v59, %v1007_v15 }
 0x168   :  { %v1106_v7 = vpop.f32.mrf.mxu1 }
 0x169   :  { %v1105_v1 = vadd.f32 %v1104_v12, %v1056_v18 }
 0x16b   :  { %v1154_v23 = vadd.f32 %v1153_v17, %v1105_v1 }
 0x16c   :  { %v1008_v26 = vpop.f32.mrf.mxu3 }
 0x16d   :  { %1175 = vst [vmem:[%s2488_s3 + $0x60] sm:$0xff] %v1154_v23  ;;  %v1009_v25 = vadd.f32 %v1008_v26, %v2404_v56 }
 0x16e   :  { %v1155_v27 = vpop.f32.mrf.mxu2  ;;  %v1060_v31 = vpop.f32.mrf.mxu0 }
 0x16f   :  { %v1058_v28 = vadd.f32 %v1057_v4, %v1009_v25 }
 0x170   :  { %v1109_v19 = vpop.f32.mrf.mxu1 }
 0x171   :  { %v1107_v43 = vadd.f32 %v1106_v7, %v1058_v28 }
 0x173   :  { %v1156_v30 = vadd.f32 %v1155_v27, %v1107_v43 }
 0x174   :  { %v1011_v13 = vpop.f32.mrf.mxu3 }
 0x175   :  { %1176 = vst [vmem:[%s2488_s3 + $0x68] sm:$0xff] %v1156_v30  ;;  %v1012_v33 = vadd.f32 %v1011_v13, %v2408_v6 }
 0x176   :  { %v1158_v35 = vpop.f32.mrf.mxu2  ;;  %v1062_v21 = vpop.f32.mrf.mxu0 }
 0x177   :  { %v1061_v34 = vadd.f32 %v1060_v31, %v1012_v33 }
 0x178   :  { %v1111_v39 = vpop.f32.mrf.mxu1 }
 0x179   :  { %v1110_v36 = vadd.f32 %v1109_v19, %v1061_v34 }
 0x17b   :  { %v1159_v62 = vadd.f32 %v1158_v35, %v1110_v36 }
 0x17c   :  { %v1013_v24 = vpop.f32.mrf.mxu3 }
 0x17d   :  { %1177 = vst [vmem:[%s2488_s3 + $0x70] sm:$0xff] %v1159_v62  ;;  %v1014_v56 = vadd.f32 %v1013_v24, %v2414_v20 }
 0x17e   :  { %v1160_v41 = vpop.f32.mrf.mxu2 }
 0x17f   :  { %v1063_v38 = vadd.f32 %v1062_v21, %v1014_v56 }
 0x181   :  { %v1112_v40 = vadd.f32 %v1111_v39, %v1063_v38 }
 0x183   :  { %v1161_v42 = vadd.f32 %v1160_v41, %v1112_v40 }
 0x185   :  { %1178 = vst [vmem:[%s2488_s3 + $0x78] sm:$0xff] %v1161_v42 }

// kernel: _lambda_.9
= control target key start
LH: loop header
LB: loop body
LE: loop exit
PB: predicated region body
PF: predicated region fallthrough
CT: control target
= control target key end

     0   :  { %s1407_s18 = smov 0   ;;  %s1696_s0 = inlined_call_operand.vmem [shape: bf16[512,144], index: 0, kind: input, shape index: {}]   ;;  %s1697_s1 = inlined_call_operand.vmem [shape: bf16[144,128], index: 1, kind: input, shape index: {}]   ;;  %s1698_s2 = inlined_call_operand.vmem [shape: f32[1,128], index: 2, kind: input, shape index: {}]   ;;  %s1699_s3 = inlined_call_operand.vmem [shape: bf16[128,128], index: 3, kind: input, shape index: {}]   ;;  %s1700_s4 = inlined_call_operand.vmem [shape: f32[1,128], index: 4, kind: input, shape index: {}]   ;;  %s1701_s5 = inlined_call_operand.vmem [shape: f32[512,128], index: 5, kind: output, shape index: {}]  }
   0x1 LB: > { %s1068_s19 = sadd.s32 4294967295, %s1375_s18   ;;  %p1072_p0 = scmp.ge.s32.totalorder %s1375_s18, 1  ;;  %s1375_s18 = sphi %s1407_s18, %s15_s18  }
   0x2   : > { %p189_p1 = scmp.lt.s32.totalorder %s1375_s18, 3 }
   0x4   : > { %p190_p2 = pnand %p1072_p0, %p189_p1 }
   0x5   : > { %s1073_s24 = sshll.u32 (!%p190_p2), %s1068_s19, 5 }
   0x6   : > { %193 = sbr.rel (%p190_p2) target bundleno = 541 (0x21d), region = 40  ;;  %p219_p3 = scmp.lt.s32.totalorder (!%p190_p2), %s1073_s24, 63 }
   0xb   : > { %v1332_v0 = vld [vmem:[%s1697_s1 + $0x38] sm:$0xff]  ;;  %v1333_v1 = vld [vmem:[%s1697_s1 + $0x40] sm:$0xff]  ;;  %v1331_v2 = vld [vmem:[%s1697_s1 + $0x30] sm:$0xff]  ;;  %s1703_s24 = smov (!%p219_p3, %s1073_s24), 63  ;;  %vm484_vm0 = vcmask 130048  }
   0xc   : > { %533 = vmatpush.bf16.msra.mxu0 %v1332_v0  ;;  %629 = vmatpush.bf16.msra.mxu1 %v1333_v1  ;;  %s1292_s27 = sshll.u32 %s1703_s24, 3  ;;  %v1330_v3 = vld [vmem:[%s1697_s1 + $0x28] sm:$0xff]  ;;  %v1329_v7 = vld [vmem:[%s1697_s1 + $0x20] sm:$0xff]  ;;  %v1328_v8 = vld [vmem:[%s1697_s1 + $0x18] sm:$0xff] }
   0xd   : > { %1342 = vmatpush.bf16.msra.mxu3 %v1332_v0  ;;  %s1432_s30 = scalar_lea.vmem %s1696_s0, %s1292_s27  ;;  %v1327_v9 = vld [vmem:[%s1697_s1 + $0x10] sm:$0xff]  ;;  %v1326_v13 = vld [vmem:[%s1697_s1 + $0x8] sm:$0xff]  ;;  %v1325_v14 = vld [vmem:[%s1697_s1] sm:$0xff]  ;;  %s1600_s19 = scalar_lea.vmem %s1701_s5, %s1292_s27 }
   0xe   : > { %v1293_v4 = vld [vmem:[%s1432_s30 + $0x4] sm:$0xf]  ;;  %v1082_v5 = vld [vmem:[%s1432_s30 + $0x8] sm:$0xf0]  ;;  %v1295_v10 = vld [vmem:[%s1432_s30 + $0x14] sm:$0xf] }
   0xf   : > { %v1085_v6 = vor.u32 %v1293_v4, %v1082_v5  ;;  %v1090_v11 = vld [vmem:[%s1432_s30 + $0x18] sm:$0xf0]  ;;  %v1080_v15 = vld [vmem:[%s1432_s30] sm:$0xf]  ;;  %v1294_v16 = vld [vmem:[%s1432_s30 + $0x4] sm:$0xf0] }
  0x10   : > { %534 = vmatpush.bf16.msra.mxu0 %v1331_v2  ;;  %v1093_v12 = vor.u32 %v1295_v10, %v1090_v11  ;;  %v1081_v17 = vor.u32 %v1294_v16, %v1080_v15  ;;  %v1297_v18 = vld [vmem:[%s1432_s30 + $0x24] sm:$0xf]  ;;  %v1098_v19 = vld [vmem:[%s1432_s30 + $0x28] sm:$0xf0]  ;;  %v1088_v21 = vld [vmem:[%s1432_s30 + $0x10] sm:$0xf] }
  0x11   : > { %1343 = vmatpush.bf16.msra.mxu3 %v1331_v2  ;;  %1242 = vmatmul.msk.bf16.vlgmr.msra.gmra.mxu1 %vm484_vm0, %v1085_v6  ;;  %v1101_v20 = vor.u32 %v1297_v18, %v1098_v19  ;;  %v1296_v22 = vld [vmem:[%s1432_s30 + $0x14] sm:$0xf0]  ;;  %v1299_v24 = vld [vmem:[%s1432_s30 + $0x34] sm:$0xf]  ;;  %v1106_v25 = vld [vmem:[%s1432_s30 + $0x38] sm:$0xf0] }
  0x12   : > { %v1089_v23 = vor.u32 %v1296_v22, %v1088_v21  ;;  %v1109_v26 = vor.u32 %v1299_v24, %v1106_v25  ;;  %v1096_v27 = vld [vmem:[%s1432_s30 + $0x20] sm:$0xf]  ;;  %v1298_v28 = vld [vmem:[%s1432_s30 + $0x24] sm:$0xf0]  ;;  %v1301_v30 = vld [vmem:[%s1432_s30 + $0x44] sm:$0xf] }
  0x13   : > { %v1097_v29 = vor.u32 %v1298_v28, %v1096_v27  ;;  %v1114_v31 = vld [vmem:[%s1432_s30 + $0x48] sm:$0xf0]  ;;  %v1104_v33 = vld [vmem:[%s1432_s30 + $0x30] sm:$0xf]  ;;  %v1300_v34 = vld [vmem:[%s1432_s30 + $0x34] sm:$0xf0] }
  0x14   : > { %535 = vmatpush.bf16.msra.mxu0 %v1330_v3  ;;  %v1117_v32 = vor.u32 %v1301_v30, %v1114_v31  ;;  %v1105_v35 = vor.u32 %v1300_v34, %v1104_v33  ;;  %v1303_v36 = vld [vmem:[%s1432_s30 + $0x54] sm:$0xf]  ;;  %v1122_v37 = vld [vmem:[%s1432_s30 + $0x58] sm:$0xf0]  ;;  %v1176_v39 = vld [vmem:[%s1432_s30 + $0xc0] sm:$0xf] }
  0x15   : > { %1344 = vmatpush.bf16.msra.mxu3 %v1330_v3  ;;  %v1125_v38 = vor.u32 %v1303_v36, %v1122_v37  ;;  %v1318_v40 = vld [vmem:[%s1432_s30 + $0xc4] sm:$0xf0]  ;;  %v1112_v41 = vld [vmem:[%s1432_s30 + $0x40] sm:$0xf]  ;;  %v1305_v45 = vld [vmem:[%s1432_s30 + $0x64] sm:$0xf] }
  0x16   : > { %v1302_v42 = vld [vmem:[%s1432_s30 + $0x44] sm:$0xf0]  ;;  %v1177_v43 = vor.u32 %v1318_v40, %v1176_v39  ;;  %v1130_v46 = vld [vmem:[%s1432_s30 + $0x68] sm:$0xf0]  ;;  %v1184_v48 = vld [vmem:[%s1432_s30 + $0xd0] sm:$0xf] }
  0x17   : > { %v1113_v44 = vor.u32 %v1302_v42, %v1112_v41  ;;  %v1133_v47 = vor.u32 %v1305_v45, %v1130_v46  ;;  %v1320_v49 = vld [vmem:[%s1432_s30 + $0xd4] sm:$0xf0]  ;;  %v1120_v50 = vld [vmem:[%s1432_s30 + $0x50] sm:$0xf]  ;;  %v1307_v56 = vld [vmem:[%s1432_s30 + $0x74] sm:$0xf] }
  0x18   : > { %536 = vmatpush.bf16.msra.mxu0 %v1329_v7  ;;  %v1304_v51 = vld [vmem:[%s1432_s30 + $0x54] sm:$0xf0]  ;;  %v1185_v52 = vor.u32 %v1320_v49, %v1184_v48  ;;  %v1340_v55 = vld [vmem:[%s1699_s3 + $0x30] sm:$0xff]  ;;  %v1138_v57 = vld [vmem:[%s1432_s30 + $0x78] sm:$0xf0] }
  0x19   : > { %1345 = vmatpush.bf16.msra.mxu3 %v1329_v7  ;;  %v1121_v53 = vor.u32 %v1304_v51, %v1120_v50  ;;  %v1341_v54 = vld [vmem:[%s1699_s3 + $0x38] sm:$0xff]  ;;  %v1141_v58 = vor.u32 %v1307_v56, %v1138_v57  ;;  %v1339_v59 = vld [vmem:[%s1699_s3 + $0x28] sm:$0xff]  ;;  %v1192_v60 = vld [vmem:[%s1432_s30 + $0xe0] sm:$0xf] }
  0x1a   : > { %891 = vmatpush.bf16.msra.mxu2 %v1341_v54  ;;  %v1322_v61 = vld [vmem:[%s1432_s30 + $0xe4] sm:$0xf0]  ;;  %v1128_v62 = vld [vmem:[%s1432_s30 + $0x60] sm:$0xf]  ;;  %v1337_v3 = vld [vmem:[%s1699_s3 + $0x18] sm:$0xff] }
  0x1b   : > { %v1306_v63 = vld [vmem:[%s1432_s30 + $0x64] sm:$0xf0]  ;;  %v1193_v0 = vor.u32 %v1322_v61, %v1192_v60  ;;  %v1336_v4 = vld [vmem:[%s1699_s3 + $0x10] sm:$0xff]  ;;  %v1309_v5 = vld [vmem:[%s1432_s30 + $0x84] sm:$0xf] }
  0x1c   : > { %537 = vmatpush.bf16.msra.mxu0 %v1328_v8  ;;  %v1129_v2 = vor.u32 %v1306_v63, %v1128_v62  ;;  %v1146_v6 = vld [vmem:[%s1432_s30 + $0x88] sm:$0xf0]  ;;  %v1200_v10 = vld [vmem:[%s1432_s30 + $0xf0] sm:$0xf]  ;;  %v1324_v11 = vld [vmem:[%s1432_s30 + $0xf4] sm:$0xf0] }
  0x1d   : > { %1346 = vmatpush.bf16.msra.mxu3 %v1328_v8  ;;  %v1149_v7 = vor.u32 %v1309_v5, %v1146_v6  ;;  %v1334_v15 = vld [vmem:[%s1699_s3] sm:$0xff]  ;;  %v1311_v18 = vld [vmem:[%s1432_s30 + $0x94] sm:$0xf]  ;;  %v1154_v19 = vld [vmem:[%s1432_s30 + $0x98] sm:$0xf0] }
  0x1e   : > { %892 = vmatpush.bf16.msra.mxu2 %v1340_v55  ;;  %v1321_v22 = vld [vmem:[%s1432_s30 + $0xe4] sm:$0xf]  ;;  %v1144_v24 = vld [vmem:[%s1432_s30 + $0x80] sm:$0xf]  ;;  %v1310_v25 = vld [vmem:[%s1432_s30 + $0x84] sm:$0xf0] }
  0x1f   : > { %v1538_v27 = vld [vmem:[%s1698_s2] ss:$0 sm:$0xff]  ;;  %v1145_v28 = vor.u32 %v1310_v25, %v1144_v24  ;;  %v1162_v33 = vld [vmem:[%s1432_s30 + $0xa8] sm:$0xf0]  ;;  %v1323_v41 = vld [vmem:[%s1432_s30 + $0xf4] sm:$0xf] }
  0x20   : > { %538 = vmatpush.bf16.msra.mxu0 %v1327_v9  ;;  %v1202_v42 = vld [vmem:[%s1432_s30 + $0xf8] sm:$0xf0]  ;;  %v1160_v63 = vld [vmem:[%s1432_s30 + $0xa0] sm:$0xf] }
  0x21   : > { %1347 = vmatpush.bf16.msra.mxu3 %v1327_v9  ;;  %1243 = vmatmul.msk.bf16.gmra.mxu1 %vm484_vm0, %v1093_v12  ;;  %v1335_v9 = vld [vmem:[%s1699_s3 + $0x8] sm:$0xff]  ;;  %v1136_v12 = vld [vmem:[%s1432_s30 + $0x70] sm:$0xf]  ;;  %v1205_v45 = vor.u32 %v1323_v41, %v1202_v42 }
  0x22   : > { %893 = vmatpush.bf16.msra.mxu2 %v1339_v59 }
  0x24   : > { %539 = vmatpush.bf16.msra.mxu0 %v1326_v13 }
  0x25   : > { %1348 = vmatpush.bf16.msra.mxu3 %v1326_v13  ;;  %v1308_v13 = vld [vmem:[%s1432_s30 + $0x74] sm:$0xf0] }
  0x26   : > { %v1137_v16 = vor.u32 %v1308_v13, %v1136_v12 }
  0x28   : > { %540 = vmatpush.bf16.msra.mxu0 %v1325_v14 }
  0x29   : > { %1349 = vmatpush.bf16.msra.mxu3 %v1325_v14  ;;  %v1201_v14 = vor.u32 %v1324_v11, %v1200_v10  ;;  %v1178_v10 = vld [vmem:[%s1432_s30 + $0xc8] sm:$0xf0] }
  0x2b   : > { %541 = vmatmul.bf16.vlgmr.msra.gmra.mxu0 %v1081_v17 }
  0x2c   : > { %601 = vmatmul.bf16.vlgmr.msra.gmra.mxu3 %v1177_v43  ;;  %v1152_v43 = vld [vmem:[%s1432_s30 + $0x90] sm:$0xf] }
  0x2d   : > { %1350 = vmatpush.bf16.msrb.mxu3 %v1333_v1  ;;  %v1338_v1 = vld [vmem:[%s1699_s3 + $0x20] sm:$0xff] }
  0x2e   : > { %894 = vmatpush.bf16.msra.mxu2 %v1338_v1 }
  0x31   : > { %1244 = vmatmul.msk.bf16.gmra.mxu1 %vm484_vm0, %v1101_v20  ;;  %1351 = vmatpush.bf16.msra.mxu3 %v1341_v54  ;;  %v1157_v20 = vor.u32 %v1311_v18, %v1154_v19  ;;  %v1315_v54 = vld [vmem:[%s1432_s30 + $0xb4] sm:$0xf]  ;;  %v1168_v18 = vld [vmem:[%s1432_s30 + $0xb0] sm:$0xf]  ;;  %v1316_v19 = vld [vmem:[%s1432_s30 + $0xb4] sm:$0xf0] }
  0x32   : > { %895 = vmatpush.bf16.msra.mxu2 %v1337_v3 }
  0x35   : > { %1352 = vmatpush.bf16.msra.mxu3 %v1340_v55  ;;  %v1170_v55 = vld [vmem:[%s1432_s30 + $0xb8] sm:$0xf0] }
  0x36   : > { %896 = vmatpush.bf16.msra.mxu2 %v1336_v4 }
  0x39   : > { %1353 = vmatpush.bf16.msra.mxu3 %v1339_v59 }
  0x3a   : > { %897 = vmatpush.bf16.msra.mxu2 %v1335_v9 }
  0x3b   : > { %546 = vmatmul.bf16.gmra.mxu0 %v1089_v23  ;;  %v1194_v23 = vld [vmem:[%s1432_s30 + $0xe8] sm:$0xf0] }
  0x3c   : > { %606 = vmatmul.bf16.gmra.mxu3 %v1185_v52 }
  0x3d   : > { %1354 = vmatpush.bf16.msra.mxu3 %v1338_v1 }
  0x3e   : > { %898 = vmatpush.bf16.msra.mxu2 %v1334_v15 }
  0x41   : > { %1245 = vmatmul.msk.bf16.gmra.mxu1 %vm484_vm0, %v1109_v26  ;;  %1355 = vmatpush.bf16.msra.mxu3 %v1337_v3  ;;  %v1197_v26 = vor.u32 %v1321_v22, %v1194_v23  ;;  %v1169_v23 = vor.u32 %v1316_v19, %v1168_v18 }
  0x45   : > { %1356 = vmatpush.bf16.msra.mxu3 %v1336_v4 }
  0x49   : > { %1357 = vmatpush.bf16.msra.mxu3 %v1335_v9  ;;  %v1317_v9 = vld [vmem:[%s1432_s30 + $0xc4] sm:$0xf] }
  0x4a   : > { %v1181_v13 = vor.u32 %v1317_v9, %v1178_v10 }
  0x4b   : > { %551 = vmatmul.bf16.gmra.mxu0 %v1097_v29 }
  0x4c   : > { %611 = vmatmul.bf16.gmra.mxu3 %v1193_v0  ;;  %v1314_v0 = vld [vmem:[%s1432_s30 + $0xa4] sm:$0xf0] }
  0x4d   : > { %1358 = vmatpush.bf16.msra.mxu3 %v1334_v15  ;;  %v1161_v4 = vor.u32 %v1314_v0, %v1160_v63 }
  0x51   : > { %1246 = vmatmul.msk.bf16.gmra.mxu1 %vm484_vm0, %v1117_v32  ;;  %v1313_v32 = vld [vmem:[%s1432_s30 + $0xa4] sm:$0xf] }
  0x52   : > { %v1165_v36 = vor.u32 %v1313_v32, %v1162_v33 }
  0x5b   : > { %556 = vmatmul.bf16.gmra.mxu0 %v1105_v35 }
  0x5c   : > { %616 = vmatmul.bf16.gmra.mxu3 %v1201_v14 }
  0x61   : > { %1247 = vmatmul.msk.bf16.gmra.mxu1 %vm484_vm0, %v1125_v38 }
  0x6b   : > { %561 = vmatmul.bf16.gmra.mxu0 %v1113_v44  ;;  %v1312_v44 = vld [vmem:[%s1432_s30 + $0x94] sm:$0xf0] }
  0x6c   : > { %1256 = vmatmul.msk.bf16.vlgmr.msrb.gmra.mxu3 %vm484_vm0, %v1197_v26  ;;  %v1153_v49 = vor.u32 %v1312_v44, %v1152_v43 }
  0x71   : > { %1248 = vmatmul.msk.bf16.gmra.mxu1 %vm484_vm0, %v1133_v47 }
  0x7b   : > { %566 = vmatmul.bf16.gmra.mxu0 %v1121_v53 }
  0x7c   : > { %1257 = vmatmul.msk.bf16.gmra.mxu3 %vm484_vm0, %v1205_v45 }
  0x81   : > { %1249 = vmatmul.msk.bf16.gmra.mxu1 %vm484_vm0, %v1141_v58  ;;  %v1173_v58 = vor.u32 %v1315_v54, %v1170_v55 }
  0x8b   : > { %571 = vmatmul.bf16.gmra.mxu0 %v1129_v2 }
  0x8e   : > { %v631_v8 = vpop.f32.mrf.mxu1 }
  0x91   : > { %1250 = vmatmul.msk.bf16.gmra.mxu1 %vm484_vm0, %v1149_v7 }
  0x96   : > { %v633_v17 = vpop.f32.mrf.mxu1 }
  0x9b   : > { %576 = vmatmul.bf16.gmra.mxu0 %v1137_v16 }
  0x9e   : > { %v636_v21 = vpop.f32.mrf.mxu1 }
  0xa1   : > { %1251 = vmatmul.msk.bf16.gmra.mxu1 %vm484_vm0, %v1157_v20 }
  0xa6   : > { %v638_v30 = vpop.f32.mrf.mxu1 }
  0xa8   : > { %v542_v29 = vpop.f32.mrf.mxu0 }
  0xa9   : > { %v543_v31 = vadd.f32 %v1538_v27, %v542_v29  ;;  %v1319_v29 = vld [vmem:[%s1432_s30 + $0xd4] sm:$0xf] }
  0xab   : > { %581 = vmatmul.bf16.gmra.mxu0 %v1145_v28  ;;  %v632_v34 = vadd.f32 %v631_v8, %v543_v31 }
  0xad   : > { %v743_v40 = vmul.f32 0.2, %v632_v34  ;;  %vm711_vm1 = vcmp.ge.f32.partialorder %v632_v34, 0.0 }
  0xae   : > { %v641_v38 = vpop.f32.mrf.mxu1 }
  0xaf   : > { %v775_v47 = vsel %vm711_vm1, %v632_v34, %v743_v40 }
  0xb0   : > { %v544_v35 = vpop.f32.mrf.mxu0 }
  0xb1   : > { %v545_v37 = vadd.f32 %v1538_v27, %v544_v35  ;;  %1252 = vmatmul.msk.bf16.gmra.mxu1 %vm484_vm0, %v1165_v36 }
  0xb3   : > { %v634_v39 = vadd.f32 %v633_v17, %v545_v37 }
  0xb5   : > { %vm712_vm2 = vcmp.ge.f32.partialorder %v634_v39, 0.0  ;;  %v744_v46 = vmul.f32 0.2, %v634_v39 }
  0xb6   : > { %v643_v52 = vpop.f32.mrf.mxu1 }
  0xb7   : > { %v776_v48 = vsel %vm712_vm2, %v634_v39, %v744_v46 }
  0xb8   : > { %v547_v50 = vpop.f32.mrf.mxu0  ;;  %v807_v51 = vpack.c.bf16 %v776_v48, %v775_v47 }
  0xb9   : > { %v548_v53 = vadd.f32 %v1538_v27, %v547_v50 }
  0xba   : > { %899 = vmatmul.bf16.vlgmr.msra.gmra.mxu2 %v807_v51 }
  0xbb   : > { %586 = vmatmul.bf16.gmra.mxu0 %v1153_v49  ;;  %v637_v56 = vadd.f32 %v636_v21, %v548_v53 }
  0xbd   : > { %v745_v62 = vmul.f32 0.2, %v637_v56  ;;  %vm713_vm3 = vcmp.ge.f32.partialorder %v637_v56, 0.0 }
  0xbe   : > { %v646_v60 = vpop.f32.mrf.mxu1 }
  0xbf   : > { %v777_v2 = vsel %vm713_vm3, %v637_v56, %v745_v62 }
  0xc0   : > { %v549_v57 = vpop.f32.mrf.mxu0 }
  0xc1   : > { %v550_v59 = vadd.f32 %v1538_v27, %v549_v57  ;;  %1253 = vmatmul.msk.bf16.gmra.mxu1 %vm484_vm0, %v1173_v58 }
  0xc3   : > { %v639_v61 = vadd.f32 %v638_v30, %v550_v59  ;;  %v1186_v30 = vld [vmem:[%s1432_s30 + $0xd8] sm:$0xf0] }
  0xc4   : > { %v1189_v33 = vor.u32 %v1319_v29, %v1186_v30 }
  0xc5   : > { %vm714_vm4 = vcmp.ge.f32.partialorder %v639_v61, 0.0  ;;  %v746_v1 = vmul.f32 0.2, %v639_v61 }
  0xc6   : > { %v648_v7 = vpop.f32.mrf.mxu1 }
  0xc7   : > { %v778_v3 = vsel %vm714_vm4, %v639_v61, %v746_v1 }
  0xc8   : > { %v552_v5 = vpop.f32.mrf.mxu0  ;;  %v808_v6 = vpack.c.bf16 %v778_v3, %v777_v2 }
  0xc9   : > { %v553_v8 = vadd.f32 %v1538_v27, %v552_v5 }
  0xca   : > { %904 = vmatmul.bf16.gmra.mxu2 %v808_v6 }
  0xcb   : > { %591 = vmatmul.bf16.gmra.mxu0 %v1161_v4  ;;  %v642_v11 = vadd.f32 %v641_v38, %v553_v8 }
  0xcd   : > { %v747_v17 = vmul.f32 0.2, %v642_v11  ;;  %vm715_vm5 = vcmp.ge.f32.partialorder %v642_v11, 0.0 }
  0xce   : > { %v651_v15 = vpop.f32.mrf.mxu1 }
  0xcf   : > { %v779_v21 = vsel %vm715_vm5, %v642_v11, %v747_v17  ;;  %v1575_v11 = vpop.f32.mrf.mxu3 }
  0xd0   : > { %v554_v12 = vpop.f32.mrf.mxu0 }
  0xd1   : > { %v555_v14 = vadd.f32 %v1538_v27, %v554_v12  ;;  %1254 = vmatmul.msk.bf16.gmra.mxu1 %vm484_vm0, %v1181_v13 }
  0xd3   : > { %v644_v16 = vadd.f32 %v643_v52, %v555_v14 }
  0xd5   : > { %vm716_vm6 = vcmp.ge.f32.partialorder %v644_v16, 0.0  ;;  %v748_v20 = vmul.f32 0.2, %v644_v16 }
  0xd6   : > { %v653_v26 = vpop.f32.mrf.mxu1 }
  0xd7   : > { %v780_v22 = vsel %vm716_vm6, %v644_v16, %v748_v20 }
  0xd8   : > { %v557_v24 = vpop.f32.mrf.mxu0  ;;  %v809_v25 = vpack.c.bf16 %v780_v22, %v779_v21  ;;  %v1578_v21 = vpop.f32.mrf.mxu3 }
  0xd9   : > { %v558_v28 = vadd.f32 %v1538_v27, %v557_v24 }
  0xda   : > { %909 = vmatmul.bf16.gmra.mxu2 %v809_v25 }
  0xdb   : > { %596 = vmatmul.bf16.gmra.mxu0 %v1169_v23  ;;  %v647_v31 = vadd.f32 %v646_v60, %v558_v28 }
  0xdd   : > { %v749_v37 = vmul.f32 0.2, %v647_v31  ;;  %vm717_vm7 = vcmp.ge.f32.partialorder %v647_v31, 0.0 }
  0xde   : > { %v656_v35 = vpop.f32.mrf.mxu1 }
  0xdf   : > { %v781_v39 = vsel %vm717_vm7, %v647_v31, %v749_v37 }
  0xe0   : > { %v559_v32 = vpop.f32.mrf.mxu0  ;;  %v1581_v30 = vpop.f32.mrf.mxu3 }
  0xe1   : > { %v560_v34 = vadd.f32 %v1538_v27, %v559_v32  ;;  %1255 = vmatmul.msk.bf16.gmra.mxu1 %vm484_vm0, %v1189_v33 }
  0xe3   : > { %v649_v36 = vadd.f32 %v648_v7, %v560_v34 }
  0xe5   : > { %vm718_vm8 = vcmp.ge.f32.partialorder %v649_v36, 0.0  ;;  %v750_v38 = vmul.f32 0.2, %v649_v36 }
  0xe6   : > { %v658_v43 = vpop.f32.mrf.mxu1 }
  0xe7   : > { %v782_v40 = vsel %vm718_vm8, %v649_v36, %v750_v38 }
  0xe8   : > { %v562_v41 = vpop.f32.mrf.mxu0  ;;  %v810_v42 = vpack.c.bf16 %v782_v40, %v781_v39  ;;  %v1584_v39 = vpop.f32.mrf.mxu3 }
  0xe9   : > { %v563_v44 = vadd.f32 %v1538_v27, %v562_v41 }
  0xea   : > { %914 = vmatmul.bf16.gmra.mxu2 %v810_v42 }
  0xeb   : > { %v652_v45 = vadd.f32 %v651_v15, %v563_v44 }
  0xed   : > { %v751_v50 = vmul.f32 0.2, %v652_v45  ;;  %vm719_vm9 = vcmp.ge.f32.partialorder %v652_v45, 0.0 }
  0xee   : > { %v661_v48 = vpop.f32.mrf.mxu1 }
  0xef   : > { %v783_v52 = vsel %vm719_vm9, %v652_v45, %v751_v50  ;;  %v1590_v50 = vld [vmem:[%s1700_s4] ss:$0 sm:$0xff] }
  0xf0   : > { %v564_v46 = vpop.f32.mrf.mxu0 }
  0xf1   : > { %v565_v47 = vadd.f32 %v1538_v27, %v564_v46 }
  0xf3   : > { %v654_v49 = vadd.f32 %v653_v26, %v565_v47 }
  0xf5   : > { %vm720_vm10 = vcmp.ge.f32.partialorder %v654_v49, 0.0  ;;  %v752_v51 = vmul.f32 0.2, %v654_v49 }
  0xf6   : > { %v663_v56 = vpop.f32.mrf.mxu1 }
  0xf7   : > { %v784_v53 = vsel %vm720_vm10, %v654_v49, %v752_v51  ;;  %v1592_v51 = vpop.f32.mrf.mxu3 }
  0xf8   : > { %v567_v54 = vpop.f32.mrf.mxu0  ;;  %v811_v55 = vpack.c.bf16 %v784_v53, %v783_v52 }
  0xf9   : > { %v568_v57 = vadd.f32 %v1538_v27, %v567_v54 }
  0xfa   : > { %919 = vmatmul.bf16.gmra.mxu2 %v811_v55 }
  0xfb   : > { %v657_v58 = vadd.f32 %v656_v35, %v568_v57 }
  0xfd   : > { %v753_v63 = vmul.f32 0.2, %v657_v58  ;;  %vm721_vm11 = vcmp.ge.f32.partialorder %v657_v58, 0.0 }
  0xfe   : > { %v666_v61 = vpop.f32.mrf.mxu1 }
  0xff   : > { %v785_v1 = vsel %vm721_vm11, %v657_v58, %v753_v63 }
 0x100   : > { %v569_v59 = vpop.f32.mrf.mxu0 }
 0x101   : > { %v570_v60 = vadd.f32 %v1538_v27, %v569_v59 }
 0x103   : > { %v659_v62 = vadd.f32 %v658_v43, %v570_v60 }
 0x105   : > { %vm722_vm12 = vcmp.ge.f32.partialorder %v659_v62, 0.0  ;;  %v754_v0 = vmul.f32 0.2, %v659_v62 }
 0x106   : > { %v668_v5 = vpop.f32.mrf.mxu1 }
 0x107   : > { %v786_v2 = vsel %vm722_vm12, %v659_v62, %v754_v0 }
 0x108   : > { %v572_v3 = vpop.f32.mrf.mxu0  ;;  %v812_v4 = vpack.c.bf16 %v786_v2, %v785_v1 }
 0x109   : > { %v573_v6 = vadd.f32 %v1538_v27, %v572_v3 }
 0x10a   : > { %924 = vmatmul.bf16.gmra.mxu2 %v812_v4 }
 0x10b   : > { %v662_v7 = vadd.f32 %v661_v48, %v573_v6 }
 0x10d   : > { %v755_v13 = vmul.f32 0.2, %v662_v7  ;;  %vm723_vm13 = vcmp.ge.f32.partialorder %v662_v7, 0.0 }
 0x10e   : > { %v671_v10 = vpop.f32.mrf.mxu1 }
 0x10f   : > { %v787_v15 = vsel %vm723_vm13, %v662_v7, %v755_v13 }
 0x110   : > { %v574_v8 = vpop.f32.mrf.mxu0 }
 0x111   : > { %v575_v9 = vadd.f32 %v1538_v27, %v574_v8 }
 0x113   : > { %v664_v12 = vadd.f32 %v663_v56, %v575_v9 }
 0x115   : > { %vm724_vm14 = vcmp.ge.f32.partialorder %v664_v12, 0.0  ;;  %v756_v14 = vmul.f32 0.2, %v664_v12 }
 0x116   : > { %v673_v19 = vpop.f32.mrf.mxu1 }
 0x117   : > { %v788_v16 = vsel %vm724_vm14, %v664_v12, %v756_v14 }
 0x118   : > { %v577_v17 = vpop.f32.mrf.mxu0  ;;  %v813_v18 = vpack.c.bf16 %v788_v16, %v787_v15 }
 0x119   : > { %v578_v20 = vadd.f32 %v1538_v27, %v577_v17  ;;  %v603_v17 = vadd.f32 %v1538_v27, %v1575_v11 }
 0x11a   : > { %929 = vmatmul.bf16.gmra.mxu2 %v813_v18 }
 0x11b   : > { %v667_v22 = vadd.f32 %v666_v61, %v578_v20  ;;  %v1605_v61 = vpop.f32.mrf.mxu3 }
 0x11d   : > { %v757_v28 = vmul.f32 0.2, %v667_v22  ;;  %vm725_vm15 = vcmp.ge.f32.partialorder %v667_v22, 0.0 }
 0x11e   : > { %v676_v25 = vpop.f32.mrf.mxu1 }
 0x11f   : > { %v789_v31 = vsel %vm725_vm15, %v667_v22, %v757_v28 }
 0x120   : > { %v579_v23 = vpop.f32.mrf.mxu0 }
 0x121   : > { %v580_v24 = vadd.f32 %v1538_v27, %v579_v23 }
 0x123   : > { %v669_v26 = vadd.f32 %v668_v5, %v580_v24  ;;  %v1611_v9 = vpop.f32.mrf.mxu3 }
 0x125   : > { %vm726_vm0 = vcmp.ge.f32.partialorder %v669_v26, 0.0  ;;  %v758_v29 = vmul.f32 0.2, %v669_v26 }
 0x126   : > { %v678_v35 = vpop.f32.mrf.mxu1 }
 0x127   : > { %v790_v32 = vsel %vm726_vm0, %v669_v26, %v758_v29 }
 0x128   : > { %v582_v33 = vpop.f32.mrf.mxu0  ;;  %v814_v34 = vpack.c.bf16 %v790_v32, %v789_v31 }
 0x129   : > { %v583_v36 = vadd.f32 %v1538_v27, %v582_v33 }
 0x12a   : > { %934 = vmatmul.bf16.gmra.mxu2 %v814_v34 }
 0x12b   : > { %v672_v37 = vadd.f32 %v671_v10, %v583_v36  ;;  %v1621_v29 = vpop.f32.mrf.mxu3 }
 0x12d   : > { %v759_v43 = vmul.f32 0.2, %v672_v37  ;;  %vm727_vm1 = vcmp.ge.f32.partialorder %v672_v37, 0.0 }
 0x12e   : > { %v681_v41 = vpop.f32.mrf.mxu1 }
 0x12f   : > { %v791_v45 = vsel %vm727_vm1, %v672_v37, %v759_v43 }
 0x130   : > { %v584_v38 = vpop.f32.mrf.mxu0 }
 0x131   : > { %v585_v40 = vadd.f32 %v1538_v27, %v584_v38 }
 0x133   : > { %v674_v42 = vadd.f32 %v673_v19, %v585_v40 }
 0x135   : > { %vm728_vm2 = vcmp.ge.f32.partialorder %v674_v42, 0.0  ;;  %v760_v44 = vmul.f32 0.2, %v674_v42 }
 0x136   : > { %v683_v49 = vpop.f32.mrf.mxu1 }
 0x137   : > { %v792_v46 = vsel %vm728_vm2, %v674_v42, %v760_v44  ;;  %v701_v44 = vpop.f32.mrf.mxu3 }
 0x138   : > { %v587_v47 = vpop.f32.mrf.mxu0  ;;  %v815_v48 = vpack.c.bf16 %v792_v46, %v791_v45 }
 0x139   : > { %v588_v52 = vadd.f32 %v1538_v27, %v587_v47  ;;  %v608_v47 = vadd.f32 %v1538_v27, %v1581_v30 }
 0x13a   : > { %939 = vmatmul.bf16.gmra.mxu2 %v815_v48 }
 0x13b   : > { %v677_v55 = vadd.f32 %v676_v25, %v588_v52  ;;  %v605_v25 = vadd.f32 %v1538_v27, %v1578_v21 }
 0x13d   : > { %v900_v53 = vpop.f32.mrf.mxu2  ;;  %v761_v60 = vmul.f32 0.2, %v677_v55  ;;  %vm729_vm3 = vcmp.ge.f32.partialorder %v677_v55, 0.0 }
 0x13e   : > { %v901_v54 = vadd.f32 %v1590_v50, %v900_v53  ;;  %v686_v58 = vpop.f32.mrf.mxu1 }
 0x13f   : > { %v793_v1 = vsel %vm729_vm3, %v677_v55, %v761_v60 }
 0x140   : > { %980 = vst [vmem:[%s1600_s19] sm:$0xff] %v901_v54  ;;  %v589_v56 = vpop.f32.mrf.mxu0 }
 0x141   : > { %v590_v57 = vadd.f32 %v1538_v27, %v589_v56  ;;  %v610_v56 = vadd.f32 %v1538_v27, %v1584_v39  ;;  %v613_v39 = vadd.f32 %v1538_v27, %v1592_v51 }
 0x143   : > { %v679_v59 = vadd.f32 %v678_v35, %v590_v57 }
 0x145   : > { %v902_v62 = vpop.f32.mrf.mxu2  ;;  %vm730_vm4 = vcmp.ge.f32.partialorder %v679_v59, 0.0  ;;  %v762_v63 = vmul.f32 0.2, %v679_v59 }
 0x146   : > { %v903_v0 = vadd.f32 %v1590_v50, %v902_v62  ;;  %v688_v5 = vpop.f32.mrf.mxu1  ;;  %v703_v62 = vpop.f32.mrf.mxu3 }
 0x147   : > { %v794_v2 = vsel %vm730_vm4, %v679_v59, %v762_v63 }
 0x148   : > { %981 = vst [vmem:[%s1600_s19 + $0x8] sm:$0xff] %v903_v0  ;;  %v592_v3 = vpop.f32.mrf.mxu0  ;;  %v816_v4 = vpack.c.bf16 %v794_v2, %v793_v1 }
 0x149   : > { %v593_v6 = vadd.f32 %v1538_v27, %v592_v3 }
 0x14a   : > { %944 = vmatmul.bf16.gmra.mxu2 %v816_v4  ;;  %v615_v4 = vadd.f32 %v1538_v27, %v1605_v61 }
 0x14b   : > { %v682_v10 = vadd.f32 %v681_v41, %v593_v6 }
 0x14c   : > { %v704_v6 = vadd.f32 %v703_v62, %v615_v4 }
 0x14d   : > { %v905_v7 = vpop.f32.mrf.mxu2  ;;  %v763_v16 = vmul.f32 0.2, %v682_v10  ;;  %vm731_vm5 = vcmp.ge.f32.partialorder %v682_v10, 0.0 }
 0x14e   : > { %v906_v8 = vadd.f32 %v1590_v50, %v905_v7  ;;  %v691_v14 = vpop.f32.mrf.mxu1  ;;  %vm740_vm14 = vcmp.ge.f32.partialorder %v704_v6, 0.0 }
 0x14f   : > { %v692_v20 = vadd.f32 %v691_v14, %v603_v17  ;;  %v795_v23 = vsel %vm731_vm5, %v682_v10, %v763_v16  ;;  %v706_v10 = vpop.f32.mrf.mxu3  ;;  %v618_v17 = vadd.f32 %v1538_v27, %v1611_v9 }
 0x150   : > { %982 = vst [vmem:[%s1600_s19 + $0x10] sm:$0xff] %v906_v8  ;;  %v594_v12 = vpop.f32.mrf.mxu0 }
 0x151   : > { %v595_v13 = vadd.f32 %v1538_v27, %v594_v12  ;;  %v767_v11 = vmul.f32 0.2, %v692_v20  ;;  %vm735_vm7 = vcmp.ge.f32.partialorder %v692_v20, 0.0 }
 0x153   : > { %v684_v15 = vadd.f32 %v683_v49, %v595_v13  ;;  %v799_v36 = vsel %vm735_vm7, %v692_v20, %v767_v11  ;;  %v772_v13 = vmul.f32 0.2, %v704_v6  ;;  %v707_v20 = vadd.f32 %v706_v10, %v618_v17 }
 0x155   : > { %v907_v18 = vpop.f32.mrf.mxu2  ;;  %vm732_vm6 = vcmp.ge.f32.partialorder %v684_v15, 0.0  ;;  %v764_v19 = vmul.f32 0.2, %v684_v15  ;;  %v804_v51 = vsel %vm740_vm14, %v704_v6, %v772_v13  ;;  %vm741_vm15 = vcmp.ge.f32.partialorder %v707_v20, 0.0 }
 0x156   : > { %v908_v22 = vadd.f32 %v1590_v50, %v907_v18  ;;  %v693_v31 = vpop.f32.mrf.mxu1  ;;  %v620_v18 = vadd.f32 %v1538_v27, %v1621_v29 }
 0x157   : > { %v796_v24 = vsel %vm732_vm6, %v684_v15, %v764_v19  ;;  %v694_v32 = vadd.f32 %v693_v31, %v605_v25  ;;  %v708_v19 = vpop.f32.mrf.mxu3  ;;  %v773_v25 = vmul.f32 0.2, %v707_v20 }
 0x158   : > { %983 = vst [vmem:[%s1600_s19 + $0x18] sm:$0xff] %v908_v22  ;;  %v597_v26 = vpop.f32.mrf.mxu0  ;;  %v817_v28 = vpack.c.bf16 %v796_v24, %v795_v23  ;;  %v709_v22 = vadd.f32 %v708_v19, %v620_v18 }
 0x159   : > { %v598_v33 = vadd.f32 %v1538_v27, %v597_v26  ;;  %vm736_vm8 = vcmp.ge.f32.partialorder %v694_v32, 0.0  ;;  %v768_v34 = vmul.f32 0.2, %v694_v32  ;;  %v805_v9 = vsel %vm741_vm15, %v707_v20, %v773_v25 }
 0x15a   : > { %949 = vmatmul.bf16.gmra.mxu2 %v817_v28  ;;  %v774_v26 = vmul.f32 0.2, %v709_v22  ;;  %vm742_vm0 = vcmp.ge.f32.partialorder %v709_v22, 0.0 }
 0x15b   : > { %v800_v37 = vsel %vm736_vm8, %v694_v32, %v768_v34  ;;  %v687_v38 = vadd.f32 %v686_v58, %v598_v33 }
 0x15c   : > { %v819_v40 = vpack.c.bf16 %v800_v37, %v799_v36  ;;  %v806_v28 = vsel %vm742_vm0, %v709_v22, %v774_v26 }
 0x15d   : > { %v910_v35 = vpop.f32.mrf.mxu2  ;;  %v765_v46 = vmul.f32 0.2, %v687_v38  ;;  %vm733_vm9 = vcmp.ge.f32.partialorder %v687_v38, 0.0  ;;  %v822_v31 = vpack.c.bf16 %v806_v28, %v805_v9 }
 0x15e   : > { %v911_v21 = vadd.f32 %v1590_v50, %v910_v35  ;;  %v696_v43 = vpop.f32.mrf.mxu1  ;;  %959 = vmatmul.bf16.vlgmr.msra.gmra.mxu3 %v819_v40 }
 0x15f   : > { %v697_v52 = vadd.f32 %v696_v43, %v608_v47  ;;  %v797_v54 = vsel %vm733_vm9, %v687_v38, %v765_v46 }
 0x160   : > { %984 = vst [vmem:[%s1600_s19 + $0x20] sm:$0xff] %v911_v21  ;;  %v599_v41 = vpop.f32.mrf.mxu0 }
 0x161   : > { %v600_v42 = vadd.f32 %v1538_v27, %v599_v41  ;;  %v769_v59 = vmul.f32 0.2, %v697_v52  ;;  %vm737_vm11 = vcmp.ge.f32.partialorder %v697_v52, 0.0 }
 0x163   : > { %v689_v45 = vadd.f32 %v688_v5, %v600_v42  ;;  %v801_v1 = vsel %vm737_vm11, %v697_v52, %v769_v59  ;;  %v702_v5 = vadd.f32 %v701_v44, %v613_v39 }
 0x165   : > { %v912_v48 = vpop.f32.mrf.mxu2  ;;  %vm734_vm10 = vcmp.ge.f32.partialorder %v689_v45, 0.0  ;;  %v766_v49 = vmul.f32 0.2, %v689_v45  ;;  %v771_v12 = vmul.f32 0.2, %v702_v5  ;;  %vm739_vm13 = vcmp.ge.f32.partialorder %v702_v5, 0.0 }
 0x166   : > { %v913_v53 = vadd.f32 %v1590_v50, %v912_v48  ;;  %v698_v58 = vpop.f32.mrf.mxu1 }
 0x167   : > { %v798_v55 = vsel %vm734_vm10, %v689_v45, %v766_v49  ;;  %v699_v60 = vadd.f32 %v698_v58, %v610_v56  ;;  %v803_v14 = vsel %vm739_vm13, %v702_v5, %v771_v12 }
 0x168   : > { %985 = vst [vmem:[%s1600_s19 + $0x28] sm:$0xff] %v913_v53  ;;  %v818_v57 = vpack.c.bf16 %v798_v55, %v797_v54  ;;  %v821_v16 = vpack.c.bf16 %v804_v51, %v803_v14 }
 0x169   : > { %v770_v30 = vmul.f32 0.2, %v699_v60  ;;  %vm738_vm12 = vcmp.ge.f32.partialorder %v699_v60, 0.0 }
 0x16a   : > { %954 = vmatmul.bf16.gmra.mxu2 %v818_v57 }
 0x16b   : > { %v802_v2 = vsel %vm738_vm12, %v699_v60, %v770_v30 }
 0x16c   : > { %v820_v3 = vpack.c.bf16 %v802_v2, %v801_v1 }
 0x16d   : > { %v915_v63 = vpop.f32.mrf.mxu2 }
 0x16e   : > { %v916_v0 = vadd.f32 %v1590_v50, %v915_v63  ;;  %964 = vmatmul.bf16.gmra.mxu3 %v820_v3 }
 0x170   : > { %986 = vst [vmem:[%s1600_s19 + $0x30] sm:$0xff] %v916_v0 }
 0x175   : > { %v917_v7 = vpop.f32.mrf.mxu2 }
 0x176   : > { %v918_v8 = vadd.f32 %v1590_v50, %v917_v7 }
 0x178   : > { %987 = vst [vmem:[%s1600_s19 + $0x38] sm:$0xff] %v918_v8 }
 0x17d   : > { %v920_v15 = vpop.f32.mrf.mxu2 }
 0x17e   : > { %v921_v61 = vadd.f32 %v1590_v50, %v920_v15  ;;  %969 = vmatmul.bf16.gmra.mxu3 %v821_v16 }
 0x180   : > { %988 = vst [vmem:[%s1600_s19 + $0x40] sm:$0xff] %v921_v61 }
 0x185   : > { %v922_v23 = vpop.f32.mrf.mxu2 }
 0x186   : > { %v923_v24 = vadd.f32 %v1590_v50, %v922_v23 }
 0x188   : > { %989 = vst [vmem:[%s1600_s19 + $0x48] sm:$0xff] %v923_v24 }
 0x18d   : > { %v925_v27 = vpop.f32.mrf.mxu2 }
 0x18e   : > { %v926_v29 = vadd.f32 %v1590_v50, %v925_v27  ;;  %974 = vmatmul.bf16.gmra.mxu3 %v822_v31 }
 0x190   : > { %990 = vst [vmem:[%s1600_s19 + $0x50] sm:$0xff] %v926_v29 }
 0x195   : > { %v927_v11 = vpop.f32.mrf.mxu2 }
 0x196   : > { %v928_v32 = vadd.f32 %v1590_v50, %v927_v11 }
 0x198   : > { %991 = vst [vmem:[%s1600_s19 + $0x58] sm:$0xff] %v928_v32 }
 0x19d   : > { %v930_v33 = vpop.f32.mrf.mxu2 }
 0x19e   : > { %v931_v34 = vadd.f32 %v1590_v50, %v930_v33 }
 0x1a0   : > { %992 = vst [vmem:[%s1600_s19 + $0x60] sm:$0xff] %v931_v34 }
 0x1a5   : > { %v932_v35 = vpop.f32.mrf.mxu2 }
 0x1a6   : > { %v933_v36 = vadd.f32 %v1590_v50, %v932_v35 }
 0x1a8   : > { %993 = vst [vmem:[%s1600_s19 + $0x68] sm:$0xff] %v933_v36 }
 0x1ad   : > { %v935_v37 = vpop.f32.mrf.mxu2 }
 0x1ae   : > { %v936_v21 = vadd.f32 %v1590_v50, %v935_v37 }
 0x1b0   : > { %994 = vst [vmem:[%s1600_s19 + $0x70] sm:$0xff] %v936_v21 }
 0x1b5   : > { %v937_v38 = vpop.f32.mrf.mxu2 }
 0x1b6   : > { %v938_v40 = vadd.f32 %v1590_v50, %v937_v38 }
 0x1b8   : > { %995 = vst [vmem:[%s1600_s19 + $0x78] sm:$0xff] %v938_v40 }
 0x1bd   : > { %v940_v41 = vpop.f32.mrf.mxu2 }
 0x1be   : > { %v941_v42 = vadd.f32 %v1590_v50, %v940_v41 }
 0x1c0   : > { %996 = vst [vmem:[%s1600_s19 + $0x80] sm:$0xff] %v941_v42 }
 0x1c5   : > { %v942_v43 = vpop.f32.mrf.mxu2 }
 0x1c6   : > { %v943_v44 = vadd.f32 %v1590_v50, %v942_v43 }
 0x1c8   : > { %997 = vst [vmem:[%s1600_s19 + $0x88] sm:$0xff] %v943_v44 }
 0x1cd   : > { %v945_v45 = vpop.f32.mrf.mxu2 }
 0x1ce   : > { %v946_v46 = vadd.f32 %v1590_v50, %v945_v45 }
 0x1d0   : > { %998 = vst [vmem:[%s1600_s19 + $0x90] sm:$0xff] %v946_v46 }
 0x1d5   : > { %v947_v47 = vpop.f32.mrf.mxu2 }
 0x1d6   : > { %v948_v48 = vadd.f32 %v1590_v50, %v947_v47 }
 0x1d8   : > { %999 = vst [vmem:[%s1600_s19 + $0x98] sm:$0xff] %v948_v48 }
 0x1dd   : > { %v950_v49 = vpop.f32.mrf.mxu2 }
 0x1de   : > { %v951_v52 = vadd.f32 %v1590_v50, %v950_v49 }
 0x1e0   : > { %1000 = vst [vmem:[%s1600_s19 + $0xa0] sm:$0xff] %v951_v52 }
 0x1e1   : > { %v960_v53 = vpop.f32.mrf.mxu3 }
 0x1e2   : > { %v961_v54 = vadd.f32 %v1590_v50, %v960_v53 }
 0x1e4   : > { %1004 = vst [vmem:[%s1600_s19 + $0xc0] sm:$0xff] %v961_v54 }
 0x1e5   : > { %v952_v55 = vpop.f32.mrf.mxu2 }
 0x1e6   : > { %v953_v56 = vadd.f32 %v1590_v50, %v952_v55 }
 0x1e8   : > { %1001 = vst [vmem:[%s1600_s19 + $0xa8] sm:$0xff] %v953_v56 }
 0x1e9   : > { %v962_v57 = vpop.f32.mrf.mxu3 }
 0x1ea   : > { %v963_v58 = vadd.f32 %v1590_v50, %v962_v57 }
 0x1ec   : > { %1005 = vst [vmem:[%s1600_s19 + $0xc8] sm:$0xff] %v963_v58 }
 0x1ed   : > { %v955_v59 = vpop.f32.mrf.mxu2 }
 0x1ee   : > { %v956_v60 = vadd.f32 %v1590_v50, %v955_v59 }
 0x1f0   : > { %1002 = vst [vmem:[%s1600_s19 + $0xb0] sm:$0xff] %v956_v60 }
 0x1f1   : > { %v965_v30 = vpop.f32.mrf.mxu3 }
 0x1f2   : > { %v966_v62 = vadd.f32 %v1590_v50, %v965_v30 }
 0x1f4   : > { %1006 = vst [vmem:[%s1600_s19 + $0xd0] sm:$0xff] %v966_v62 }
 0x1f5   : > { %v957_v63 = vpop.f32.mrf.mxu2 }
 0x1f6   : > { %v958_v0 = vadd.f32 %v1590_v50, %v957_v63 }
 0x1f8   : > { %1003 = vst [vmem:[%s1600_s19 + $0xb8] sm:$0xff] %v958_v0 }
 0x1f9   : > { %v967_v1 = vpop.f32.mrf.mxu3 }
 0x1fa   : > { %v968_v2 = vadd.f32 %v1590_v50, %v967_v1 }
 0x1fc   : > { %1007 = vst [vmem:[%s1600_s19 + $0xd8] sm:$0xff] %v968_v2 }
 0x201   : > { %v970_v3 = vpop.f32.mrf.mxu3 }
 0x202   : > { %v971_v39 = vadd.f32 %v1590_v50, %v970_v3 }
 0x204   : > { %1008 = vst [vmem:[%s1600_s19 + $0xe0] sm:$0xff] %v971_v39 }
 0x209   : > { %v972_v4 = vpop.f32.mrf.mxu3 }
 0x20a   : > { %v973_v5 = vadd.f32 %v1590_v50, %v972_v4 }
 0x20c   : > { %1009 = vst [vmem:[%s1600_s19 + $0xe8] sm:$0xff] %v973_v5 }
 0x211   : > { %v975_v6 = vpop.f32.mrf.mxu3 }
 0x212   : > { %v976_v7 = vadd.f32 %v1590_v50, %v975_v6 }
 0x214   : > { %1010 = vst [vmem:[%s1600_s19 + $0xf0] sm:$0xff] %v976_v7 }
 0x219   : > { %v977_v8 = vpop.f32.mrf.mxu3 }
 0x21a   : > { %v978_v10 = vadd.f32 %v1590_v50, %v977_v8 }
 0x21c   : > { %1011 = vst [vmem:[%s1600_s19 + $0xf8] sm:$0xff] %v978_v10 }
 0x21d PF: > { %s15_s18 = sadd.s32 1, %s1375_s18  }
 0x21e   : > { %p12_p4 = scmp.ge.s32.totalorder %s15_s18, 4  }
 0x220   :  { %14 = sbr.rel (!%p12_p4) target bundleno = 1 (0x1), region = 70 }

</bundles_post_ra>
